<compile_context>
chip_gen: v7x
topology: tpu7x:2x2x1
jax: 0.10.0
libtpu: 0.0.40
codegen_flags: <defaults>
</compile_context>

<pallas_src>
import jax
import jax.numpy as jnp
import numpy as np
from jax.experimental import pallas as pl
from jax.experimental.pallas import tpu as pltpu

K_SIZE = 4
LANE = 128


def _round_up(n, m):
    return ((n + m - 1) // m) * m


# ---------------------------------------------------------------------------
# Kernel 1: fused LeakyReLU -> Conv2d(4,s2,p1) -> ReLU -> ConvTranspose2d(4,s2,p1)
# for one image, plus per-image BatchNorm partial statistics.
# ---------------------------------------------------------------------------
def _down_up_kernel(xpp_ref, wd_ref, wu_ref, u_ref, stat_ref, dpad_ref):
    # xpp_ref : (1, 4, Hd+1, Wd+1, Cin) phase-split zero-padded input (f32)
    # wd_ref  : (16, Cin, Nd)   down-conv taps, bf16, Nd = pad128(inner_nc)
    # wu_ref  : (4, 4, Nd, Nu)  sub-pixel up-conv taps, bf16, Nu = pad128(outer_nc)
    # u_ref   : (1, 4, Hd, Wd, Nu) pre-BN output, phase-major (f32)
    # stat_ref: (1, 2, Nu)      per-image (sum, sum_sq) over all pixels
    # dpad_ref: (Hd+2, Wd+2, Nd) VMEM scratch = zero-padded down activation
    _, _, Hd, Wd, Nu = u_ref.shape
    Cin = xpp_ref.shape[-1]
    Nd = wd_ref.shape[-1]

    # ---- down path: 16 fused-im2col taps accumulated on the MXU -------------
    acc = jnp.zeros((Hd * Wd, Nd), jnp.float32)
    for kh in range(K_SIZE):
        for kw in range(K_SIZE):
            ph = (kh % 2) * 2 + (kw % 2)          # spatial parity phase
            dh, dw = kh // 2, kw // 2             # offset inside the phase grid
            tap = xpp_ref[0, ph, dh:dh + Hd, dw:dw + Wd, :]       # (Hd, Wd, Cin)
            tap = jnp.where(tap >= 0, tap, 0.2 * tap)             # LeakyReLU (f32 VPU)
            tap = tap.reshape(Hd * Wd, Cin).astype(jnp.bfloat16)  # cast only at dot input
            acc = acc + jnp.dot(tap, wd_ref[kh * K_SIZE + kw],
                                preferred_element_type=jnp.float32)
    d = jnp.maximum(acc, 0.0)                                     # uprelu (ReLU)

    # ---- stage d into a zero-padded VMEM scratch (spatial pad = 1) ----------
    dpad_ref[...] = jnp.zeros_like(dpad_ref)
    dpad_ref[1:1 + Hd, 1:1 + Wd, :] = d.reshape(Hd, Wd, Nd)

    # ---- up path: sub-pixel ConvTranspose = 4 output phases x (2x2 conv) ----
    psum = jnp.zeros((1, Nu), jnp.float32)
    psq = jnp.zeros((1, Nu), jnp.float32)
    for r in range(2):
        for s in range(2):
            acc_u = jnp.zeros((Hd * Wd, Nu), jnp.float32)
            for dh in range(2):
                for dw in range(2):
                    tap = dpad_ref[r + dh:r + dh + Hd, s + dw:s + dw + Wd, :]
                    tap = tap.reshape(Hd * Wd, Nd).astype(jnp.bfloat16)
                    acc_u = acc_u + jnp.dot(tap, wu_ref[r * 2 + s, dh * 2 + dw],
                                            preferred_element_type=jnp.float32)
            u_ref[0, r * 2 + s] = acc_u.reshape(Hd, Wd, Nu)
            psum = psum + jnp.sum(acc_u, axis=0, keepdims=True)
            psq = psq + jnp.sum(acc_u * acc_u, axis=0, keepdims=True)

    stat_ref[0, 0:1, :] = psum
    stat_ref[0, 1:2, :] = psq


def _call_down_up(xpp, wd, wu, B, Hd, Wd, Cin, Nd, Nu):
    Hp, Wp = Hd + 1, Wd + 1
    return pl.pallas_call(
        _down_up_kernel,
        out_shape=(jax.ShapeDtypeStruct((B, 4, Hd, Wd, Nu), jnp.float32),
                   jax.ShapeDtypeStruct((B, 2, Nu), jnp.float32)),
        grid=(B,),
        in_specs=[
            pl.BlockSpec((1, 4, Hp, Wp, Cin), lambda i: (i, 0, 0, 0, 0)),
            pl.BlockSpec((16, Cin, Nd), lambda i: (0, 0, 0)),        # weight stays resident
            pl.BlockSpec((4, 4, Nd, Nu), lambda i: (0, 0, 0, 0)),    # weight stays resident
        ],
        out_specs=(
            pl.BlockSpec((1, 4, Hd, Wd, Nu), lambda i: (i, 0, 0, 0, 0)),
            pl.BlockSpec((1, 2, Nu), lambda i: (i, 0, 0)),
        ),
        scratch_shapes=[pltpu.VMEM((Hd + 2, Wd + 2, Nd), jnp.float32)],
        compiler_params=pltpu.CompilerParams(dimension_semantics=("parallel",)),
    )(xpp, wd, wu)


# ---------------------------------------------------------------------------
# Kernel 2: BatchNorm affine (y = u * scale + shift), lane-dense blocks.
# ---------------------------------------------------------------------------
def _bn_affine_kernel(u_ref, scale_ref, shift_ref, y_ref):
    y_ref[...] = u_ref[...] * scale_ref[...] + shift_ref[...]


def _call_bn_affine(u, scale, shift):
    B, P, Hd, Wd, Nu = u.shape
    return pl.pallas_call(
        _bn_affine_kernel,
        out_shape=jax.ShapeDtypeStruct(u.shape, jnp.float32),
        grid=(B,),
        in_specs=[
            pl.BlockSpec((1, P, Hd, Wd, Nu), lambda i: (i, 0, 0, 0, 0)),
            pl.BlockSpec((1, 1, 1, 1, Nu), lambda i: (0, 0, 0, 0, 0)),
            pl.BlockSpec((1, 1, 1, 1, Nu), lambda i: (0, 0, 0, 0, 0)),
        ],
        out_specs=pl.BlockSpec((1, P, Hd, Wd, Nu), lambda i: (i, 0, 0, 0, 0)),
        compiler_params=pltpu.CompilerParams(dimension_semantics=("parallel",)),
    )(u, scale, shift)


# ---------------------------------------------------------------------------
# Full block forward
# ---------------------------------------------------------------------------
def unet_innermost_block(x_nchw, w_down, w_up, gamma, beta):
    B, Cin, H, W = x_nchw.shape
    inner_nc = w_down.shape[0]
    outer_nc = w_up.shape[1]
    assert H % 2 == 0 and W % 2 == 0, "spatial dims must be even (stride-2 down/up)"
    Hd, Wd = H // 2, W // 2
    Hp, Wp = Hd + 1, Wd + 1
    Nd = _round_up(inner_nc, LANE)   # lane-dense inner channels
    Nu = _round_up(outer_nc, LANE)   # lane-dense outer channels

    x_nchw = x_nchw.astype(jnp.float32)

    # ---- layout plumbing: NCHW -> NHWC, pad=1, split into 2x2 spatial phases ----
    x_nhwc = jnp.transpose(x_nchw, (0, 2, 3, 1))
    x_padded = jnp.pad(x_nhwc, ((0, 0), (1, 1), (1, 1), (0, 0)))
    xpp = (x_padded.reshape(B, Hp, 2, Wp, 2, Cin)
           .transpose(0, 2, 4, 1, 3, 5)
           .reshape(B, 4, Hp, Wp, Cin))

    # ---- Conv2d weight (co, ci, kh, kw) -> (kh*4+kw, ci, co_padded), bf16 ----
    wd = jnp.transpose(w_down, (2, 3, 1, 0)).reshape(K_SIZE * K_SIZE, Cin, inner_nc)
    wd = jnp.pad(wd, ((0, 0), (0, 0), (0, Nd - inner_nc))).astype(jnp.bfloat16)

    # ---- ConvTranspose2d weight (ci, co, kh, kw) -> sub-pixel phase taps, bf16 ----
    # out[2q+r, 2p+s] = sum_{dh,dw} d_pad[q+r+dh, p+s+dw] @ W[:, :, 3-r-2dh, 3-s-2dw]
    w_up_t = jnp.transpose(w_up, (2, 3, 0, 1))       # (kh, kw, ci, co)
    taps = []
    for r in range(2):
        for s in range(2):
            for dh in range(2):
                for dw in range(2):
                    taps.append(w_up_t[3 - r - 2 * dh, 3 - s - 2 * dw])
    wu = jnp.stack(taps, axis=0).reshape(4, 4, inner_nc, outer_nc)
    wu = jnp.pad(wu, ((0, 0), (0, 0), (0, Nd - inner_nc), (0, Nu - outer_nc)))
    wu = wu.astype(jnp.bfloat16)

    # ---- kernel 1: fused down + up conv, per-image BN partial statistics ----
    u_ph, stats = _call_down_up(xpp, wd, wu, B, Hd, Wd, Cin, Nd, Nu)

    # ---- BatchNorm2d (training mode): batch stats over (N, H, W) per channel ----
    # TODO(synk): switch to a Welford/two-pass tiled reduction for very large N*H*W.
    count = jnp.float32(B * H * W)
    tot = jnp.sum(stats, axis=0)                     # (2, Nu)
    mean = tot[0] / count
    var = tot[1] / count - mean * mean               # biased variance
    gamma_p = jnp.pad(gamma.astype(jnp.float32), (0, Nu - outer_nc))
    beta_p = jnp.pad(beta.astype(jnp.float32), (0, Nu - outer_nc))
    scale = gamma_p * jax.lax.rsqrt(var + 1e-5)
    shift = beta_p - mean * scale

    # ---- kernel 2: lane-dense BN affine ----
    y_ph = _call_bn_affine(u_ph, scale.reshape(1, 1, 1, 1, Nu),
                           shift.reshape(1, 1, 1, 1, Nu))

    # ---- un-phase, slice channel padding, NHWC -> NCHW, skip concat ----
    y = y_ph[..., :outer_nc].reshape(B, 2, 2, Hd, Wd, outer_nc)
    y_nchw = y.transpose(0, 5, 3, 1, 4, 2).reshape(B, outer_nc, H, W)
    # TODO(synk): final concat + layout transpose are XLA plumbing; they could be
    # folded into kernel 2 with strided stores if the consumer accepted NHWC.
    return jnp.concatenate([x_nchw, y_nchw], axis=1)


# ---------------------------------------------------------------------------
# Pure-JAX reference (lax convolutions) for a correctness check
# ---------------------------------------------------------------------------
def _reference(x, w_down, w_up, gamma, beta):
    lrelu = jnp.where(x >= 0, x, 0.2 * x)
    d = jax.lax.conv_general_dilated(lrelu, w_down, (2, 2), ((1, 1), (1, 1)),
                                     dimension_numbers=("NCHW", "OIHW", "NCHW"))
    d = jnp.maximum(d, 0.0)
    w_eq = jnp.transpose(w_up[:, :, ::-1, ::-1], (1, 0, 2, 3))
    u = jax.lax.conv_general_dilated(d, w_eq, (1, 1), ((2, 2), (2, 2)),
                                     lhs_dilation=(2, 2),
                                     dimension_numbers=("NCHW", "OIHW", "NCHW"))
    mean = jnp.mean(u, axis=(0, 2, 3), keepdims=True)
    var = jnp.mean(jnp.square(u - mean), axis=(0, 2, 3), keepdims=True)
    y = (u - mean) * jax.lax.rsqrt(var + 1e-5) * gamma.reshape(1, -1, 1, 1) \
        + beta.reshape(1, -1, 1, 1)
    return jnp.concatenate([x, y], axis=1)


if __name__ == "__main__":
    # Module config: innermost=True, input_nc=None => input_nc = outer_nc.
    B, outer_nc, inner_nc, H, W = 2, 4, 8, 16, 16
    input_nc = outer_nc

    key = jax.random.PRNGKey(0)
    kx, kd, ku, kg, kb = jax.random.split(key, 5)
    x = jax.random.normal(kx, (B, input_nc, H, W), jnp.float32)
    # Synthetic parameters with PyTorch layouts:
    w_down = 0.1 * jax.random.normal(kd, (inner_nc, input_nc, K_SIZE, K_SIZE), jnp.float32)
    w_up = 0.1 * jax.random.normal(ku, (inner_nc, outer_nc, K_SIZE, K_SIZE), jnp.float32)
    gamma = 1.0 + 0.1 * jax.random.normal(kg, (outer_nc,), jnp.float32)
    beta = 0.1 * jax.random.normal(kb, (outer_nc,), jnp.float32)

    out = jax.jit(unet_innermost_block)(x, w_down, w_up, gamma, beta)
    out = jax.block_until_ready(out)

    assert out.shape == (B, 2 * outer_nc, H, W), out.shape
    ref = _reference(x, w_down, w_up, gamma, beta)
    np.testing.assert_allclose(np.asarray(out), np.asarray(ref), rtol=5e-2, atol=5e-2)
    print("KERNEL_OK")
</pallas_src>

<mosaic_0001>
module attributes {stable_mosaic.version = 11 : i64} {
  func.func @_bn_affine_kernel(%arg0: i32, %arg1: memref<1x4x8x8x128xf32, #tpu.memory_space<vmem>>, %arg2: memref<1x1x1x1x128xf32, #tpu.memory_space<vmem>>, %arg3: memref<1x1x1x1x128xf32, #tpu.memory_space<vmem>>, %arg4: memref<1x4x8x8x128xf32, #tpu.memory_space<vmem>>) attributes {dimension_semantics = [#tpu.dimension_semantics<parallel>], iteration_bounds = array<i64: 2>, scalar_prefetch = 0 : i64, scratch_operands = 0 : i64, tpu.core_type = #tpu.core_type<tc>, window_params = [{transform_indices = @transform_0, window_bounds = array<i64: 1, 4, 8, 8, 128>}, {pipeline_mode = #tpu.pipeline_mode<synchronous>, transform_indices = @transform_1, window_bounds = array<i64: 1, 1, 1, 1, 128>}, {pipeline_mode = #tpu.pipeline_mode<synchronous>, transform_indices = @transform_2, window_bounds = array<i64: 1, 1, 1, 1, 128>}, {transform_indices = @transform_3, window_bounds = array<i64: 1, 4, 8, 8, 128>}]} {
    %c0 = arith.constant 0 : index
    %c0_0 = arith.constant 0 : index
    %c0_1 = arith.constant 0 : index
    %c0_2 = arith.constant 0 : index
    %c0_3 = arith.constant 0 : index
    %0 = vector.load %arg1[%c0, %c0_0, %c0_1, %c0_2, %c0_3] : memref<1x4x8x8x128xf32, #tpu.memory_space<vmem>>, vector<1x4x8x8x128xf32>
    %c0_4 = arith.constant 0 : index
    %c0_5 = arith.constant 0 : index
    %c0_6 = arith.constant 0 : index
    %c0_7 = arith.constant 0 : index
    %c0_8 = arith.constant 0 : index
    %1 = vector.load %arg2[%c0_4, %c0_5, %c0_6, %c0_7, %c0_8] : memref<1x1x1x1x128xf32, #tpu.memory_space<vmem>>, vector<1x1x1x1x128xf32>
    %2 = vector.broadcast %1 : vector<1x1x1x1x128xf32> to vector<1x4x8x8x128xf32>
    %3 = arith.mulf %0, %2 : vector<1x4x8x8x128xf32>
    %c0_9 = arith.constant 0 : index
    %c0_10 = arith.constant 0 : index
    %c0_11 = arith.constant 0 : index
    %c0_12 = arith.constant 0 : index
    %c0_13 = arith.constant 0 : index
    %4 = vector.load %arg3[%c0_9, %c0_10, %c0_11, %c0_12, %c0_13] : memref<1x1x1x1x128xf32, #tpu.memory_space<vmem>>, vector<1x1x1x1x128xf32>
    %5 = vector.broadcast %4 : vector<1x1x1x1x128xf32> to vector<1x4x8x8x128xf32>
    %6 = arith.addf %3, %5 : vector<1x4x8x8x128xf32>
    %c0_14 = arith.constant 0 : index
    %c0_15 = arith.constant 0 : index
    %c0_16 = arith.constant 0 : index
    %c0_17 = arith.constant 0 : index
    %c0_18 = arith.constant 0 : index
    %7 = vector.load %arg4[%c0_14, %c0_15, %c0_16, %c0_17, %c0_18] : memref<1x4x8x8x128xf32, #tpu.memory_space<vmem>>, vector<1x4x8x8x128xf32>
    tpu.vector_store %arg4[%c0_14, %c0_15, %c0_16, %c0_17, %c0_18], %6 {strides = array<i32>} : memref<1x4x8x8x128xf32, #tpu.memory_space<vmem>>, vector<1x4x8x8x128xf32>,
    return
  }
  func.func @transform_0(%arg0: i32) -> (i32, i32, i32, i32, i32) {
    %c0_i32 = arith.constant 0 : i32
    %c0_i32_0 = arith.constant 0 : i32
    %c0_i32_1 = arith.constant 0 : i32
    %c0_i32_2 = arith.constant 0 : i32
    %c0_i32_3 = arith.constant 0 : i32
    return %arg0, %c0_i32, %c0_i32_0, %c0_i32_1, %c0_i32_2 : i32, i32, i32, i32, i32
  }
  func.func @transform_1(%arg0: i32) -> (i32, i32, i32, i32, i32) {
    %c0_i32 = arith.constant 0 : i32
    %c0_i32_0 = arith.constant 0 : i32
    %c0_i32_1 = arith.constant 0 : i32
    %c0_i32_2 = arith.constant 0 : i32
    %c0_i32_3 = arith.constant 0 : i32
    %c0_i32_4 = arith.constant 0 : i32
    return %c0_i32, %c0_i32_0, %c0_i32_1, %c0_i32_2, %c0_i32_3 : i32, i32, i32, i32, i32
  }
  func.func @transform_2(%arg0: i32) -> (i32, i32, i32, i32, i32) {
    %c0_i32 = arith.constant 0 : i32
    %c0_i32_0 = arith.constant 0 : i32
    %c0_i32_1 = arith.constant 0 : i32
    %c0_i32_2 = arith.constant 0 : i32
    %c0_i32_3 = arith.constant 0 : i32
    %c0_i32_4 = arith.constant 0 : i32
    return %c0_i32, %c0_i32_0, %c0_i32_1, %c0_i32_2, %c0_i32_3 : i32, i32, i32, i32, i32
  }
  func.func @transform_3(%arg0: i32) -> (i32, i32, i32, i32, i32) {
    %c0_i32 = arith.constant 0 : i32
    %c0_i32_0 = arith.constant 0 : i32
    %c0_i32_1 = arith.constant 0 : i32
    %c0_i32_2 = arith.constant 0 : i32
    %c0_i32_3 = arith.constant 0 : i32
    return %arg0, %c0_i32, %c0_i32_0, %c0_i32_1, %c0_i32_2 : i32, i32, i32, i32, i32
  }
}

module attributes {stable_mosaic.version = 11 : i64} {
  func.func @_down_up_kernel(%arg0: i32, %arg1: memref<1x4x9x9x4xf32, #tpu.memory_space<vmem>>, %arg2: memref<16x4x128xbf16, #tpu.memory_space<vmem>>, %arg3: memref<4x4x128x128xbf16, #tpu.memory_space<vmem>>, %arg4: memref<1x4x8x8x128xf32, #tpu.memory_space<vmem>>, %arg5: memref<1x2x128xf32, #tpu.memory_space<vmem>>, %arg6: memref<10x10x128xf32, #tpu.memory_space<vmem>>) attributes {dimension_semantics = [#tpu.dimension_semantics<parallel>], iteration_bounds = array<i64: 2>, scalar_prefetch = 0 : i64, scratch_operands = 1 : i64, tpu.core_type = #tpu.core_type<tc>, window_params = [{transform_indices = @transform_0, window_bounds = array<i64: 1, 4, 9, 9, 4>}, {pipeline_mode = #tpu.pipeline_mode<synchronous>, transform_indices = @transform_1, window_bounds = array<i64: 16, 4, 128>}, {pipeline_mode = #tpu.pipeline_mode<synchronous>, transform_indices = @transform_2, window_bounds = array<i64: 4, 4, 128, 128>}, {transform_indices = @transform_3, window_bounds = array<i64: 1, 4, 8, 8, 128>}, {transform_indices = @transform_4, window_bounds = array<i64: 1, 2, 128>}]} {
    %cst = arith.constant 0.000000e+00 : f32
    %0 = vector.broadcast %cst : f32 to vector<64x128xf32>
    %c0 = arith.constant 0 : index
    %c0_0 = arith.constant 0 : index
    %c0_1 = arith.constant 0 : index
    %c0_2 = arith.constant 0 : index
    %c0_3 = arith.constant 0 : index
    %1 = vector.load %arg1[%c0, %c0_0, %c0_1, %c0_2, %c0_3] : memref<1x4x9x9x4xf32, #tpu.memory_space<vmem>>, vector<1x1x8x8x4xf32>
    %2 = vector.shape_cast %1 : vector<1x1x8x8x4xf32> to vector<8x8x4xf32>
    %cst_4 = arith.constant 0.000000e+00 : f32
    %3 = vector.broadcast %cst_4 : f32 to vector<8x8x4xf32>
    %4 = arith.cmpf oge, %2, %3 : vector<8x8x4xf32>
    %cst_5 = arith.constant 2.000000e-01 : f32
    %5 = vector.broadcast %cst_5 : f32 to vector<8x8x4xf32>
    %6 = arith.mulf %5, %2 : vector<8x8x4xf32>
    %7 = arith.select %4, %2, %6 : vector<8x8x4xi1>, vector<8x8x4xf32>
    %8 = vector.shape_cast %7 : vector<8x8x4xf32> to vector<64x4xf32>
    %9 = arith.truncf %8 : vector<64x4xf32> to vector<64x4xbf16>
    %c0_6 = arith.constant 0 : index
    %c0_7 = arith.constant 0 : index
    %c0_8 = arith.constant 0 : index
    %10 = vector.load %arg2[%c0_6, %c0_7, %c0_8] : memref<16x4x128xbf16, #tpu.memory_space<vmem>>, vector<1x4x128xbf16>
    %11 = vector.shape_cast %10 : vector<1x4x128xbf16> to vector<4x128xbf16>
    %cst_9 = arith.constant dense<0.000000e+00> : vector<64x128xf32>
    %12 = tpu.matmul %9, %11, %cst_9 {dimension_numbers = #tpu.dot_dimension_numbers<[1], [0], [0], [1], [0, 0, 1, 1], [], []>} : vector<64x4xbf16>, vector<4x128xbf16>, vector<64x128xf32> -> vector<64x128xf32>
    %13 = arith.addf %0, %12 : vector<64x128xf32>
    %c0_10 = arith.constant 0 : index
    %c1 = arith.constant 1 : index
    %c0_11 = arith.constant 0 : index
    %c0_12 = arith.constant 0 : index
    %c0_13 = arith.constant 0 : index
    %14 = vector.load %arg1[%c0_10, %c1, %c0_11, %c0_12, %c0_13] : memref<1x4x9x9x4xf32, #tpu.memory_space<vmem>>, vector<1x1x8x8x4xf32>
    %15 = vector.shape_cast %14 : vector<1x1x8x8x4xf32> to vector<8x8x4xf32>
    %cst_14 = arith.constant 0.000000e+00 : f32
    %16 = vector.broadcast %cst_14 : f32 to vector<8x8x4xf32>
    %17 = arith.cmpf oge, %15, %16 : vector<8x8x4xf32>
    %cst_15 = arith.constant 2.000000e-01 : f32
    %18 = vector.broadcast %cst_15 : f32 to vector<8x8x4xf32>
    %19 = arith.mulf %18, %15 : vector<8x8x4xf32>
    %20 = arith.select %17, %15, %19 : vector<8x8x4xi1>, vector<8x8x4xf32>
    %21 = vector.shape_cast %20 : vector<8x8x4xf32> to vector<64x4xf32>
    %22 = arith.truncf %21 : vector<64x4xf32> to vector<64x4xbf16>
    %c1_16 = arith.constant 1 : index
    %c0_17 = arith.constant 0 : index
    %c0_18 = arith.constant 0 : index
    %23 = vector.load %arg2[%c1_16, %c0_17, %c0_18] : memref<16x4x128xbf16, #tpu.memory_space<vmem>>, vector<1x4x128xbf16>
    %24 = vector.shape_cast %23 : vector<1x4x128xbf16> to vector<4x128xbf16>
    %cst_19 = arith.constant dense<0.000000e+00> : vector<64x128xf32>
    %25 = tpu.matmul %22, %24, %cst_19 {dimension_numbers = #tpu.dot_dimension_numbers<[1], [0], [0], [1], [0, 0, 1, 1], [], []>} : vector<64x4xbf16>, vector<4x128xbf16>, vector<64x128xf32> -> vector<64x128xf32>
    %26 = arith.addf %13, %25 : vector<64x128xf32>
    %c0_20 = arith.constant 0 : index
    %c0_21 = arith.constant 0 : index
    %c0_22 = arith.constant 0 : index
    %c1_23 = arith.constant 1 : index
    %c0_24 = arith.constant 0 : index
    %27 = vector.load %arg1[%c0_20, %c0_21, %c0_22, %c1_23, %c0_24] : memref<1x4x9x9x4xf32, #tpu.memory_space<vmem>>, vector<1x1x8x8x4xf32>
    %28 = vector.shape_cast %27 : vector<1x1x8x8x4xf32> to vector<8x8x4xf32>
    %cst_25 = arith.constant 0.000000e+00 : f32
    %29 = vector.broadcast %cst_25 : f32 to vector<8x8x4xf32>
    %30 = arith.cmpf oge, %28, %29 : vector<8x8x4xf32>
    %cst_26 = arith.constant 2.000000e-01 : f32
    %31 = vector.broadcast %cst_26 : f32 to vector<8x8x4xf32>
    %32 = arith.mulf %31, %28 : vector<8x8x4xf32>
    %33 = arith.select %30, %28, %32 : vector<8x8x4xi1>, vector<8x8x4xf32>
    %34 = vector.shape_cast %33 : vector<8x8x4xf32> to vector<64x4xf32>
    %35 = arith.truncf %34 : vector<64x4xf32> to vector<64x4xbf16>
    %c2 = arith.constant 2 : index
    %c0_27 = arith.constant 0 : index
    %c0_28 = arith.constant 0 : index
    %36 = vector.load %arg2[%c2, %c0_27, %c0_28] : memref<16x4x128xbf16, #tpu.memory_space<vmem>>, vector<1x4x128xbf16>
    %37 = vector.shape_cast %36 : vector<1x4x128xbf16> to vector<4x128xbf16>
    %cst_29 = arith.constant dense<0.000000e+00> : vector<64x128xf32>
    %38 = tpu.matmul %35, %37, %cst_29 {dimension_numbers = #tpu.dot_dimension_numbers<[1], [0], [0], [1], [0, 0, 1, 1], [], []>} : vector<64x4xbf16>, vector<4x128xbf16>, vector<64x128xf32> -> vector<64x128xf32>
    %39 = arith.addf %26, %38 : vector<64x128xf32>
    %c0_30 = arith.constant 0 : index
    %c1_31 = arith.constant 1 : index
    %c0_32 = arith.constant 0 : index
    %c1_33 = arith.constant 1 : index
    %c0_34 = arith.constant 0 : index
    %40 = vector.load %arg1[%c0_30, %c1_31, %c0_32, %c1_33, %c0_34] : memref<1x4x9x9x4xf32, #tpu.memory_space<vmem>>, vector<1x1x8x8x4xf32>
    %41 = vector.shape_cast %40 : vector<1x1x8x8x4xf32> to vector<8x8x4xf32>
    %cst_35 = arith.constant 0.000000e+00 : f32
    %42 = vector.broadcast %cst_35 : f32 to vector<8x8x4xf32>
    %43 = arith.cmpf oge, %41, %42 : vector<8x8x4xf32>
    %cst_36 = arith.constant 2.000000e-01 : f32
    %44 = vector.broadcast %cst_36 : f32 to vector<8x8x4xf32>
    %45 = arith.mulf %44, %41 : vector<8x8x4xf32>
    %46 = arith.select %43, %41, %45 : vector<8x8x4xi1>, vector<8x8x4xf32>
    %47 = vector.shape_cast %46 : vector<8x8x4xf32> to vector<64x4xf32>
    %48 = arith.truncf %47 : vector<64x4xf32> to vector<64x4xbf16>
    %c3 = arith.constant 3 : index
    %c0_37 = arith.constant 0 : index
    %c0_38 = arith.constant 0 : index
    %49 = vector.load %arg2[%c3, %c0_37, %c0_38] : memref<16x4x128xbf16, #tpu.memory_space<vmem>>, vector<1x4x128xbf16>
    %50 = vector.shape_cast %49 : vector<1x4x128xbf16> to vector<4x128xbf16>
    %cst_39 = arith.constant dense<0.000000e+00> : vector<64x128xf32>
    %51 = tpu.matmul %48, %50, %cst_39 {dimension_numbers = #tpu.dot_dimension_numbers<[1], [0], [0], [1], [0, 0, 1, 1], [], []>} : vector<64x4xbf16>, vector<4x128xbf16>, vector<64x128xf32> -> vector<64x128xf32>
    %52 = arith.addf %39, %51 : vector<64x128xf32>
    %c0_40 = arith.constant 0 : index
    %c2_41 = arith.constant 2 : index
    %c0_42 = arith.constant 0 : index
    %c0_43 = arith.constant 0 : index
    %c0_44 = arith.constant 0 : index
    %53 = vector.load %arg1[%c0_40, %c2_41, %c0_42, %c0_43, %c0_44] : memref<1x4x9x9x4xf32, #tpu.memory_space<vmem>>, vector<1x1x8x8x4xf32>
    %54 = vector.shape_cast %53 : vector<1x1x8x8x4xf32> to vector<8x8x4xf32>
    %cst_45 = arith.constant 0.000000e+00 : f32
    %55 = vector.broadcast %cst_45 : f32 to vector<8x8x4xf32>
    %56 = arith.cmpf oge, %54, %55 : vector<8x8x4xf32>
    %cst_46 = arith.constant 2.000000e-01 : f32
    %57 = vector.broadcast %cst_46 : f32 to vector<8x8x4xf32>
    %58 = arith.mulf %57, %54 : vector<8x8x4xf32>
    %59 = arith.select %56, %54, %58 : vector<8x8x4xi1>, vector<8x8x4xf32>
    %60 = vector.shape_cast %59 : vector<8x8x4xf32> to vector<64x4xf32>
    %61 = arith.truncf %60 : vector<64x4xf32> to vector<64x4xbf16>
    %c4 = arith.constant 4 : index
    %c0_47 = arith.constant 0 : index
    %c0_48 = arith.constant 0 : index
    %62 = vector.load %arg2[%c4, %c0_47, %c0_48] : memref<16x4x128xbf16, #tpu.memory_space<vmem>>, vector<1x4x128xbf16>
    %63 = vector.shape_cast %62 : vector<1x4x128xbf16> to vector<4x128xbf16>
    %cst_49 = arith.constant dense<0.000000e+00> : vector<64x128xf32>
    %64 = tpu.matmul %61, %63, %cst_49 {dimension_numbers = #tpu.dot_dimension_numbers<[1], [0], [0], [1], [0, 0, 1, 1], [], []>} : vector<64x4xbf16>, vector<4x128xbf16>, vector<64x128xf32> -> vector<64x128xf32>
    %65 = arith.addf %52, %64 : vector<64x128xf32>
    %c0_50 = arith.constant 0 : index
    %c3_51 = arith.constant 3 : index
    %c0_52 = arith.constant 0 : index
    %c0_53 = arith.constant 0 : index
    %c0_54 = arith.constant 0 : index
    %66 = vector.load %arg1[%c0_50, %c3_51, %c0_52, %c0_53, %c0_54] : memref<1x4x9x9x4xf32, #tpu.memory_space<vmem>>, vector<1x1x8x8x4xf32>
    %67 = vector.shape_cast %66 : vector<1x1x8x8x4xf32> to vector<8x8x4xf32>
    %cst_55 = arith.constant 0.000000e+00 : f32
    %68 = vector.broadcast %cst_55 : f32 to vector<8x8x4xf32>
    %69 = arith.cmpf oge, %67, %68 : vector<8x8x4xf32>
    %cst_56 = arith.constant 2.000000e-01 : f32
    %70 = vector.broadcast %cst_56 : f32 to vector<8x8x4xf32>
    %71 = arith.mulf %70, %67 : vector<8x8x4xf32>
    %72 = arith.select %69, %67, %71 : vector<8x8x4xi1>, vector<8x8x4xf32>
    %73 = vector.shape_cast %72 : vector<8x8x4xf32> to vector<64x4xf32>
    %74 = arith.truncf %73 : vector<64x4xf32> to vector<64x4xbf16>
    %c5 = arith.constant 5 : index
    %c0_57 = arith.constant 0 : index
    %c0_58 = arith.constant 0 : index
    %75 = vector.load %arg2[%c5, %c0_57, %c0_58] : memref<16x4x128xbf16, #tpu.memory_space<vmem>>, vector<1x4x128xbf16>
    %76 = vector.shape_cast %75 : vector<1x4x128xbf16> to vector<4x128xbf16>
    %cst_59 = arith.constant dense<0.000000e+00> : vector<64x128xf32>
    %77 = tpu.matmul %74, %76, %cst_59 {dimension_numbers = #tpu.dot_dimension_numbers<[1], [0], [0], [1], [0, 0, 1, 1], [], []>} : vector<64x4xbf16>, vector<4x128xbf16>, vector<64x128xf32> -> vector<64x128xf32>
    %78 = arith.addf %65, %77 : vector<64x128xf32>
    %c0_60 = arith.constant 0 : index
    %c2_61 = arith.constant 2 : index
    %c0_62 = arith.constant 0 : index
    %c1_63 = arith.constant 1 : index
    %c0_64 = arith.constant 0 : index
    %79 = vector.load %arg1[%c0_60, %c2_61, %c0_62, %c1_63, %c0_64] : memref<1x4x9x9x4xf32, #tpu.memory_space<vmem>>, vector<1x1x8x8x4xf32>
    %80 = vector.shape_cast %79 : vector<1x1x8x8x4xf32> to vector<8x8x4xf32>
    %cst_65 = arith.constant 0.000000e+00 : f32
    %81 = vector.broadcast %cst_65 : f32 to vector<8x8x4xf32>
    %82 = arith.cmpf oge, %80, %81 : vector<8x8x4xf32>
    %cst_66 = arith.constant 2.000000e-01 : f32
    %83 = vector.broadcast %cst_66 : f32 to vector<8x8x4xf32>
    %84 = arith.mulf %83, %80 : vector<8x8x4xf32>
    %85 = arith.select %82, %80, %84 : vector<8x8x4xi1>, vector<8x8x4xf32>
    %86 = vector.shape_cast %85 : vector<8x8x4xf32> to vector<64x4xf32>
    %87 = arith.truncf %86 : vector<64x4xf32> to vector<64x4xbf16>
    %c6 = arith.constant 6 : index
    %c0_67 = arith.constant 0 : index
    %c0_68 = arith.constant 0 : index
    %88 = vector.load %arg2[%c6, %c0_67, %c0_68] : memref<16x4x128xbf16, #tpu.memory_space<vmem>>, vector<1x4x128xbf16>
    %89 = vector.shape_cast %88 : vector<1x4x128xbf16> to vector<4x128xbf16>
    %cst_69 = arith.constant dense<0.000000e+00> : vector<64x128xf32>
    %90 = tpu.matmul %87, %89, %cst_69 {dimension_numbers = #tpu.dot_dimension_numbers<[1], [0], [0], [1], [0, 0, 1, 1], [], []>} : vector<64x4xbf16>, vector<4x128xbf16>, vector<64x128xf32> -> vector<64x128xf32>
    %91 = arith.addf %78, %90 : vector<64x128xf32>
    %c0_70 = arith.constant 0 : index
    %c3_71 = arith.constant 3 : index
    %c0_72 = arith.constant 0 : index
    %c1_73 = arith.constant 1 : index
    %c0_74 = arith.constant 0 : index
    %92 = vector.load %arg1[%c0_70, %c3_71, %c0_72, %c1_73, %c0_74] : memref<1x4x9x9x4xf32, #tpu.memory_space<vmem>>, vector<1x1x8x8x4xf32>
    %93 = vector.shape_cast %92 : vector<1x1x8x8x4xf32> to vector<8x8x4xf32>
    %cst_75 = arith.constant 0.000000e+00 : f32
    %94 = vector.broadcast %cst_75 : f32 to vector<8x8x4xf32>
    %95 = arith.cmpf oge, %93, %94 : vector<8x8x4xf32>
    %cst_76 = arith.constant 2.000000e-01 : f32
    %96 = vector.broadcast %cst_76 : f32 to vector<8x8x4xf32>
    %97 = arith.mulf %96, %93 : vector<8x8x4xf32>
    %98 = arith.select %95, %93, %97 : vector<8x8x4xi1>, vector<8x8x4xf32>
    %99 = vector.shape_cast %98 : vector<8x8x4xf32> to vector<64x4xf32>
    %100 = arith.truncf %99 : vector<64x4xf32> to vector<64x4xbf16>
    %c7 = arith.constant 7 : index
    %c0_77 = arith.constant 0 : index
    %c0_78 = arith.constant 0 : index
    %101 = vector.load %arg2[%c7, %c0_77, %c0_78] : memref<16x4x128xbf16, #tpu.memory_space<vmem>>, vector<1x4x128xbf16>
    %102 = vector.shape_cast %101 : vector<1x4x128xbf16> to vector<4x128xbf16>
    %cst_79 = arith.constant dense<0.000000e+00> : vector<64x128xf32>
    %103 = tpu.matmul %100, %102, %cst_79 {dimension_numbers = #tpu.dot_dimension_numbers<[1], [0], [0], [1], [0, 0, 1, 1], [], []>} : vector<64x4xbf16>, vector<4x128xbf16>, vector<64x128xf32> -> vector<64x128xf32>
    %104 = arith.addf %91, %103 : vector<64x128xf32>
    %c0_80 = arith.constant 0 : index
    %c0_81 = arith.constant 0 : index
    %c1_82 = arith.constant 1 : index
    %c0_83 = arith.constant 0 : index
    %c0_84 = arith.constant 0 : index
    %105 = vector.load %arg1[%c0_80, %c0_81, %c1_82, %c0_83, %c0_84] : memref<1x4x9x9x4xf32, #tpu.memory_space<vmem>>, vector<1x1x8x8x4xf32>
    %106 = vector.shape_cast %105 : vector<1x1x8x8x4xf32> to vector<8x8x4xf32>
    %cst_85 = arith.constant 0.000000e+00 : f32
    %107 = vector.broadcast %cst_85 : f32 to vector<8x8x4xf32>
    %108 = arith.cmpf oge, %106, %107 : vector<8x8x4xf32>
    %cst_86 = arith.constant 2.000000e-01 : f32
    %109 = vector.broadcast %cst_86 : f32 to vector<8x8x4xf32>
    %110 = arith.mulf %109, %106 : vector<8x8x4xf32>
    %111 = arith.select %108, %106, %110 : vector<8x8x4xi1>, vector<8x8x4xf32>
    %112 = vector.shape_cast %111 : vector<8x8x4xf32> to vector<64x4xf32>
    %113 = arith.truncf %112 : vector<64x4xf32> to vector<64x4xbf16>
    %c8 = arith.constant 8 : index
    %c0_87 = arith.constant 0 : index
    %c0_88 = arith.constant 0 : index
    %114 = vector.load %arg2[%c8, %c0_87, %c0_88] : memref<16x4x128xbf16, #tpu.memory_space<vmem>>, vector<1x4x128xbf16>
    %115 = vector.shape_cast %114 : vector<1x4x128xbf16> to vector<4x128xbf16>
    %cst_89 = arith.constant dense<0.000000e+00> : vector<64x128xf32>
    %116 = tpu.matmul %113, %115, %cst_89 {dimension_numbers = #tpu.dot_dimension_numbers<[1], [0], [0], [1], [0, 0, 1, 1], [], []>} : vector<64x4xbf16>, vector<4x128xbf16>, vector<64x128xf32> -> vector<64x128xf32>
    %117 = arith.addf %104, %116 : vector<64x128xf32>
    %c0_90 = arith.constant 0 : index
    %c1_91 = arith.constant 1 : index
    %c1_92 = arith.constant 1 : index
    %c0_93 = arith.constant 0 : index
    %c0_94 = arith.constant 0 : index
    %118 = vector.load %arg1[%c0_90, %c1_91, %c1_92, %c0_93, %c0_94] : memref<1x4x9x9x4xf32, #tpu.memory_space<vmem>>, vector<1x1x8x8x4xf32>
    %119 = vector.shape_cast %118 : vector<1x1x8x8x4xf32> to vector<8x8x4xf32>
    %cst_95 = arith.constant 0.000000e+00 : f32
    %120 = vector.broadcast %cst_95 : f32 to vector<8x8x4xf32>
    %121 = arith.cmpf oge, %119, %120 : vector<8x8x4xf32>
    %cst_96 = arith.constant 2.000000e-01 : f32
    %122 = vector.broadcast %cst_96 : f32 to vector<8x8x4xf32>
    %123 = arith.mulf %122, %119 : vector<8x8x4xf32>
    %124 = arith.select %121, %119, %123 : vector<8x8x4xi1>, vector<8x8x4xf32>
    %125 = vector.shape_cast %124 : vector<8x8x4xf32> to vector<64x4xf32>
    %126 = arith.truncf %125 : vector<64x4xf32> to vector<64x4xbf16>
    %c9 = arith.constant 9 : index
    %c0_97 = arith.constant 0 : index
    %c0_98 = arith.constant 0 : index
    %127 = vector.load %arg2[%c9, %c0_97, %c0_98] : memref<16x4x128xbf16, #tpu.memory_space<vmem>>, vector<1x4x128xbf16>
    %128 = vector.shape_cast %127 : vector<1x4x128xbf16> to vector<4x128xbf16>
    %cst_99 = arith.constant dense<0.000000e+00> : vector<64x128xf32>
    %129 = tpu.matmul %126, %128, %cst_99 {dimension_numbers = #tpu.dot_dimension_numbers<[1], [0], [0], [1], [0, 0, 1, 1], [], []>} : vector<64x4xbf16>, vector<4x128xbf16>, vector<64x128xf32> -> vector<64x128xf32>
    %130 = arith.addf %117, %129 : vector<64x128xf32>
    %c0_100 = arith.constant 0 : index
    %c0_101 = arith.constant 0 : index
    %c1_102 = arith.constant 1 : index
    %c1_103 = arith.constant 1 : index
    %c0_104 = arith.constant 0 : index
    %131 = vector.load %arg1[%c0_100, %c0_101, %c1_102, %c1_103, %c0_104] : memref<1x4x9x9x4xf32, #tpu.memory_space<vmem>>, vector<1x1x8x8x4xf32>
    %132 = vector.shape_cast %131 : vector<1x1x8x8x4xf32> to vector<8x8x4xf32>
    %cst_105 = arith.constant 0.000000e+00 : f32
    %133 = vector.broadcast %cst_105 : f32 to vector<8x8x4xf32>
    %134 = arith.cmpf oge, %132, %133 : vector<8x8x4xf32>
    %cst_106 = arith.constant 2.000000e-01 : f32
    %135 = vector.broadcast %cst_106 : f32 to vector<8x8x4xf32>
    %136 = arith.mulf %135, %132 : vector<8x8x4xf32>
    %137 = arith.select %134, %132, %136 : vector<8x8x4xi1>, vector<8x8x4xf32>
    %138 = vector.shape_cast %137 : vector<8x8x4xf32> to vector<64x4xf32>
    %139 = arith.truncf %138 : vector<64x4xf32> to vector<64x4xbf16>
    %c10 = arith.constant 10 : index
    %c0_107 = arith.constant 0 : index
    %c0_108 = arith.constant 0 : index
    %140 = vector.load %arg2[%c10, %c0_107, %c0_108] : memref<16x4x128xbf16, #tpu.memory_space<vmem>>, vector<1x4x128xbf16>
    %141 = vector.shape_cast %140 : vector<1x4x128xbf16> to vector<4x128xbf16>
    %cst_109 = arith.constant dense<0.000000e+00> : vector<64x128xf32>
    %142 = tpu.matmul %139, %141, %cst_109 {dimension_numbers = #tpu.dot_dimension_numbers<[1], [0], [0], [1], [0, 0, 1, 1], [], []>} : vector<64x4xbf16>, vector<4x128xbf16>, vector<64x128xf32> -> vector<64x128xf32>
    %143 = arith.addf %130, %142 : vector<64x128xf32>
    %c0_110 = arith.constant 0 : index
    %c1_111 = arith.constant 1 : index
    %c1_112 = arith.constant 1 : index
    %c1_113 = arith.constant 1 : index
    %c0_114 = arith.constant 0 : index
    %144 = vector.load %arg1[%c0_110, %c1_111, %c1_112, %c1_113, %c0_114] : memref<1x4x9x9x4xf32, #tpu.memory_space<vmem>>, vector<1x1x8x8x4xf32>
    %145 = vector.shape_cast %144 : vector<1x1x8x8x4xf32> to vector<8x8x4xf32>
    %cst_115 = arith.constant 0.000000e+00 : f32
    %146 = vector.broadcast %cst_115 : f32 to vector<8x8x4xf32>
    %147 = arith.cmpf oge, %145, %146 : vector<8x8x4xf32>
    %cst_116 = arith.constant 2.000000e-01 : f32
    %148 = vector.broadcast %cst_116 : f32 to vector<8x8x4xf32>
    %149 = arith.mulf %148, %145 : vector<8x8x4xf32>
    %150 = arith.select %147, %145, %149 : vector<8x8x4xi1>, vector<8x8x4xf32>
    %151 = vector.shape_cast %150 : vector<8x8x4xf32> to vector<64x4xf32>
    %152 = arith.truncf %151 : vector<64x4xf32> to vector<64x4xbf16>
    %c11 = arith.constant 11 : index
    %c0_117 = arith.constant 0 : index
    %c0_118 = arith.constant 0 : index
    %153 = vector.load %arg2[%c11, %c0_117, %c0_118] : memref<16x4x128xbf16, #tpu.memory_space<vmem>>, vector<1x4x128xbf16>
    %154 = vector.shape_cast %153 : vector<1x4x128xbf16> to vector<4x128xbf16>
    %cst_119 = arith.constant dense<0.000000e+00> : vector<64x128xf32>
    %155 = tpu.matmul %152, %154, %cst_119 {dimension_numbers = #tpu.dot_dimension_numbers<[1], [0], [0], [1], [0, 0, 1, 1], [], []>} : vector<64x4xbf16>, vector<4x128xbf16>, vector<64x128xf32> -> vector<64x128xf32>
    %156 = arith.addf %143, %155 : vector<64x128xf32>
    %c0_120 = arith.constant 0 : index
    %c2_121 = arith.constant 2 : index
    %c1_122 = arith.constant 1 : index
    %c0_123 = arith.constant 0 : index
    %c0_124 = arith.constant 0 : index
    %157 = vector.load %arg1[%c0_120, %c2_121, %c1_122, %c0_123, %c0_124] : memref<1x4x9x9x4xf32, #tpu.memory_space<vmem>>, vector<1x1x8x8x4xf32>
    %158 = vector.shape_cast %157 : vector<1x1x8x8x4xf32> to vector<8x8x4xf32>
    %cst_125 = arith.constant 0.000000e+00 : f32
    %159 = vector.broadcast %cst_125 : f32 to vector<8x8x4xf32>
    %160 = arith.cmpf oge, %158, %159 : vector<8x8x4xf32>
    %cst_126 = arith.constant 2.000000e-01 : f32
    %161 = vector.broadcast %cst_126 : f32 to vector<8x8x4xf32>
    %162 = arith.mulf %161, %158 : vector<8x8x4xf32>
    %163 = arith.select %160, %158, %162 : vector<8x8x4xi1>, vector<8x8x4xf32>
    %164 = vector.shape_cast %163 : vector<8x8x4xf32> to vector<64x4xf32>
    %165 = arith.truncf %164 : vector<64x4xf32> to vector<64x4xbf16>
    %c12 = arith.constant 12 : index
    %c0_127 = arith.constant 0 : index
    %c0_128 = arith.constant 0 : index
    %166 = vector.load %arg2[%c12, %c0_127, %c0_128] : memref<16x4x128xbf16, #tpu.memory_space<vmem>>, vector<1x4x128xbf16>
    %167 = vector.shape_cast %166 : vector<1x4x128xbf16> to vector<4x128xbf16>
    %cst_129 = arith.constant dense<0.000000e+00> : vector<64x128xf32>
    %168 = tpu.matmul %165, %167, %cst_129 {dimension_numbers = #tpu.dot_dimension_numbers<[1], [0], [0], [1], [0, 0, 1, 1], [], []>} : vector<64x4xbf16>, vector<4x128xbf16>, vector<64x128xf32> -> vector<64x128xf32>
    %169 = arith.addf %156, %168 : vector<64x128xf32>
    %c0_130 = arith.constant 0 : index
    %c3_131 = arith.constant 3 : index
    %c1_132 = arith.constant 1 : index
    %c0_133 = arith.constant 0 : index
    %c0_134 = arith.constant 0 : index
    %170 = vector.load %arg1[%c0_130, %c3_131, %c1_132, %c0_133, %c0_134] : memref<1x4x9x9x4xf32, #tpu.memory_space<vmem>>, vector<1x1x8x8x4xf32>
    %171 = vector.shape_cast %170 : vector<1x1x8x8x4xf32> to vector<8x8x4xf32>
    %cst_135 = arith.constant 0.000000e+00 : f32
    %172 = vector.broadcast %cst_135 : f32 to vector<8x8x4xf32>
    %173 = arith.cmpf oge, %171, %172 : vector<8x8x4xf32>
    %cst_136 = arith.constant 2.000000e-01 : f32
    %174 = vector.broadcast %cst_136 : f32 to vector<8x8x4xf32>
    %175 = arith.mulf %174, %171 : vector<8x8x4xf32>
    %176 = arith.select %173, %171, %175 : vector<8x8x4xi1>, vector<8x8x4xf32>
    %177 = vector.shape_cast %176 : vector<8x8x4xf32> to vector<64x4xf32>
    %178 = arith.truncf %177 : vector<64x4xf32> to vector<64x4xbf16>
    %c13 = arith.constant 13 : index
    %c0_137 = arith.constant 0 : index
    %c0_138 = arith.constant 0 : index
    %179 = vector.load %arg2[%c13, %c0_137, %c0_138] : memref<16x4x128xbf16, #tpu.memory_space<vmem>>, vector<1x4x128xbf16>
    %180 = vector.shape_cast %179 : vector<1x4x128xbf16> to vector<4x128xbf16>
    %cst_139 = arith.constant dense<0.000000e+00> : vector<64x128xf32>
    %181 = tpu.matmul %178, %180, %cst_139 {dimension_numbers = #tpu.dot_dimension_numbers<[1], [0], [0], [1], [0, 0, 1, 1], [], []>} : vector<64x4xbf16>, vector<4x128xbf16>, vector<64x128xf32> -> vector<64x128xf32>
    %182 = arith.addf %169, %181 : vector<64x128xf32>
    %c0_140 = arith.constant 0 : index
    %c2_141 = arith.constant 2 : index
    %c1_142 = arith.constant 1 : index
    %c1_143 = arith.constant 1 : index
    %c0_144 = arith.constant 0 : index
    %183 = vector.load %arg1[%c0_140, %c2_141, %c1_142, %c1_143, %c0_144] : memref<1x4x9x9x4xf32, #tpu.memory_space<vmem>>, vector<1x1x8x8x4xf32>
    %184 = vector.shape_cast %183 : vector<1x1x8x8x4xf32> to vector<8x8x4xf32>
    %cst_145 = arith.constant 0.000000e+00 : f32
    %185 = vector.broadcast %cst_145 : f32 to vector<8x8x4xf32>
    %186 = arith.cmpf oge, %184, %185 : vector<8x8x4xf32>
    %cst_146 = arith.constant 2.000000e-01 : f32
    %187 = vector.broadcast %cst_146 : f32 to vector<8x8x4xf32>
    %188 = arith.mulf %187, %184 : vector<8x8x4xf32>
    %189 = arith.select %186, %184, %188 : vector<8x8x4xi1>, vector<8x8x4xf32>
    %190 = vector.shape_cast %189 : vector<8x8x4xf32> to vector<64x4xf32>
    %191 = arith.truncf %190 : vector<64x4xf32> to vector<64x4xbf16>
    %c14 = arith.constant 14 : index
    %c0_147 = arith.constant 0 : index
    %c0_148 = arith.constant 0 : index
    %192 = vector.load %arg2[%c14, %c0_147, %c0_148] : memref<16x4x128xbf16, #tpu.memory_space<vmem>>, vector<1x4x128xbf16>
    %193 = vector.shape_cast %192 : vector<1x4x128xbf16> to vector<4x128xbf16>
    %cst_149 = arith.constant dense<0.000000e+00> : vector<64x128xf32>
    %194 = tpu.matmul %191, %193, %cst_149 {dimension_numbers = #tpu.dot_dimension_numbers<[1], [0], [0], [1], [0, 0, 1, 1], [], []>} : vector<64x4xbf16>, vector<4x128xbf16>, vector<64x128xf32> -> vector<64x128xf32>
    %195 = arith.addf %182, %194 : vector<64x128xf32>
    %c0_150 = arith.constant 0 : index
    %c3_151 = arith.constant 3 : index
    %c1_152 = arith.constant 1 : index
    %c1_153 = arith.constant 1 : index
    %c0_154 = arith.constant 0 : index
    %196 = vector.load %arg1[%c0_150, %c3_151, %c1_152, %c1_153, %c0_154] : memref<1x4x9x9x4xf32, #tpu.memory_space<vmem>>, vector<1x1x8x8x4xf32>
    %197 = vector.shape_cast %196 : vector<1x1x8x8x4xf32> to vector<8x8x4xf32>
    %cst_155 = arith.constant 0.000000e+00 : f32
    %198 = vector.broadcast %cst_155 : f32 to vector<8x8x4xf32>
    %199 = arith.cmpf oge, %197, %198 : vector<8x8x4xf32>
    %cst_156 = arith.constant 2.000000e-01 : f32
    %200 = vector.broadcast %cst_156 : f32 to vector<8x8x4xf32>
    %201 = arith.mulf %200, %197 : vector<8x8x4xf32>
    %202 = arith.select %199, %197, %201 : vector<8x8x4xi1>, vector<8x8x4xf32>
    %203 = vector.shape_cast %202 : vector<8x8x4xf32> to vector<64x4xf32>
    %204 = arith.truncf %203 : vector<64x4xf32> to vector<64x4xbf16>
    %c15 = arith.constant 15 : index
    %c0_157 = arith.constant 0 : index
    %c0_158 = arith.constant 0 : index
    %205 = vector.load %arg2[%c15, %c0_157, %c0_158] : memref<16x4x128xbf16, #tpu.memory_space<vmem>>, vector<1x4x128xbf16>
    %206 = vector.shape_cast %205 : vector<1x4x128xbf16> to vector<4x128xbf16>
    %cst_159 = arith.constant dense<0.000000e+00> : vector<64x128xf32>
    %207 = tpu.matmul %204, %206, %cst_159 {dimension_numbers = #tpu.dot_dimension_numbers<[1], [0], [0], [1], [0, 0, 1, 1], [], []>} : vector<64x4xbf16>, vector<4x128xbf16>, vector<64x128xf32> -> vector<64x128xf32>
    %208 = arith.addf %195, %207 : vector<64x128xf32>
    %cst_160 = arith.constant 0.000000e+00 : f32
    %209 = vector.broadcast %cst_160 : f32 to vector<64x128xf32>
    %210 = arith.maximumf %208, %209 : vector<64x128xf32>
    %cst_161 = arith.constant 0.000000e+00 : f32
    %211 = vector.broadcast %cst_161 : f32 to vector<10x10x128xf32>
    %c0_162 = arith.constant 0 : index
    %c0_163 = arith.constant 0 : index
    %c0_164 = arith.constant 0 : index
    %212 = vector.load %arg6[%c0_162, %c0_163, %c0_164] : memref<10x10x128xf32, #tpu.memory_space<vmem>>, vector<10x10x128xf32>
    tpu.vector_store %arg6[%c0_162, %c0_163, %c0_164], %211 {strides = array<i32>} : memref<10x10x128xf32, #tpu.memory_space<vmem>>, vector<10x10x128xf32>,
    %213 = vector.shape_cast %210 : vector<64x128xf32> to vector<8x8x128xf32>
    %c1_165 = arith.constant 1 : index
    %c1_166 = arith.constant 1 : index
    %c0_167 = arith.constant 0 : index
    %214 = vector.load %arg6[%c1_165, %c1_166, %c0_167] : memref<10x10x128xf32, #tpu.memory_space<vmem>>, vector<8x8x128xf32>
    tpu.vector_store %arg6[%c1_165, %c1_166, %c0_167], %213 {strides = array<i32>} : memref<10x10x128xf32, #tpu.memory_space<vmem>>, vector<8x8x128xf32>,
    %cst_168 = arith.constant 0.000000e+00 : f32
    %215 = vector.broadcast %cst_168 : f32 to vector<1x128xf32>
    %cst_169 = arith.constant 0.000000e+00 : f32
    %216 = vector.broadcast %cst_169 : f32 to vector<1x128xf32>
    %cst_170 = arith.constant 0.000000e+00 : f32
    %217 = vector.broadcast %cst_170 : f32 to vector<64x128xf32>
    %c0_171 = arith.constant 0 : index
    %c0_172 = arith.constant 0 : index
    %c0_173 = arith.constant 0 : index
    %218 = vector.load %arg6[%c0_171, %c0_172, %c0_173] : memref<10x10x128xf32, #tpu.memory_space<vmem>>, vector<8x8x128xf32>
    %219 = vector.shape_cast %218 : vector<8x8x128xf32> to vector<64x128xf32>
    %220 = arith.truncf %219 : vector<64x128xf32> to vector<64x128xbf16>
    %c0_174 = arith.constant 0 : index
    %c0_175 = arith.constant 0 : index
    %c0_176 = arith.constant 0 : index
    %c0_177 = arith.constant 0 : index
    %221 = vector.load %arg3[%c0_174, %c0_175, %c0_176, %c0_177] : memref<4x4x128x128xbf16, #tpu.memory_space<vmem>>, vector<1x1x128x128xbf16>
    %222 = vector.shape_cast %221 : vector<1x1x128x128xbf16> to vector<128x128xbf16>
    %cst_178 = arith.constant dense<0.000000e+00> : vector<64x128xf32>
    %223 = tpu.matmul %220, %222, %cst_178 {dimension_numbers = #tpu.dot_dimension_numbers<[1], [0], [0], [1], [0, 0, 1, 1], [], []>} : vector<64x128xbf16>, vector<128x128xbf16>, vector<64x128xf32> -> vector<64x128xf32>
    %224 = arith.addf %217, %223 : vector<64x128xf32>
    %c0_179 = arith.constant 0 : index
    %c1_180 = arith.constant 1 : index
    %c0_181 = arith.constant 0 : index
    %225 = vector.load %arg6[%c0_179, %c1_180, %c0_181] : memref<10x10x128xf32, #tpu.memory_space<vmem>>, vector<8x8x128xf32>
    %226 = vector.shape_cast %225 : vector<8x8x128xf32> to vector<64x128xf32>
    %227 = arith.truncf %226 : vector<64x128xf32> to vector<64x128xbf16>
    %c0_182 = arith.constant 0 : index
    %c1_183 = arith.constant 1 : index
    %c0_184 = arith.constant 0 : index
    %c0_185 = arith.constant 0 : index
    %228 = vector.load %arg3[%c0_182, %c1_183, %c0_184, %c0_185] : memref<4x4x128x128xbf16, #tpu.memory_space<vmem>>, vector<1x1x128x128xbf16>
    %229 = vector.shape_cast %228 : vector<1x1x128x128xbf16> to vector<128x128xbf16>
    %cst_186 = arith.constant dense<0.000000e+00> : vector<64x128xf32>
    %230 = tpu.matmul %227, %229, %cst_186 {dimension_numbers = #tpu.dot_dimension_numbers<[1], [0], [0], [1], [0, 0, 1, 1], [], []>} : vector<64x128xbf16>, vector<128x128xbf16>, vector<64x128xf32> -> vector<64x128xf32>
    %231 = arith.addf %224, %230 : vector<64x128xf32>
    %c1_187 = arith.constant 1 : index
    %c0_188 = arith.constant 0 : index
    %c0_189 = arith.constant 0 : index
    %232 = vector.load %arg6[%c1_187, %c0_188, %c0_189] : memref<10x10x128xf32, #tpu.memory_space<vmem>>, vector<8x8x128xf32>
    %233 = vector.shape_cast %232 : vector<8x8x128xf32> to vector<64x128xf32>
    %234 = arith.truncf %233 : vector<64x128xf32> to vector<64x128xbf16>
    %c0_190 = arith.constant 0 : index
    %c2_191 = arith.constant 2 : index
    %c0_192 = arith.constant 0 : index
    %c0_193 = arith.constant 0 : index
    %235 = vector.load %arg3[%c0_190, %c2_191, %c0_192, %c0_193] : memref<4x4x128x128xbf16, #tpu.memory_space<vmem>>, vector<1x1x128x128xbf16>
    %236 = vector.shape_cast %235 : vector<1x1x128x128xbf16> to vector<128x128xbf16>
    %cst_194 = arith.constant dense<0.000000e+00> : vector<64x128xf32>
    %237 = tpu.matmul %234, %236, %cst_194 {dimension_numbers = #tpu.dot_dimension_numbers<[1], [0], [0], [1], [0, 0, 1, 1], [], []>} : vector<64x128xbf16>, vector<128x128xbf16>, vector<64x128xf32> -> vector<64x128xf32>
    %238 = arith.addf %231, %237 : vector<64x128xf32>
    %c1_195 = arith.constant 1 : index
    %c1_196 = arith.constant 1 : index
    %c0_197 = arith.constant 0 : index
    %239 = vector.load %arg6[%c1_195, %c1_196, %c0_197] : memref<10x10x128xf32, #tpu.memory_space<vmem>>, vector<8x8x128xf32>
    %240 = vector.shape_cast %239 : vector<8x8x128xf32> to vector<64x128xf32>
    %241 = arith.truncf %240 : vector<64x128xf32> to vector<64x128xbf16>
    %c0_198 = arith.constant 0 : index
    %c3_199 = arith.constant 3 : index
    %c0_200 = arith.constant 0 : index
    %c0_201 = arith.constant 0 : index
    %242 = vector.load %arg3[%c0_198, %c3_199, %c0_200, %c0_201] : memref<4x4x128x128xbf16, #tpu.memory_space<vmem>>, vector<1x1x128x128xbf16>
    %243 = vector.shape_cast %242 : vector<1x1x128x128xbf16> to vector<128x128xbf16>
    %cst_202 = arith.constant dense<0.000000e+00> : vector<64x128xf32>
    %244 = tpu.matmul %241, %243, %cst_202 {dimension_numbers = #tpu.dot_dimension_numbers<[1], [0], [0], [1], [0, 0, 1, 1], [], []>} : vector<64x128xbf16>, vector<128x128xbf16>, vector<64x128xf32> -> vector<64x128xf32>
    %245 = arith.addf %238, %244 : vector<64x128xf32>
    %246 = vector.shape_cast %245 : vector<64x128xf32> to vector<8x8x128xf32>
    %c0_203 = arith.constant 0 : index
    %c0_204 = arith.constant 0 : index
    %c0_205 = arith.constant 0 : index
    %c0_206 = arith.constant 0 : index
    %c0_207 = arith.constant 0 : index
    %247 = vector.load %arg4[%c0_203, %c0_204, %c0_205, %c0_206, %c0_207] : memref<1x4x8x8x128xf32, #tpu.memory_space<vmem>>, vector<1x1x8x8x128xf32>
    %248 = vector.shape_cast %247 : vector<1x1x8x8x128xf32> to vector<8x8x128xf32>
    %249 = vector.shape_cast %246 : vector<8x8x128xf32> to vector<1x1x8x8x128xf32>
    tpu.vector_store %arg4[%c0_203, %c0_204, %c0_205, %c0_206, %c0_207], %249 {strides = array<i32>} : memref<1x4x8x8x128xf32, #tpu.memory_space<vmem>>, vector<1x1x8x8x128xf32>,
    %cst_208 = arith.constant dense<0.000000e+00> : vector<128xf32>
    %250 = vector.multi_reduction <add>, %245, %cst_208 [0] : vector<64x128xf32> to vector<128xf32>
    %251 = vector.shape_cast %250 : vector<128xf32> to vector<1x128xf32>
    %252 = arith.addf %215, %251 : vector<1x128xf32>
    %253 = arith.mulf %245, %245 : vector<64x128xf32>
    %cst_209 = arith.constant dense<0.000000e+00> : vector<128xf32>
    %254 = vector.multi_reduction <add>, %253, %cst_209 [0] : vector<64x128xf32> to vector<128xf32>
    %255 = vector.shape_cast %254 : vector<128xf32> to vector<1x128xf32>
    %256 = arith.addf %216, %255 : vector<1x128xf32>
    %cst_210 = arith.constant 0.000000e+00 : f32
    %257 = vector.broadcast %cst_210 : f32 to vector<64x128xf32>
    %c0_211 = arith.constant 0 : index
    %c1_212 = arith.constant 1 : index
    %c0_213 = arith.constant 0 : index
    %258 = vector.load %arg6[%c0_211, %c1_212, %c0_213] : memref<10x10x128xf32, #tpu.memory_space<vmem>>, vector<8x8x128xf32>
    %259 = vector.shape_cast %258 : vector<8x8x128xf32> to vector<64x128xf32>
    %260 = arith.truncf %259 : vector<64x128xf32> to vector<64x128xbf16>
    %c1_214 = arith.constant 1 : index
    %c0_215 = arith.constant 0 : index
    %c0_216 = arith.constant 0 : index
    %c0_217 = arith.constant 0 : index
    %261 = vector.load %arg3[%c1_214, %c0_215, %c0_216, %c0_217] : memref<4x4x128x128xbf16, #tpu.memory_space<vmem>>, vector<1x1x128x128xbf16>
    %262 = vector.shape_cast %261 : vector<1x1x128x128xbf16> to vector<128x128xbf16>
    %cst_218 = arith.constant dense<0.000000e+00> : vector<64x128xf32>
    %263 = tpu.matmul %260, %262, %cst_218 {dimension_numbers = #tpu.dot_dimension_numbers<[1], [0], [0], [1], [0, 0, 1, 1], [], []>} : vector<64x128xbf16>, vector<128x128xbf16>, vector<64x128xf32> -> vector<64x128xf32>
    %264 = arith.addf %257, %263 : vector<64x128xf32>
    %c0_219 = arith.constant 0 : index
    %c2_220 = arith.constant 2 : index
    %c0_221 = arith.constant 0 : index
    %265 = vector.load %arg6[%c0_219, %c2_220, %c0_221] : memref<10x10x128xf32, #tpu.memory_space<vmem>>, vector<8x8x128xf32>
    %266 = vector.shape_cast %265 : vector<8x8x128xf32> to vector<64x128xf32>
    %267 = arith.truncf %266 : vector<64x128xf32> to vector<64x128xbf16>
    %c1_222 = arith.constant 1 : index
    %c1_223 = arith.constant 1 : index
    %c0_224 = arith.constant 0 : index
    %c0_225 = arith.constant 0 : index
    %268 = vector.load %arg3[%c1_222, %c1_223, %c0_224, %c0_225] : memref<4x4x128x128xbf16, #tpu.memory_space<vmem>>, vector<1x1x128x128xbf16>
    %269 = vector.shape_cast %268 : vector<1x1x128x128xbf16> to vector<128x128xbf16>
    %cst_226 = arith.constant dense<0.000000e+00> : vector<64x128xf32>
    %270 = tpu.matmul %267, %269, %cst_226 {dimension_numbers = #tpu.dot_dimension_numbers<[1], [0], [0], [1], [0, 0, 1, 1], [], []>} : vector<64x128xbf16>, vector<128x128xbf16>, vector<64x128xf32> -> vector<64x128xf32>
    %271 = arith.addf %264, %270 : vector<64x128xf32>
    %c1_227 = arith.constant 1 : index
    %c1_228 = arith.constant 1 : index
    %c0_229 = arith.constant 0 : index
    %272 = vector.load %arg6[%c1_227, %c1_228, %c0_229] : memref<10x10x128xf32, #tpu.memory_space<vmem>>, vector<8x8x128xf32>
    %273 = vector.shape_cast %272 : vector<8x8x128xf32> to vector<64x128xf32>
    %274 = arith.truncf %273 : vector<64x128xf32> to vector<64x128xbf16>
    %c1_230 = arith.constant 1 : index
    %c2_231 = arith.constant 2 : index
    %c0_232 = arith.constant 0 : index
    %c0_233 = arith.constant 0 : index
    %275 = vector.load %arg3[%c1_230, %c2_231, %c0_232, %c0_233] : memref<4x4x128x128xbf16, #tpu.memory_space<vmem>>, vector<1x1x128x128xbf16>
    %276 = vector.shape_cast %275 : vector<1x1x128x128xbf16> to vector<128x128xbf16>
    %cst_234 = arith.constant dense<0.000000e+00> : vector<64x128xf32>
    %277 = tpu.matmul %274, %276, %cst_234 {dimension_numbers = #tpu.dot_dimension_numbers<[1], [0], [0], [1], [0, 0, 1, 1], [], []>} : vector<64x128xbf16>, vector<128x128xbf16>, vector<64x128xf32> -> vector<64x128xf32>
    %278 = arith.addf %271, %277 : vector<64x128xf32>
    %c1_235 = arith.constant 1 : index
    %c2_236 = arith.constant 2 : index
    %c0_237 = arith.constant 0 : index
    %279 = vector.load %arg6[%c1_235, %c2_236, %c0_237] : memref<10x10x128xf32, #tpu.memory_space<vmem>>, vector<8x8x128xf32>
    %280 = vector.shape_cast %279 : vector<8x8x128xf32> to vector<64x128xf32>
    %281 = arith.truncf %280 : vector<64x128xf32> to vector<64x128xbf16>
    %c1_238 = arith.constant 1 : index
    %c3_239 = arith.constant 3 : index
    %c0_240 = arith.constant 0 : index
    %c0_241 = arith.constant 0 : index
    %282 = vector.load %arg3[%c1_238, %c3_239, %c0_240, %c0_241] : memref<4x4x128x128xbf16, #tpu.memory_space<vmem>>, vector<1x1x128x128xbf16>
    %283 = vector.shape_cast %282 : vector<1x1x128x128xbf16> to vector<128x128xbf16>
    %cst_242 = arith.constant dense<0.000000e+00> : vector<64x128xf32>
    %284 = tpu.matmul %281, %283, %cst_242 {dimension_numbers = #tpu.dot_dimension_numbers<[1], [0], [0], [1], [0, 0, 1, 1], [], []>} : vector<64x128xbf16>, vector<128x128xbf16>, vector<64x128xf32> -> vector<64x128xf32>
    %285 = arith.addf %278, %284 : vector<64x128xf32>
    %286 = vector.shape_cast %285 : vector<64x128xf32> to vector<8x8x128xf32>
    %c0_243 = arith.constant 0 : index
    %c1_244 = arith.constant 1 : index
    %c0_245 = arith.constant 0 : index
    %c0_246 = arith.constant 0 : index
    %c0_247 = arith.constant 0 : index
    %287 = vector.load %arg4[%c0_243, %c1_244, %c0_245, %c0_246, %c0_247] : memref<1x4x8x8x128xf32, #tpu.memory_space<vmem>>, vector<1x1x8x8x128xf32>
    %288 = vector.shape_cast %287 : vector<1x1x8x8x128xf32> to vector<8x8x128xf32>
    %289 = vector.shape_cast %286 : vector<8x8x128xf32> to vector<1x1x8x8x128xf32>
    tpu.vector_store %arg4[%c0_243, %c1_244, %c0_245, %c0_246, %c0_247], %289 {strides = array<i32>} : memref<1x4x8x8x128xf32, #tpu.memory_space<vmem>>, vector<1x1x8x8x128xf32>,
    %cst_248 = arith.constant dense<0.000000e+00> : vector<128xf32>
    %290 = vector.multi_reduction <add>, %285, %cst_248 [0] : vector<64x128xf32> to vector<128xf32>
    %291 = vector.shape_cast %290 : vector<128xf32> to vector<1x128xf32>
    %292 = arith.addf %252, %291 : vector<1x128xf32>
    %293 = arith.mulf %285, %285 : vector<64x128xf32>
    %cst_249 = arith.constant dense<0.000000e+00> : vector<128xf32>
    %294 = vector.multi_reduction <add>, %293, %cst_249 [0] : vector<64x128xf32> to vector<128xf32>
    %295 = vector.shape_cast %294 : vector<128xf32> to vector<1x128xf32>
    %296 = arith.addf %256, %295 : vector<1x128xf32>
    %cst_250 = arith.constant 0.000000e+00 : f32
    %297 = vector.broadcast %cst_250 : f32 to vector<64x128xf32>
    %c1_251 = arith.constant 1 : index
    %c0_252 = arith.constant 0 : index
    %c0_253 = arith.constant 0 : index
    %298 = vector.load %arg6[%c1_251, %c0_252, %c0_253] : memref<10x10x128xf32, #tpu.memory_space<vmem>>, vector<8x8x128xf32>
    %299 = vector.shape_cast %298 : vector<8x8x128xf32> to vector<64x128xf32>
    %300 = arith.truncf %299 : vector<64x128xf32> to vector<64x128xbf16>
    %c2_254 = arith.constant 2 : index
    %c0_255 = arith.constant 0 : index
    %c0_256 = arith.constant 0 : index
    %c0_257 = arith.constant 0 : index
    %301 = vector.load %arg3[%c2_254, %c0_255, %c0_256, %c0_257] : memref<4x4x128x128xbf16, #tpu.memory_space<vmem>>, vector<1x1x128x128xbf16>
    %302 = vector.shape_cast %301 : vector<1x1x128x128xbf16> to vector<128x128xbf16>
    %cst_258 = arith.constant dense<0.000000e+00> : vector<64x128xf32>
    %303 = tpu.matmul %300, %302, %cst_258 {dimension_numbers = #tpu.dot_dimension_numbers<[1], [0], [0], [1], [0, 0, 1, 1], [], []>} : vector<64x128xbf16>, vector<128x128xbf16>, vector<64x128xf32> -> vector<64x128xf32>
    %304 = arith.addf %297, %303 : vector<64x128xf32>
    %c1_259 = arith.constant 1 : index
    %c1_260 = arith.constant 1 : index
    %c0_261 = arith.constant 0 : index
    %305 = vector.load %arg6[%c1_259, %c1_260, %c0_261] : memref<10x10x128xf32, #tpu.memory_space<vmem>>, vector<8x8x128xf32>
    %306 = vector.shape_cast %305 : vector<8x8x128xf32> to vector<64x128xf32>
    %307 = arith.truncf %306 : vector<64x128xf32> to vector<64x128xbf16>
    %c2_262 = arith.constant 2 : index
    %c1_263 = arith.constant 1 : index
    %c0_264 = arith.constant 0 : index
    %c0_265 = arith.constant 0 : index
    %308 = vector.load %arg3[%c2_262, %c1_263, %c0_264, %c0_265] : memref<4x4x128x128xbf16, #tpu.memory_space<vmem>>, vector<1x1x128x128xbf16>
    %309 = vector.shape_cast %308 : vector<1x1x128x128xbf16> to vector<128x128xbf16>
    %cst_266 = arith.constant dense<0.000000e+00> : vector<64x128xf32>
    %310 = tpu.matmul %307, %309, %cst_266 {dimension_numbers = #tpu.dot_dimension_numbers<[1], [0], [0], [1], [0, 0, 1, 1], [], []>} : vector<64x128xbf16>, vector<128x128xbf16>, vector<64x128xf32> -> vector<64x128xf32>
    %311 = arith.addf %304, %310 : vector<64x128xf32>
    %c2_267 = arith.constant 2 : index
    %c0_268 = arith.constant 0 : index
    %c0_269 = arith.constant 0 : index
    %312 = vector.load %arg6[%c2_267, %c0_268, %c0_269] : memref<10x10x128xf32, #tpu.memory_space<vmem>>, vector<8x8x128xf32>
    %313 = vector.shape_cast %312 : vector<8x8x128xf32> to vector<64x128xf32>
    %314 = arith.truncf %313 : vector<64x128xf32> to vector<64x128xbf16>
    %c2_270 = arith.constant 2 : index
    %c2_271 = arith.constant 2 : index
    %c0_272 = arith.constant 0 : index
    %c0_273 = arith.constant 0 : index
    %315 = vector.load %arg3[%c2_270, %c2_271, %c0_272, %c0_273] : memref<4x4x128x128xbf16, #tpu.memory_space<vmem>>, vector<1x1x128x128xbf16>
    %316 = vector.shape_cast %315 : vector<1x1x128x128xbf16> to vector<128x128xbf16>
    %cst_274 = arith.constant dense<0.000000e+00> : vector<64x128xf32>
    %317 = tpu.matmul %314, %316, %cst_274 {dimension_numbers = #tpu.dot_dimension_numbers<[1], [0], [0], [1], [0, 0, 1, 1], [], []>} : vector<64x128xbf16>, vector<128x128xbf16>, vector<64x128xf32> -> vector<64x128xf32>
    %318 = arith.addf %311, %317 : vector<64x128xf32>
    %c2_275 = arith.constant 2 : index
    %c1_276 = arith.constant 1 : index
    %c0_277 = arith.constant 0 : index
    %319 = vector.load %arg6[%c2_275, %c1_276, %c0_277] : memref<10x10x128xf32, #tpu.memory_space<vmem>>, vector<8x8x128xf32>
    %320 = vector.shape_cast %319 : vector<8x8x128xf32> to vector<64x128xf32>
    %321 = arith.truncf %320 : vector<64x128xf32> to vector<64x128xbf16>
    %c2_278 = arith.constant 2 : index
    %c3_279 = arith.constant 3 : index
    %c0_280 = arith.constant 0 : index
    %c0_281 = arith.constant 0 : index
    %322 = vector.load %arg3[%c2_278, %c3_279, %c0_280, %c0_281] : memref<4x4x128x128xbf16, #tpu.memory_space<vmem>>, vector<1x1x128x128xbf16>
    %323 = vector.shape_cast %322 : vector<1x1x128x128xbf16> to vector<128x128xbf16>
    %cst_282 = arith.constant dense<0.000000e+00> : vector<64x128xf32>
    %324 = tpu.matmul %321, %323, %cst_282 {dimension_numbers = #tpu.dot_dimension_numbers<[1], [0], [0], [1], [0, 0, 1, 1], [], []>} : vector<64x128xbf16>, vector<128x128xbf16>, vector<64x128xf32> -> vector<64x128xf32>
    %325 = arith.addf %318, %324 : vector<64x128xf32>
    %326 = vector.shape_cast %325 : vector<64x128xf32> to vector<8x8x128xf32>
    %c0_283 = arith.constant 0 : index
    %c2_284 = arith.constant 2 : index
    %c0_285 = arith.constant 0 : index
    %c0_286 = arith.constant 0 : index
    %c0_287 = arith.constant 0 : index
    %327 = vector.load %arg4[%c0_283, %c2_284, %c0_285, %c0_286, %c0_287] : memref<1x4x8x8x128xf32, #tpu.memory_space<vmem>>, vector<1x1x8x8x128xf32>
    %328 = vector.shape_cast %327 : vector<1x1x8x8x128xf32> to vector<8x8x128xf32>
    %329 = vector.shape_cast %326 : vector<8x8x128xf32> to vector<1x1x8x8x128xf32>
    tpu.vector_store %arg4[%c0_283, %c2_284, %c0_285, %c0_286, %c0_287], %329 {strides = array<i32>} : memref<1x4x8x8x128xf32, #tpu.memory_space<vmem>>, vector<1x1x8x8x128xf32>,
    %cst_288 = arith.constant dense<0.000000e+00> : vector<128xf32>
    %330 = vector.multi_reduction <add>, %325, %cst_288 [0] : vector<64x128xf32> to vector<128xf32>
    %331 = vector.shape_cast %330 : vector<128xf32> to vector<1x128xf32>
    %332 = arith.addf %292, %331 : vector<1x128xf32>
    %333 = arith.mulf %325, %325 : vector<64x128xf32>
    %cst_289 = arith.constant dense<0.000000e+00> : vector<128xf32>
    %334 = vector.multi_reduction <add>, %333, %cst_289 [0] : vector<64x128xf32> to vector<128xf32>
    %335 = vector.shape_cast %334 : vector<128xf32> to vector<1x128xf32>
    %336 = arith.addf %296, %335 : vector<1x128xf32>
    %cst_290 = arith.constant 0.000000e+00 : f32
    %337 = vector.broadcast %cst_290 : f32 to vector<64x128xf32>
    %c1_291 = arith.constant 1 : index
    %c1_292 = arith.constant 1 : index
    %c0_293 = arith.constant 0 : index
    %338 = vector.load %arg6[%c1_291, %c1_292, %c0_293] : memref<10x10x128xf32, #tpu.memory_space<vmem>>, vector<8x8x128xf32>
    %339 = vector.shape_cast %338 : vector<8x8x128xf32> to vector<64x128xf32>
    %340 = arith.truncf %339 : vector<64x128xf32> to vector<64x128xbf16>
    %c3_294 = arith.constant 3 : index
    %c0_295 = arith.constant 0 : index
    %c0_296 = arith.constant 0 : index
    %c0_297 = arith.constant 0 : index
    %341 = vector.load %arg3[%c3_294, %c0_295, %c0_296, %c0_297] : memref<4x4x128x128xbf16, #tpu.memory_space<vmem>>, vector<1x1x128x128xbf16>
    %342 = vector.shape_cast %341 : vector<1x1x128x128xbf16> to vector<128x128xbf16>
    %cst_298 = arith.constant dense<0.000000e+00> : vector<64x128xf32>
    %343 = tpu.matmul %340, %342, %cst_298 {dimension_numbers = #tpu.dot_dimension_numbers<[1], [0], [0], [1], [0, 0, 1, 1], [], []>} : vector<64x128xbf16>, vector<128x128xbf16>, vector<64x128xf32> -> vector<64x128xf32>
    %344 = arith.addf %337, %343 : vector<64x128xf32>
    %c1_299 = arith.constant 1 : index
    %c2_300 = arith.constant 2 : index
    %c0_301 = arith.constant 0 : index
    %345 = vector.load %arg6[%c1_299, %c2_300, %c0_301] : memref<10x10x128xf32, #tpu.memory_space<vmem>>, vector<8x8x128xf32>
    %346 = vector.shape_cast %345 : vector<8x8x128xf32> to vector<64x128xf32>
    %347 = arith.truncf %346 : vector<64x128xf32> to vector<64x128xbf16>
    %c3_302 = arith.constant 3 : index
    %c1_303 = arith.constant 1 : index
    %c0_304 = arith.constant 0 : index
    %c0_305 = arith.constant 0 : index
    %348 = vector.load %arg3[%c3_302, %c1_303, %c0_304, %c0_305] : memref<4x4x128x128xbf16, #tpu.memory_space<vmem>>, vector<1x1x128x128xbf16>
    %349 = vector.shape_cast %348 : vector<1x1x128x128xbf16> to vector<128x128xbf16>
    %cst_306 = arith.constant dense<0.000000e+00> : vector<64x128xf32>
    %350 = tpu.matmul %347, %349, %cst_306 {dimension_numbers = #tpu.dot_dimension_numbers<[1], [0], [0], [1], [0, 0, 1, 1], [], []>} : vector<64x128xbf16>, vector<128x128xbf16>, vector<64x128xf32> -> vector<64x128xf32>
    %351 = arith.addf %344, %350 : vector<64x128xf32>
    %c2_307 = arith.constant 2 : index
    %c1_308 = arith.constant 1 : index
    %c0_309 = arith.constant 0 : index
    %352 = vector.load %arg6[%c2_307, %c1_308, %c0_309] : memref<10x10x128xf32, #tpu.memory_space<vmem>>, vector<8x8x128xf32>
    %353 = vector.shape_cast %352 : vector<8x8x128xf32> to vector<64x128xf32>
    %354 = arith.truncf %353 : vector<64x128xf32> to vector<64x128xbf16>
    %c3_310 = arith.constant 3 : index
    %c2_311 = arith.constant 2 : index
    %c0_312 = arith.constant 0 : index
    %c0_313 = arith.constant 0 : index
    %355 = vector.load %arg3[%c3_310, %c2_311, %c0_312, %c0_313] : memref<4x4x128x128xbf16, #tpu.memory_space<vmem>>, vector<1x1x128x128xbf16>
    %356 = vector.shape_cast %355 : vector<1x1x128x128xbf16> to vector<128x128xbf16>
    %cst_314 = arith.constant dense<0.000000e+00> : vector<64x128xf32>
    %357 = tpu.matmul %354, %356, %cst_314 {dimension_numbers = #tpu.dot_dimension_numbers<[1], [0], [0], [1], [0, 0, 1, 1], [], []>} : vector<64x128xbf16>, vector<128x128xbf16>, vector<64x128xf32> -> vector<64x128xf32>
    %358 = arith.addf %351, %357 : vector<64x128xf32>
    %c2_315 = arith.constant 2 : index
    %c2_316 = arith.constant 2 : index
    %c0_317 = arith.constant 0 : index
    %359 = vector.load %arg6[%c2_315, %c2_316, %c0_317] : memref<10x10x128xf32, #tpu.memory_space<vmem>>, vector<8x8x128xf32>
    %360 = vector.shape_cast %359 : vector<8x8x128xf32> to vector<64x128xf32>
    %361 = arith.truncf %360 : vector<64x128xf32> to vector<64x128xbf16>
    %c3_318 = arith.constant 3 : index
    %c3_319 = arith.constant 3 : index
    %c0_320 = arith.constant 0 : index
    %c0_321 = arith.constant 0 : index
    %362 = vector.load %arg3[%c3_318, %c3_319, %c0_320, %c0_321] : memref<4x4x128x128xbf16, #tpu.memory_space<vmem>>, vector<1x1x128x128xbf16>
    %363 = vector.shape_cast %362 : vector<1x1x128x128xbf16> to vector<128x128xbf16>
    %cst_322 = arith.constant dense<0.000000e+00> : vector<64x128xf32>
    %364 = tpu.matmul %361, %363, %cst_322 {dimension_numbers = #tpu.dot_dimension_numbers<[1], [0], [0], [1], [0, 0, 1, 1], [], []>} : vector<64x128xbf16>, vector<128x128xbf16>, vector<64x128xf32> -> vector<64x128xf32>
    %365 = arith.addf %358, %364 : vector<64x128xf32>
    %366 = vector.shape_cast %365 : vector<64x128xf32> to vector<8x8x128xf32>
    %c0_323 = arith.constant 0 : index
    %c3_324 = arith.constant 3 : index
    %c0_325 = arith.constant 0 : index
    %c0_326 = arith.constant 0 : index
    %c0_327 = arith.constant 0 : index
    %367 = vector.load %arg4[%c0_323, %c3_324, %c0_325, %c0_326, %c0_327] : memref<1x4x8x8x128xf32, #tpu.memory_space<vmem>>, vector<1x1x8x8x128xf32>
    %368 = vector.shape_cast %367 : vector<1x1x8x8x128xf32> to vector<8x8x128xf32>
    %369 = vector.shape_cast %366 : vector<8x8x128xf32> to vector<1x1x8x8x128xf32>
    tpu.vector_store %arg4[%c0_323, %c3_324, %c0_325, %c0_326, %c0_327], %369 {strides = array<i32>} : memref<1x4x8x8x128xf32, #tpu.memory_space<vmem>>, vector<1x1x8x8x128xf32>,
    %cst_328 = arith.constant dense<0.000000e+00> : vector<128xf32>
    %370 = vector.multi_reduction <add>, %365, %cst_328 [0] : vector<64x128xf32> to vector<128xf32>
    %371 = vector.shape_cast %370 : vector<128xf32> to vector<1x128xf32>
    %372 = arith.addf %332, %371 : vector<1x128xf32>
    %373 = arith.mulf %365, %365 : vector<64x128xf32>
    %cst_329 = arith.constant dense<0.000000e+00> : vector<128xf32>
    %374 = vector.multi_reduction <add>, %373, %cst_329 [0] : vector<64x128xf32> to vector<128xf32>
    %375 = vector.shape_cast %374 : vector<128xf32> to vector<1x128xf32>
    %376 = arith.addf %336, %375 : vector<1x128xf32>
    %c0_330 = arith.constant 0 : index
    %c0_331 = arith.constant 0 : index
    %c0_332 = arith.constant 0 : index
    %377 = vector.load %arg5[%c0_330, %c0_331, %c0_332] : memref<1x2x128xf32, #tpu.memory_space<vmem>>, vector<1x1x128xf32>
    %378 = vector.shape_cast %377 : vector<1x1x128xf32> to vector<1x128xf32>
    %379 = vector.shape_cast %372 : vector<1x128xf32> to vector<1x1x128xf32>
    tpu.vector_store %arg5[%c0_330, %c0_331, %c0_332], %379 {strides = array<i32>} : memref<1x2x128xf32, #tpu.memory_space<vmem>>, vector<1x1x128xf32>,
    %c0_333 = arith.constant 0 : index
    %c1_334 = arith.constant 1 : index
    %c0_335 = arith.constant 0 : index
    %380 = vector.load %arg5[%c0_333, %c1_334, %c0_335] : memref<1x2x128xf32, #tpu.memory_space<vmem>>, vector<1x1x128xf32>
    %381 = vector.shape_cast %380 : vector<1x1x128xf32> to vector<1x128xf32>
    %382 = vector.shape_cast %376 : vector<1x128xf32> to vector<1x1x128xf32>
    tpu.vector_store %arg5[%c0_333, %c1_334, %c0_335], %382 {strides = array<i32>} : memref<1x2x128xf32, #tpu.memory_space<vmem>>, vector<1x1x128xf32>,
    return
  }
  func.func @transform_0(%arg0: i32) -> (i32, i32, i32, i32, i32) {
    %c0_i32 = arith.constant 0 : i32
    %c0_i32_0 = arith.constant 0 : i32
    %c0_i32_1 = arith.constant 0 : i32
    %c0_i32_2 = arith.constant 0 : i32
    %c0_i32_3 = arith.constant 0 : i32
    return %arg0, %c0_i32, %c0_i32_0, %c0_i32_1, %c0_i32_2 : i32, i32, i32, i32, i32
  }
  func.func @transform_1(%arg0: i32) -> (i32, i32, i32) {
    %c0_i32 = arith.constant 0 : i32
    %c0_i32_0 = arith.constant 0 : i32
    %c0_i32_1 = arith.constant 0 : i32
    %c0_i32_2 = arith.constant 0 : i32
    return %c0_i32, %c0_i32_0, %c0_i32_1 : i32, i32, i32
  }
  func.func @transform_2(%arg0: i32) -> (i32, i32, i32, i32) {
    %c0_i32 = arith.constant 0 : i32
    %c0_i32_0 = arith.constant 0 : i32
    %c0_i32_1 = arith.constant 0 : i32
    %c0_i32_2 = arith.constant 0 : i32
    %c0_i32_3 = arith.constant 0 : i32
    return %c0_i32, %c0_i32_0, %c0_i32_1, %c0_i32_2 : i32, i32, i32, i32
  }
  func.func @transform_3(%arg0: i32) -> (i32, i32, i32, i32, i32) {
    %c0_i32 = arith.constant 0 : i32
    %c0_i32_0 = arith.constant 0 : i32
    %c0_i32_1 = arith.constant 0 : i32
    %c0_i32_2 = arith.constant 0 : i32
    %c0_i32_3 = arith.constant 0 : i32
    return %arg0, %c0_i32, %c0_i32_0, %c0_i32_1, %c0_i32_2 : i32, i32, i32, i32, i32
  }
  func.func @transform_4(%arg0: i32) -> (i32, i32, i32) {
    %c0_i32 = arith.constant 0 : i32
    %c0_i32_0 = arith.constant 0 : i32
    %c0_i32_1 = arith.constant 0 : i32
    return %arg0, %c0_i32, %c0_i32_0 : i32, i32, i32
  }
}

</mosaic_0001>

<bundles_post_ra>
// kernel: unet_innermost_block.3
= control target key start
LH: loop header
LB: loop body
LE: loop exit
PB: predicated region body
PF: predicated region fallthrough
CT: control target
= control target key end

     0   :  { %s419_s12 = smov 0   ;;  %s578_s0 = inlined_call_operand.vmem [shape: f32[2,4,8,8,128], index: 0, kind: input, shape index: {}]   ;;  %s579_s1 = inlined_call_operand.vmem [shape: f32[1,1,1,1,128], index: 1, kind: input, shape index: {}]   ;;  %s580_s2 = inlined_call_operand.vmem [shape: f32[1,1,1,1,128], index: 2, kind: input, shape index: {}]   ;;  %s581_s3 = inlined_call_operand.vmem [shape: f32[2,4,8,8,128], index: 3, kind: output, shape index: {}]  }
   0x1 LB: > { %s368_s13 = sadd.s32 4294967295, %s397_s12   ;;  %p372_p0 = scmp.ge.s32.totalorder %s397_s12, 1  ;;  %s397_s12 = sphi %s419_s12, %s13_s12  }
   0x2   : > { %p137_p1 = scmp.lt.s32.totalorder %s397_s12, 3 }
   0x4   : > { %p138_p2 = pnand %p372_p0, %p137_p1 }
   0x5   : > { %p161_p3 = scmp.lt.s32.totalorder (!%p138_p2), %s368_s13, 1  ;;  %v430_v0 = vld [vmem:[%s579_s1] ss:$0 sm:$0xff] (!%p138_p2) }
   0x6   : > { %141 = sbr.rel (%p138_p2) target bundleno = 40 (0x28), region = 32  ;;  %v440_v1 = vld [vmem:[%s580_s2] ss:$0 sm:$0xff] (!%p138_p2) }
   0xd   : > { %s583_s13 = smov (!%p161_p3, %s368_s13), 1 }
   0xe   : > { %s381_s14 = sshll.u32 %s583_s13, 8 }
   0xf   : > { %s435_s19 = scalar_lea.vmem %s578_s0, %s381_s14  ;;  %s454_s24 = scalar_lea.vmem %s581_s3, %s381_s14 }
  0x10   : > { %v171_v2 = vld [vmem:[%s435_s19] sm:$0xff]  ;;  %v172_v3 = vld [vmem:[%s435_s19 + $0x8] sm:$0xff]  ;;  %v173_v4 = vld [vmem:[%s435_s19 + $0x10] sm:$0xff] }
  0x11   : > { %v210_v5 = vmul.f32 %v430_v0, %v171_v2  ;;  %v211_v6 = vmul.f32 %v430_v0, %v172_v3  ;;  %v212_v7 = vmul.f32 %v430_v0, %v173_v4  ;;  %v174_v8 = vld [vmem:[%s435_s19 + $0x18] sm:$0xff]  ;;  %v175_v9 = vld [vmem:[%s435_s19 + $0x20] sm:$0xff]  ;;  %v176_v10 = vld [vmem:[%s435_s19 + $0x28] sm:$0xff] }
  0x12   : > { %v213_v11 = vmul.f32 %v430_v0, %v174_v8  ;;  %v214_v12 = vmul.f32 %v430_v0, %v175_v9  ;;  %v215_v13 = vmul.f32 %v430_v0, %v176_v10  ;;  %v177_v14 = vld [vmem:[%s435_s19 + $0x30] sm:$0xff]  ;;  %v178_v15 = vld [vmem:[%s435_s19 + $0x38] sm:$0xff]  ;;  %v179_v16 = vld [vmem:[%s435_s19 + $0x40] sm:$0xff] }
  0x13   : > { %v249_v17 = vadd.f32 %v440_v1, %v210_v5  ;;  %v250_v18 = vadd.f32 %v440_v1, %v211_v6  ;;  %v251_v19 = vadd.f32 %v440_v1, %v212_v7  ;;  %v216_v20 = vmul.f32 %v430_v0, %v177_v14  ;;  %v180_v21 = vld [vmem:[%s435_s19 + $0x48] sm:$0xff]  ;;  %v181_v22 = vld [vmem:[%s435_s19 + $0x50] sm:$0xff]  ;;  %v182_v23 = vld [vmem:[%s435_s19 + $0x58] sm:$0xff] }
  0x14   : > { %v252_v24 = vadd.f32 %v440_v1, %v213_v11  ;;  %v253_v25 = vadd.f32 %v440_v1, %v214_v12  ;;  %v254_v26 = vadd.f32 %v440_v1, %v215_v13  ;;  %v217_v27 = vmul.f32 %v430_v0, %v178_v15  ;;  %v183_v28 = vld [vmem:[%s435_s19 + $0x60] sm:$0xff]  ;;  %v184_v29 = vld [vmem:[%s435_s19 + $0x68] sm:$0xff]  ;;  %v185_v30 = vld [vmem:[%s435_s19 + $0x70] sm:$0xff] }
  0x15   : > { %281 = vst [vmem:[%s454_s24] sm:$0xff] %v249_v17  ;;  %282 = vst [vmem:[%s454_s24 + $0x8] sm:$0xff] %v250_v18  ;;  %v255_v31 = vadd.f32 %v440_v1, %v216_v20  ;;  %v218_v32 = vmul.f32 %v430_v0, %v179_v16  ;;  %v219_v33 = vmul.f32 %v430_v0, %v180_v21  ;;  %v186_v35 = vld [vmem:[%s435_s19 + $0x78] sm:$0xff]  ;;  %v187_v40 = vld [vmem:[%s435_s19 + $0x80] sm:$0xff] }
  0x16   : > { %283 = vst [vmem:[%s454_s24 + $0x10] sm:$0xff] %v251_v19  ;;  %v220_v34 = vmul.f32 %v430_v0, %v181_v22  ;;  %284 = vst [vmem:[%s454_s24 + $0x18] sm:$0xff] %v252_v24  ;;  %v256_v36 = vadd.f32 %v440_v1, %v217_v27  ;;  %v221_v37 = vmul.f32 %v430_v0, %v182_v23  ;;  %v188_v41 = vld [vmem:[%s435_s19 + $0x88] sm:$0xff]  ;;  %v189_v42 = vld [vmem:[%s435_s19 + $0x90] sm:$0xff] }
  0x17   : > { %285 = vst [vmem:[%s454_s24 + $0x20] sm:$0xff] %v253_v25  ;;  %286 = vst [vmem:[%s454_s24 + $0x28] sm:$0xff] %v254_v26  ;;  %v222_v38 = vmul.f32 %v430_v0, %v183_v28  ;;  %v223_v39 = vmul.f32 %v430_v0, %v184_v29  ;;  %v257_v43 = vadd.f32 %v440_v1, %v218_v32  ;;  %v190_v47 = vld [vmem:[%s435_s19 + $0x98] sm:$0xff]  ;;  %v191_v48 = vld [vmem:[%s435_s19 + $0xa0] sm:$0xff] }
  0x18   : > { %287 = vst [vmem:[%s454_s24 + $0x30] sm:$0xff] %v255_v31  ;;  %v258_v44 = vadd.f32 %v440_v1, %v219_v33  ;;  %v259_v45 = vadd.f32 %v440_v1, %v220_v34  ;;  %v224_v46 = vmul.f32 %v430_v0, %v185_v30  ;;  %v192_v49 = vld [vmem:[%s435_s19 + $0xa8] sm:$0xff]  ;;  %288 = vst [vmem:[%s454_s24 + $0x38] sm:$0xff] %v256_v36  ;;  %v193_v54 = vld [vmem:[%s435_s19 + $0xb0] sm:$0xff] }
  0x19   : > { %v260_v50 = vadd.f32 %v440_v1, %v221_v37  ;;  %v261_v51 = vadd.f32 %v440_v1, %v222_v38  ;;  %v262_v52 = vadd.f32 %v440_v1, %v223_v39  ;;  %v225_v53 = vmul.f32 %v430_v0, %v186_v35  ;;  %289 = vst [vmem:[%s454_s24 + $0x40] sm:$0xff] %v257_v43  ;;  %v194_v59 = vld [vmem:[%s435_s19 + $0xb8] sm:$0xff]  ;;  %v195_v2 = vld [vmem:[%s435_s19 + $0xc0] sm:$0xff]  ;;  %v196_v3 = vld [vmem:[%s435_s19 + $0xc8] sm:$0xff] }
  0x1a   : > { %290 = vst [vmem:[%s454_s24 + $0x48] sm:$0xff] %v258_v44  ;;  %291 = vst [vmem:[%s454_s24 + $0x50] sm:$0xff] %v259_v45  ;;  %v263_v55 = vadd.f32 %v440_v1, %v224_v46  ;;  %v226_v56 = vmul.f32 %v430_v0, %v187_v40  ;;  %v227_v57 = vmul.f32 %v430_v0, %v188_v41  ;;  %v197_v4 = vld [vmem:[%s435_s19 + $0xd0] sm:$0xff]  ;;  %v198_v9 = vld [vmem:[%s435_s19 + $0xd8] sm:$0xff] }
  0x1b   : > { %v228_v58 = vmul.f32 %v430_v0, %v189_v42  ;;  %292 = vst [vmem:[%s454_s24 + $0x58] sm:$0xff] %v260_v50  ;;  %293 = vst [vmem:[%s454_s24 + $0x60] sm:$0xff] %v261_v51  ;;  %v264_v60 = vadd.f32 %v440_v1, %v225_v53  ;;  %v229_v61 = vmul.f32 %v430_v0, %v190_v47  ;;  %v199_v10 = vld [vmem:[%s435_s19 + $0xe0] sm:$0xff]  ;;  %v200_v11 = vld [vmem:[%s435_s19 + $0xe8] sm:$0xff] }
  0x1c   : > { %294 = vst [vmem:[%s454_s24 + $0x68] sm:$0xff] %v262_v52  ;;  %v230_v62 = vmul.f32 %v430_v0, %v191_v48  ;;  %v231_v63 = vmul.f32 %v430_v0, %v192_v49  ;;  %295 = vst [vmem:[%s454_s24 + $0x70] sm:$0xff] %v263_v55  ;;  %v265_v5 = vadd.f32 %v440_v1, %v226_v56  ;;  %v201_v16 = vld [vmem:[%s435_s19 + $0xf0] sm:$0xff]  ;;  %v202_v21 = vld [vmem:[%s435_s19 + $0xf8] sm:$0xff] }
  0x1d   : > { %v266_v6 = vadd.f32 %v440_v1, %v227_v57  ;;  %v267_v7 = vadd.f32 %v440_v1, %v228_v58  ;;  %v232_v8 = vmul.f32 %v430_v0, %v193_v54  ;;  %296 = vst [vmem:[%s454_s24 + $0x78] sm:$0xff] %v264_v60  ;;  %v268_v12 = vadd.f32 %v440_v1, %v229_v61 }
  0x1e   : > { %v269_v13 = vadd.f32 %v440_v1, %v230_v62  ;;  %v270_v14 = vadd.f32 %v440_v1, %v231_v63  ;;  %v233_v15 = vmul.f32 %v430_v0, %v194_v59  ;;  %297 = vst [vmem:[%s454_s24 + $0x80] sm:$0xff] %v265_v5  ;;  %v234_v18 = vmul.f32 %v430_v0, %v195_v2 }
  0x1f   : > { %298 = vst [vmem:[%s454_s24 + $0x88] sm:$0xff] %v266_v6  ;;  %299 = vst [vmem:[%s454_s24 + $0x90] sm:$0xff] %v267_v7  ;;  %v271_v17 = vadd.f32 %v440_v1, %v232_v8  ;;  %v235_v19 = vmul.f32 %v430_v0, %v196_v3  ;;  %v236_v20 = vmul.f32 %v430_v0, %v197_v4 }
  0x20   : > { %300 = vst [vmem:[%s454_s24 + $0x98] sm:$0xff] %v268_v12  ;;  %301 = vst [vmem:[%s454_s24 + $0xa0] sm:$0xff] %v269_v13  ;;  %v272_v22 = vadd.f32 %v440_v1, %v233_v15  ;;  %v237_v23 = vmul.f32 %v430_v0, %v198_v9  ;;  %v238_v24 = vmul.f32 %v430_v0, %v199_v10 }
  0x21   : > { %302 = vst [vmem:[%s454_s24 + $0xa8] sm:$0xff] %v270_v14  ;;  %v239_v25 = vmul.f32 %v430_v0, %v200_v11  ;;  %303 = vst [vmem:[%s454_s24 + $0xb0] sm:$0xff] %v271_v17  ;;  %v273_v26 = vadd.f32 %v440_v1, %v234_v18  ;;  %v274_v27 = vadd.f32 %v440_v1, %v235_v19 }
  0x22   : > { %v275_v28 = vadd.f32 %v440_v1, %v236_v20  ;;  %v240_v29 = vmul.f32 %v430_v0, %v201_v16  ;;  %304 = vst [vmem:[%s454_s24 + $0xb8] sm:$0xff] %v272_v22  ;;  %v276_v30 = vadd.f32 %v440_v1, %v237_v23  ;;  %v277_v31 = vadd.f32 %v440_v1, %v238_v24 }
  0x23   : > { %v278_v32 = vadd.f32 %v440_v1, %v239_v25  ;;  %v241_v33 = vmul.f32 %v430_v0, %v202_v21  ;;  %305 = vst [vmem:[%s454_s24 + $0xc0] sm:$0xff] %v273_v26  ;;  %306 = vst [vmem:[%s454_s24 + $0xc8] sm:$0xff] %v274_v27 }
  0x24   : > { %307 = vst [vmem:[%s454_s24 + $0xd0] sm:$0xff] %v275_v28  ;;  %v279_v34 = vadd.f32 %v440_v1, %v240_v29  ;;  %308 = vst [vmem:[%s454_s24 + $0xd8] sm:$0xff] %v276_v30 }
  0x25   : > { %309 = vst [vmem:[%s454_s24 + $0xe0] sm:$0xff] %v277_v31  ;;  %310 = vst [vmem:[%s454_s24 + $0xe8] sm:$0xff] %v278_v32  ;;  %v280_v35 = vadd.f32 %v440_v1, %v241_v33 }
  0x26   : > { %311 = vst [vmem:[%s454_s24 + $0xf0] sm:$0xff] %v279_v34 }
  0x27   : > { %312 = vst [vmem:[%s454_s24 + $0xf8] sm:$0xff] %v280_v35 }
  0x28 PF: > { %s13_s12 = sadd.s32 1, %s397_s12  }
  0x29   : > { %p10_p4 = scmp.ge.s32.totalorder %s13_s12, 4  }
  0x2b   :  { %12 = sbr.rel (!%p10_p4) target bundleno = 1 (0x1), region = 62 }

// kernel: unet_innermost_block.2
= control target key start
LH: loop header
LB: loop body
LE: loop exit
PB: predicated region body
PF: predicated region fallthrough
CT: control target
= control target key end

     0   :  { %s6673_s15 = smov 0   ;;  %s8053_s0 = inlined_call_operand.vmem [shape: f32[2,4,9,9,4], index: 0, kind: input, shape index: {}]   ;;  %s8054_s1 = inlined_call_operand.vmem [shape: bf16[16,4,128], index: 1, kind: input, shape index: {}]   ;;  %s8055_s2 = inlined_call_operand.vmem [shape: bf16[4,4,128,128], index: 2, kind: input, shape index: {}]   ;;  %s8056_s3 = inlined_call_operand.vmem [shape: f32[2,4,8,8,128], index: 3, kind: output, shape index: {0}]   ;;  %s8057_s4 = inlined_call_operand.vmem [shape: f32[2,2,128], index: 4, kind: output, shape index: {1}]  }
   0x1 LB: > { %s4858_s16 = sadd.s32 4294967295, %s6645_s15   ;;  %p4862_p0 = scmp.ge.s32.totalorder %s6645_s15, 1  ;;  %s6645_s15 = sphi %s6673_s15, %s15_s15  }
   0x2   : > { %p165_p1 = scmp.lt.s32.totalorder %s6645_s15, 3 }
   0x4   : > { %p166_p2 = pnand %p4862_p0, %p165_p1 }
   0x6   : > { %169 = sbr.rel (%p166_p2) target bundleno = 1085 (0x43d), region = 32 }
   0xd   : > { %v4875_v0 = vld [vmem:[%s8054_s1 + $0x2] sm:$0x3]  ;;  %vm299_vm0 = vcmask 1041408   ;;  %p195_p3 = scmp.lt.s32.totalorder %s4858_s16, 1  ;;  %v246_v2 = vld [vmem:[%s8054_s1] sm:$0x3] }
   0xe   : > { %6485 = vmatprep.subr.msk.bf16.mxu0 %vm299_vm0, %v4875_v0  ;;  %v301_v1 = vsel %vm299_vm0, %v4875_v0, 0  ;;  %vm286_vm1 = vcmask 31744   ;;  %v381_v6 = vsel %vm299_vm0, %v246_v2, 0  ;;  %v4884_v30 = vld [vmem:[%s8054_s1 + $0x4] sm:$0x3] }
   0xf   : > { %5726 = vmatpush3.bf16.msra.mxu0 %v301_v1  ;;  %s8109_s16 = smov (!%p195_p3, %s4858_s16), 1  ;;  %v499_v57 = vsel %vm299_vm0, %v4884_v30, 0  ;;  %v4897_v63 = vld [vmem:[%s8054_s1 + $0x6] sm:$0x3] }
  0x10   : > { %6486 = vmatprep.subr.msk.bf16.mxu0 %vm299_vm0, %v246_v2  ;;  %s6501_s21 = smul.u32 576, %s8109_s16  ;;  %s5452_s23 = sshll.u32 %s8109_s16, 8 }
  0x11   : > { %s7953_s29 = scalar_lea.vmem %s8056_s3, %s5452_s23  ;;  %s4866_s26 = sshll.u32 %s8109_s16, 1 }
  0x12   : > { %s6696_s24 = scalar_lea.vmem %s8053_s0, %s6501_s21 }
  0x13   : > { %v4867_v3 = vld [vmem:[%s6696_s24 + $0x90] sm:$0xff]  ;;  %v4868_v4 = vld [vmem:[%s6696_s24 + $0xa0] sm:$0xff] }
  0x14   : > { %v4869_v5 = vld [vmem:[%s6696_s24 + $0xb0] sm:$0xff]  ;;  %vm256_vm2 = vcmp.ge.f32.partialorder %v4867_v3, 0.0  ;;  %vm257_vm3 = vcmp.ge.f32.partialorder %v4868_v4, 0.0  ;;  %v264_v7 = vmul.f32 0.2, %v4867_v3  ;;  %v4870_v9 = vld [vmem:[%s6696_s24 + $0xc0] sm:$0xff] }
  0x15   : > { %v265_v8 = vmul.f32 0.2, %v4868_v4  ;;  %vm258_vm4 = vcmp.ge.f32.partialorder %v4869_v5, 0.0  ;;  %v266_v10 = vmul.f32 0.2, %v4869_v5  ;;  %v4871_v11 = vld [vmem:[%s6696_s24 + $0xd0] sm:$0xff] }
  0x16   : > { %v4872_v12 = vld [vmem:[%s6696_s24 + $0xe0] sm:$0xff]  ;;  %v272_v13 = vsel %vm256_vm2, %v4867_v3, %v264_v7  ;;  %vm259_vm5 = vcmp.ge.f32.partialorder %v4870_v9, 0.0  ;;  %v267_v15 = vmul.f32 0.2, %v4870_v9  ;;  %v4873_v16 = vld [vmem:[%s6696_s24 + $0xf0] sm:$0xff]  ;;  %vm260_vm6 = vcmp.ge.f32.partialorder %v4871_v11, 0.0 }
  0x17   : > { %v6705_v14 = vsel %vm257_vm3, %v4868_v4, %v265_v8  ;;  %v4874_v17 = vld [vmem:[%s6696_s24 + $0x100] sm:$0xff]  ;;  %v6710_v19 = vsel %vm258_vm4, %v4869_v5, %v266_v10  ;;  %vm261_vm7 = vcmp.ge.f32.partialorder %v4872_v12, 0.0  ;;  %v268_v22 = vmul.f32 0.2, %v4871_v11  ;;  %v211_v24 = vld [vmem:[%s6696_s24 + $0x10] sm:$0xff] }
  0x18   : > { %8068 = vst [vmem:[#allocation3_spill] sm:$0xff] %v6705_v14  ;;  %v280_v18 = vpack.c.bf16 %v6705_v14, %v272_v13  ;;  %v210_v20 = vld [vmem:[%s6696_s24] sm:$0xff]  ;;  %v6713_v21 = vsel %vm259_vm5, %v4870_v9, %v267_v15  ;;  %v269_v23 = vmul.f32 0.2, %v4872_v12  ;;  %vm262_vm8 = vcmp.ge.f32.partialorder %v4873_v16, 0.0  ;;  %v213_v38 = vld [vmem:[%s6696_s24 + $0x30] sm:$0xff] }
  0x19   : > { %v281_v25 = vpack.c.bf16 %v6713_v21, %v6710_v19  ;;  %vm263_vm9 = vcmp.ge.f32.partialorder %v4874_v17, 0.0  ;;  %v270_v26 = vmul.f32 0.2, %v4873_v16  ;;  %v271_v27 = vmul.f32 0.2, %v4874_v17  ;;  %v212_v37 = vld [vmem:[%s6696_s24 + $0x20] sm:$0xff] }
  0x1a   : > { %5727 = vmatprep.mubr.msk.bf16.mxu0 %vm286_vm1, %v280_v18  ;;  %v6719_v28 = vsel %vm260_vm6, %v4871_v11, %v268_v22  ;;  %v6721_v29 = vsel %vm261_vm7, %v4872_v12, %v269_v23  ;;  %vm218_vm10 = vcmp.ge.f32.partialorder %v210_v20, 0.0  ;;  %vm219_vm11 = vcmp.ge.f32.partialorder %v211_v24, 0.0  ;;  %v214_v40 = vld [vmem:[%s6696_s24 + $0x40] sm:$0xff]  ;;  %v215_v41 = vld [vmem:[%s6696_s24 + $0x50] sm:$0xff] }
  0x1b   : > { %8069 = vst [vmem:[#allocation4_spill] sm:$0xff] %v6721_v29  ;;  %5728 = vmatmul.mubr.msk.bf16.vlgmr.msra.gmra.mrb[0].mxu0 %vm286_vm1, %v281_v25  ;;  %v282_v31 = vpack.c.bf16 %v6721_v29, %v6719_v28  ;;  %v226_v32 = vmul.f32 0.2, %v210_v20  ;;  %v6730_v33 = vsel %vm262_vm8, %v4873_v16, %v270_v26  ;;  %v6732_v34 = vsel %vm263_vm9, %v4874_v17, %v271_v27  ;;  %v216_v52 = vld [vmem:[%s6696_s24 + $0x60] sm:$0xff]  ;;  %v217_v53 = vld [vmem:[%s6696_s24 + $0x70] sm:$0xff] }
  0x1c   : > { %5736 = vmatpush3.bf16.msra.mxu0 %v381_v6  ;;  %8070 = vst [vmem:[#allocation5_spill] sm:$0xff] %v6732_v34  ;;  %v227_v35 = vmul.f32 0.2, %v211_v24  ;;  %v283_v42 = vpack.c.bf16 %v6732_v34, %v6730_v33  ;;  %v228_v44 = vmul.f32 0.2, %v212_v37  ;;  %vm220_vm12 = vcmp.ge.f32.partialorder %v212_v37, 0.0 }
  0x1d   : > { %5731 = vmatprep.mubr.msk.bf16.mxu0 %vm286_vm1, %v282_v31  ;;  %v234_v36 = vsel %vm218_vm10, %v210_v20, %v226_v32  ;;  %6487 = vmatprep.subr.msk.bf16.mxu0 %vm299_vm0, %v4884_v30  ;;  %v229_v45 = vmul.f32 0.2, %v213_v38  ;;  %vm221_vm13 = vcmp.ge.f32.partialorder %v213_v38, 0.0  ;;  %v230_v46 = vmul.f32 0.2, %v214_v40  ;;  %v448_v54 = vld [vmem:[%s6696_s24 + $0x1] sm:$0xff] }
  0x1e   : > { %v6738_v39 = vsel %vm219_vm11, %v211_v24, %v227_v35  ;;  %v231_v47 = vmul.f32 0.2, %v215_v41  ;;  %vm222_vm14 = vcmp.ge.f32.partialorder %v214_v40, 0.0  ;;  %vm223_vm15 = vcmp.ge.f32.partialorder %v215_v41, 0.0  ;;  %v449_v55 = vld [vmem:[%s6696_s24 + $0x11] sm:$0xff]  ;;  %v450_v4 = vld [vmem:[%s6696_s24 + $0x21] sm:$0xff] }
  0x1f   : > { %v242_v43 = vpack.c.bf16 %v6738_v39, %v234_v36  ;;  %v6747_v48 = vsel %vm220_vm12, %v212_v37, %v228_v44  ;;  %v6749_v49 = vsel %vm221_vm13, %v213_v38, %v229_v45  ;;  %v6751_v50 = vsel %vm222_vm14, %v214_v40, %v230_v46  ;;  %v451_v5 = vld [vmem:[%s6696_s24 + $0x31] sm:$0xff]  ;;  %v452_v6 = vld [vmem:[%s6696_s24 + $0x41] sm:$0xff] }
  0x20   : > { %v6753_v51 = vsel %vm223_vm15, %v215_v41, %v231_v47  ;;  %v243_v56 = vpack.c.bf16 %v6749_v49, %v6747_v48  ;;  %v232_v59 = vmul.f32 0.2, %v216_v52  ;;  %v233_v60 = vmul.f32 0.2, %v217_v53  ;;  %v453_v7 = vld [vmem:[%s6696_s24 + $0x51] sm:$0xff]  ;;  %v454_v20 = vld [vmem:[%s6696_s24 + $0x61] sm:$0xff] }
  0x21   : > { %v244_v58 = vpack.c.bf16 %v6753_v51, %v6751_v50  ;;  %vm224_vm2 = vcmp.ge.f32.partialorder %v216_v52, 0.0  ;;  %vm225_vm3 = vcmp.ge.f32.partialorder %v217_v53, 0.0  ;;  %v464_v61 = vmul.f32 0.2, %v448_v54  ;;  %v455_v22 = vld [vmem:[%s6696_s24 + $0x71] sm:$0xff]  ;;  %v4890_v24 = vld [vmem:[%s6696_s24 + $0xa1] sm:$0xff] }
  0x22   : > { %v465_v62 = vmul.f32 0.2, %v449_v55  ;;  %vm456_vm4 = vcmp.ge.f32.partialorder %v448_v54, 0.0  ;;  %vm457_vm5 = vcmp.ge.f32.partialorder %v449_v55, 0.0  ;;  %v6769_v0 = vsel %vm224_vm2, %v216_v52, %v232_v59  ;;  %v4889_v23 = vld [vmem:[%s6696_s24 + $0x91] sm:$0xff]  ;;  %v4892_v38 = vld [vmem:[%s6696_s24 + $0xc1] sm:$0xff] }
  0x23   : > { %5732 = vmatmul.mubr.msk.bf16.gmra.mrb[4].mxu0 %vm286_vm1, %v283_v42  ;;  %v6771_v1 = vsel %vm225_vm3, %v217_v53, %v233_v60  ;;  %v472_v2 = vsel %vm456_vm4, %v448_v54, %v464_v61  ;;  %v466_v10 = vmul.f32 0.2, %v450_v4  ;;  %v467_v11 = vmul.f32 0.2, %v451_v5  ;;  %v4910_v36 = vld [vmem:[%s8054_s1 + $0x8] sm:$0x3] }
  0x24   : > { %5737 = vmatprep.mubr.msk.bf16.mxu0 %vm286_vm1, %v242_v43  ;;  %v6773_v3 = vsel %vm457_vm5, %v449_v55, %v465_v62  ;;  %v245_v8 = vpack.c.bf16 %v6771_v1, %v6769_v0  ;;  %vm458_vm6 = vcmp.ge.f32.partialorder %v450_v4, 0.0  ;;  %vm459_vm7 = vcmp.ge.f32.partialorder %v451_v5, 0.0  ;;  %v4891_v37 = vld [vmem:[%s6696_s24 + $0xb1] sm:$0xff]  ;;  %v4894_v45 = vld [vmem:[%s6696_s24 + $0xe1] sm:$0xff]  ;;  %v6821_v47 = vld [vmem:[%s8054_s1 + $0xa] sm:$0x3] }
  0x25   : > { %8071 = vst [vmem:[#allocation6_spill] sm:$0xff] %v6773_v3  ;;  %v480_v9 = vpack.c.bf16 %v6773_v3, %v472_v2  ;;  %v468_v12 = vmul.f32 0.2, %v452_v6  ;;  %v469_v13 = vmul.f32 0.2, %v453_v7  ;;  %vm460_vm8 = vcmp.ge.f32.partialorder %v452_v6, 0.0 }
  0x26   : > { %vm461_vm9 = vcmp.ge.f32.partialorder %v453_v7, 0.0  ;;  %v6785_v15 = vsel %vm458_vm6, %v450_v4, %v466_v10  ;;  %v6787_v16 = vsel %vm459_vm7, %v451_v5, %v467_v11  ;;  %v625_v26 = vsel %vm299_vm0, %v4897_v63, 0  ;;  %v4893_v42 = vld [vmem:[%s6696_s24 + $0xd1] sm:$0xff]  ;;  %v6826_v52 = vld [vmem:[%s8054_s1 + $0xc] sm:$0x3]  ;;  %v4896_v2 = vld [vmem:[%s6696_s24 + $0x101] sm:$0xff] }
  0x27   : > { %v6789_v17 = vsel %vm460_vm8, %v452_v6, %v468_v12  ;;  %v6791_v18 = vsel %vm461_vm9, %v453_v7, %v469_v13  ;;  %v481_v25 = vpack.c.bf16 %v6787_v16, %v6785_v15  ;;  %v470_v30 = vmul.f32 0.2, %v454_v20  ;;  %v4895_v61 = vld [vmem:[%s6696_s24 + $0xf1] sm:$0xff]  ;;  %v4902_v4 = vld [vmem:[%s6696_s24 + $0x120] sm:$0xff] }
  0x28   : > { %v482_v27 = vpack.c.bf16 %v6791_v18, %v6789_v17  ;;  %v471_v31 = vmul.f32 0.2, %v455_v22  ;;  %vm462_vm10 = vcmp.ge.f32.partialorder %v454_v20, 0.0  ;;  %vm463_vm11 = vcmp.ge.f32.partialorder %v455_v22, 0.0  ;;  %v6867_v10 = vld [vmem:[%s6696_s24 + $0x140] sm:$0xff]  ;;  %v6878_v13 = vld [vmem:[%s6696_s24 + $0x150] sm:$0xff] }
  0x29   : > { %v590_v32 = vmul.f32 0.2, %v4889_v23  ;;  %v591_v35 = vmul.f32 0.2, %v4890_v24  ;;  %vm582_vm12 = vcmp.ge.f32.partialorder %v4889_v23, 0.0  ;;  %vm583_vm13 = vcmp.ge.f32.partialorder %v4890_v24, 0.0 }
  0x2a   : > { %v6809_v40 = vsel %vm462_vm10, %v454_v20, %v470_v30  ;;  %v6811_v41 = vsel %vm463_vm11, %v455_v22, %v471_v31  ;;  %vm584_vm14 = vcmp.ge.f32.partialorder %v4891_v37, 0.0  ;;  %vm585_vm15 = vcmp.ge.f32.partialorder %v4892_v38, 0.0 }
  0x2b   : > { %5738 = vmatmul.mubr.msk.bf16.vlgmr.msra.gmra.mrb[0].mxu0 %vm286_vm1, %v243_v56  ;;  %8072 = vst [vmem:[#allocation7_spill] sm:$0xff] %v6811_v41  ;;  %v598_v43 = vsel %vm582_vm12, %v4889_v23, %v590_v32  ;;  %v6814_v44 = vsel %vm583_vm13, %v4890_v24, %v591_v35  ;;  %v592_v46 = vmul.f32 0.2, %v4891_v37  ;;  %v483_v53 = vpack.c.bf16 %v6811_v41, %v6809_v40  ;;  %v6833_v56 = vld [vmem:[%s8054_s1 + $0xe] sm:$0x3]  ;;  %v6896_v32 = vld [vmem:[%s6696_s24 + $0x190] sm:$0xff] }
  0x2c   : > { %5746 = vmatpush3.bf16.msra.mxu0 %v499_v57  ;;  %5741 = vmatprep.mubr.msk.bf16.mxu0 %vm286_vm1, %v244_v58  ;;  %v593_v54 = vmul.f32 0.2, %v4892_v38  ;;  %v594_v55 = vmul.f32 0.2, %v4893_v42  ;;  %v6838_v57 = vld [vmem:[%s8054_s1 + $0x10] sm:$0x3]  ;;  %v606_v58 = vpack.c.bf16 %v6814_v44, %v598_v43 }
  0x2d   : > { %6488 = vmatprep.subr.msk.bf16.mxu0 %vm299_vm0, %v4897_v63  ;;  %v595_v59 = vmul.f32 0.2, %v4894_v45  ;;  %vm586_vm2 = vcmp.ge.f32.partialorder %v4893_v42, 0.0  ;;  %vm587_vm3 = vcmp.ge.f32.partialorder %v4894_v45, 0.0  ;;  %v752_v60 = vsel %vm299_vm0, %v4910_v36, 0  ;;  %v6909_v43 = vld [vmem:[%s6696_s24 + $0x1c0] sm:$0xff] }
  0x2e   : > { %v6845_v62 = vsel %vm584_vm14, %v4891_v37, %v592_v46  ;;  %v6848_v63 = vsel %vm585_vm15, %v4892_v38, %v593_v54  ;;  %v6854_v5 = vsel %vm299_vm0, %v6821_v47, 0  ;;  %v6858_v6 = vsel %vm299_vm0, %v6826_v52, 0  ;;  %v6950_v41 = vld [vmem:[%s6696_s24 + $0x220] sm:$0xff]  ;;  %v6964_v54 = vld [vmem:[%s6696_s24 + $0x131] sm:$0xff] }
  0x2f   : > { %v6861_v7 = vsel %vm586_vm2, %v4893_v42, %v594_v55  ;;  %v6871_v11 = vsel %vm299_vm0, %v6833_v56, 0  ;;  %v6875_v12 = vsel %vm299_vm0, %v6838_v57, 0  ;;  %vm588_vm4 = vcmp.ge.f32.partialorder %v4895_v61, 0.0 }
  0x30   : > { %v607_v20 = vpack.c.bf16 %v6848_v63, %v6845_v62  ;;  %v596_v22 = vmul.f32 0.2, %v4895_v61  ;;  %v597_v23 = vmul.f32 0.2, %v4896_v2  ;;  %vm589_vm5 = vcmp.ge.f32.partialorder %v4896_v2, 0.0 }
  0x31   : > { %vm709_vm6 = vcmp.ge.f32.partialorder %v4902_v4, 0.0  ;;  %v717_v30 = vmul.f32 0.2, %v4902_v4  ;;  %vm711_vm8 = vcmp.ge.f32.partialorder %v6867_v10, 0.0  ;;  %vm712_vm9 = vcmp.ge.f32.partialorder %v6878_v13, 0.0 }
  0x32   : > { %v719_v35 = vmul.f32 0.2, %v6867_v10  ;;  %v6903_v37 = vsel %vm588_vm4, %v4895_v61, %v596_v22  ;;  %v6905_v38 = vsel %vm589_vm5, %v4896_v2, %v597_v23  ;;  %v720_v42 = vmul.f32 0.2, %v6878_v13  ;;  %v6930_v61 = vld [vmem:[%s6696_s24 + $0x200] sm:$0xff] }
  0x33   : > { %5742 = vmatmul.mubr.msk.bf16.gmra.mrb[4].mxu0 %vm286_vm1, %v245_v8  ;;  %v6863_v8 = vsel %vm587_vm3, %v4894_v45, %v595_v59  ;;  %8074 = vst [vmem:[#allocation9_spill] sm:$0xff] %v6905_v38  ;;  %v6912_v45 = vld [vmem:[%s6696_s24 + $0x1d0] sm:$0xff]  ;;  %v724_v23 = vmul.f32 0.2, %v6896_v32  ;;  %vm716_vm13 = vcmp.ge.f32.partialorder %v6896_v32, 0.0  ;;  %vm837_vm15 = vcmp.ge.f32.partialorder %v6909_v43, 0.0 }
  0x34   : > { %5747 = vmatprep.mubr.msk.bf16.mxu0 %vm286_vm1, %v480_v9  ;;  %8073 = vst [vmem:[#allocation8_spill] sm:$0xff] %v6863_v8  ;;  %v4903_v9 = vld [vmem:[%s6696_s24 + $0x130] sm:$0xff]  ;;  %v608_v24 = vpack.c.bf16 %v6863_v8, %v6861_v7  ;;  %v6978_v29 = vsel %vm711_vm8, %v6867_v10, %v719_v35  ;;  %v971_v3 = vmul.f32 0.2, %v6964_v54  ;;  %vm838_vm2 = vcmp.ge.f32.partialorder %v6912_v45, 0.0 }
  0x35   : > { %vm710_vm7 = vcmp.ge.f32.partialorder %v4903_v9, 0.0  ;;  %v718_v31 = vmul.f32 0.2, %v4903_v9  ;;  %v6927_v59 = vld [vmem:[%s6696_s24 + $0x1f0] sm:$0xff]  ;;  %vm841_vm5 = vcmp.ge.f32.partialorder %v6930_v61, 0.0 }
  0x36   : > { %v848_v34 = vmul.f32 0.2, %v6927_v59  ;;  %v7027_v35 = vld [vmem:[%s6696_s24 + $0x151] sm:$0xff]  ;;  %vm840_vm4 = vcmp.ge.f32.partialorder %v6927_v59, 0.0 }
  0x37   : > { %v6938_v22 = vsel %vm710_vm7, %v4903_v9, %v718_v31  ;;  %v846_v31 = vmul.f32 0.2, %v6912_v45  ;;  %v6988_v9 = vsel %vm712_vm9, %v6878_v13, %v720_v42  ;;  %v851_v42 = vmul.f32 0.2, %v6950_v41 }
  0x38   : > { %8075 = vst [vmem:[#allocation10_spill] sm:$0xff] %v6938_v22  ;;  %8076 = vst [vmem:[#allocation11_spill] sm:$0xff] %v6988_v9  ;;  %v734_v8 = vpack.c.bf16 %v6988_v9, %v6978_v29  ;;  %vm843_vm7 = vcmp.ge.f32.partialorder %v6950_v41, 0.0  ;;  %vm963_vm9 = vcmp.ge.f32.partialorder %v6964_v54, 0.0 }
  0x3b   : > { %5748 = vmatmul.mubr.msk.bf16.vlgmr.msra.gmra.mrb[0].mxu0 %vm286_vm1, %v481_v25  ;;  %v6885_v25 = vld [vmem:[%s6696_s24 + $0x160] sm:$0xff] }
  0x3c   : > { %5756 = vmatpush3.bf16.msra.mxu0 %v625_v26  ;;  %5751 = vmatprep.mubr.msk.bf16.mxu0 %vm286_vm1, %v482_v27  ;;  %v6888_v26 = vld [vmem:[%s6696_s24 + $0x170] sm:$0xff]  ;;  %v6891_v27 = vld [vmem:[%s6696_s24 + $0x180] sm:$0xff]  ;;  %vm713_vm10 = vcmp.ge.f32.partialorder %v6885_v25, 0.0  ;;  %v721_v46 = vmul.f32 0.2, %v6885_v25 }
  0x3d   : > { %6489 = vmatprep.subr.msk.bf16.mxu0 %vm299_vm0, %v4910_v36  ;;  %v6900_v36 = vld [vmem:[%s6696_s24 + $0x1b0] sm:$0xff]  ;;  %vm714_vm11 = vcmp.ge.f32.partialorder %v6888_v26, 0.0  ;;  %v722_v55 = vmul.f32 0.2, %v6888_v26  ;;  %vm715_vm12 = vcmp.ge.f32.partialorder %v6891_v27, 0.0 }
  0x3e   : > { %v844_v2 = vmul.f32 0.2, %v6900_v36  ;;  %vm836_vm14 = vcmp.ge.f32.partialorder %v6900_v36, 0.0  ;;  %v7003_v13 = vsel %vm713_vm10, %v6885_v25, %v721_v46  ;;  %v7021_v46 = vld [vmem:[%s6696_s24 + $0x141] sm:$0xff] }
  0x3f   : > { %8077 = vst [vmem:[#allocation12_spill] sm:$0xff] %v7003_v13  ;;  %v7018_v25 = vsel %vm714_vm11, %v6888_v26, %v722_v55  ;;  %v7037_v26 = vld [vmem:[%s6696_s24 + $0x171] sm:$0xff]  ;;  %v972_v9 = vmul.f32 0.2, %v7021_v46  ;;  %vm964_vm10 = vcmp.ge.f32.partialorder %v7021_v46, 0.0  ;;  %vm965_vm11 = vcmp.ge.f32.partialorder %v7027_v35, 0.0 }
  0x43   : > { %5752 = vmatmul.mubr.msk.bf16.gmra.mrb[4].mxu0 %vm286_vm1, %v483_v53  ;;  %v6919_v53 = vld [vmem:[%s6696_s24 + $0x1e0] sm:$0xff] }
  0x44   : > { %5757 = vmatprep.mubr.msk.bf16.mxu0 %vm286_vm1, %v606_v58  ;;  %v723_v58 = vmul.f32 0.2, %v6891_v27  ;;  %vm839_vm3 = vcmp.ge.f32.partialorder %v6919_v53, 0.0 }
  0x46   : > { %v7044_v55 = vsel %vm715_vm12, %v6891_v27, %v723_v58  ;;  %v852_v27 = vsel %vm836_vm14, %v6900_v36, %v844_v2  ;;  %v975_v58 = vmul.f32 0.2, %v7037_v26  ;;  %v7093_v2 = vsel %vm840_vm4, %v6927_v59, %v848_v34  ;;  %v4941_v59 = vld [vmem:[%s6696_s24 + $0x1b1] sm:$0xff] }
  0x4b   : > { %5758 = vmatmul.mubr.msk.bf16.vlgmr.msra.gmra.mrb[0].mxu0 %vm286_vm1, %v607_v20  ;;  %v6953_v20 = vld [vmem:[%s6696_s24 + $0x121] sm:$0xff] }
  0x4c   : > { %5766 = vmatpush3.bf16.msra.mxu0 %v752_v60  ;;  %5761 = vmatprep.mubr.msk.bf16.mxu0 %vm286_vm1, %v608_v24  ;;  %v725_v60 = vsel %vm709_vm6, %v4902_v4, %v717_v30  ;;  %v6944_v24 = vld [vmem:[%s6696_s24 + $0x210] sm:$0xff]  ;;  %v845_v30 = vmul.f32 0.2, %v6909_v43  ;;  %v847_v4 = vmul.f32 0.2, %v6919_v53  ;;  %vm962_vm8 = vcmp.ge.f32.partialorder %v6953_v20, 0.0 }
  0x4d   : > { %6490 = vmatprep.subr.msk.bf16.mxu0 %vm299_vm0, %v6821_v47  ;;  %v609_v47 = vpack.c.bf16 %v6905_v38, %v6903_v37  ;;  %v733_v14 = vpack.c.bf16 %v6938_v22, %v725_v60  ;;  %v849_v60 = vmul.f32 0.2, %v6930_v61  ;;  %v6993_v10 = vmul.f32 0.2, %v6944_v24 }
  0x4e   : > { %v7007_v38 = vmul.f32 0.2, %v6953_v20  ;;  %v973_v22 = vmul.f32 0.2, %v7027_v35  ;;  %vm842_vm6 = vcmp.ge.f32.partialorder %v6944_v24, 0.0 }
  0x53   : > { %5762 = vmatmul.mubr.msk.bf16.gmra.mrb[4].mxu0 %vm286_vm1, %v609_v47  ;;  %v7034_v47 = vld [vmem:[%s6696_s24 + $0x161] sm:$0xff] }
  0x54   : > { %5767 = vmatprep.mubr.msk.bf16.mxu0 %vm286_vm1, %v733_v14  ;;  %v735_v14 = vpack.c.bf16 %v7018_v25, %v7003_v13  ;;  %v7052_v13 = vsel %vm716_vm13, %v6896_v32, %v724_v23  ;;  %v974_v32 = vmul.f32 0.2, %v7034_v47  ;;  %vm966_vm12 = vcmp.ge.f32.partialorder %v7034_v47, 0.0 }
  0x55   : > { %v736_v23 = vpack.c.bf16 %v7052_v13, %v7044_v55  ;;  %vm967_vm13 = vcmp.ge.f32.partialorder %v7037_v26, 0.0 }
  0x5b   : > { %5768 = vmatmul.mubr.msk.bf16.vlgmr.msra.gmra.mrb[0].mxu0 %vm286_vm1, %v734_v8 }
  0x5c   : > { %5776 = vmatpush3.bf16.msra.mxu0 %v6854_v5  ;;  %5771 = vmatprep.mubr.msk.bf16.mxu0 %vm286_vm1, %v735_v14  ;;  %v7063_v5 = vsel %vm837_vm15, %v6909_v43, %v845_v30  ;;  %v7072_v14 = vld [vmem:[%s6696_s24 + $0x181] sm:$0xff]  ;;  %v7088_v43 = vsel %vm839_vm3, %v6919_v53, %v847_v4  ;;  %v7104_v53 = vsel %vm841_vm5, %v6930_v61, %v849_v60  ;;  %v4935_v4 = vld [vmem:[%s6696_s24 + $0x191] sm:$0xff] }
  0x5d   : > { %6491 = vmatprep.subr.msk.bf16.mxu0 %vm299_vm0, %v6826_v52  ;;  %v860_v36 = vpack.c.bf16 %v7063_v5, %v852_v27  ;;  %v7080_v52 = vsel %vm838_vm2, %v6912_v45, %v846_v31  ;;  %v976_v30 = vmul.f32 0.2, %v7072_v14  ;;  %v862_v27 = vpack.c.bf16 %v7104_v53, %v7093_v2 }
  0x5e   : > { %v861_v34 = vpack.c.bf16 %v7088_v43, %v7080_v52  ;;  %v7123_v61 = vsel %vm842_vm6, %v6944_v24, %v6993_v10  ;;  %v977_v60 = vmul.f32 0.2, %v4935_v4  ;;  %v7130_v31 = vsel %vm843_vm7, %v6950_v41, %v851_v42 }
  0x5f   : > { %v1096_v45 = vmul.f32 0.2, %v4941_v59  ;;  %v978_v24 = vsel %vm962_vm8, %v6953_v20, %v7007_v38  ;;  %v863_v42 = vpack.c.bf16 %v7130_v31, %v7123_v61  ;;  %vm968_vm14 = vcmp.ge.f32.partialorder %v7072_v14, 0.0 }
  0x60   : > { %vm969_vm15 = vcmp.ge.f32.partialorder %v4935_v4, 0.0  ;;  %vm1088_vm2 = vcmp.ge.f32.partialorder %v4941_v59, 0.0  ;;  %v7164_v38 = vsel %vm966_vm12, %v7034_v47, %v974_v32 }
  0x61   : > { %v1104_v8 = vsel %vm1088_vm2, %v4941_v59, %v1096_v45 }
  0x63   : > { %5772 = vmatmul.mubr.msk.bf16.gmra.mrb[4].mxu0 %vm286_vm1, %v736_v23  ;;  %v4942_v23 = vld [vmem:[%s6696_s24 + $0x1c1] sm:$0xff] }
  0x64   : > { %5777 = vmatprep.mubr.msk.bf16.mxu0 %vm286_vm1, %v860_v36  ;;  %v4943_v36 = vld [vmem:[%s6696_s24 + $0x1d1] sm:$0xff]  ;;  %v1097_v41 = vmul.f32 0.2, %v4942_v23  ;;  %vm1089_vm3 = vcmp.ge.f32.partialorder %v4942_v23, 0.0 }
  0x65   : > { %v1098_v10 = vmul.f32 0.2, %v4943_v36  ;;  %vm1090_vm4 = vcmp.ge.f32.partialorder %v4943_v36, 0.0 }
  0x6b   : > { %5778 = vmatmul.mubr.msk.bf16.vlgmr.msra.gmra.mrb[0].mxu0 %vm286_vm1, %v861_v34 }
  0x6c   : > { %5786 = vmatpush3.bf16.msra.mxu0 %v6858_v6  ;;  %5781 = vmatprep.mubr.msk.bf16.mxu0 %vm286_vm1, %v862_v27  ;;  %v7141_v6 = vsel %vm963_vm9, %v6964_v54, %v971_v3  ;;  %v4944_v27 = vld [vmem:[%s6696_s24 + $0x1e1] sm:$0xff]  ;;  %v7153_v3 = vsel %vm964_vm10, %v7021_v46, %v972_v9  ;;  %v4945_v54 = vld [vmem:[%s6696_s24 + $0x1f1] sm:$0xff] }
  0x6d   : > { %6492 = vmatprep.subr.msk.bf16.mxu0 %vm299_vm0, %v6833_v56  ;;  %v986_v34 = vpack.c.bf16 %v7141_v6, %v978_v24  ;;  %v7159_v56 = vsel %vm965_vm11, %v7027_v35, %v973_v22  ;;  %v1099_v9 = vmul.f32 0.2, %v4944_v27  ;;  %v7175_v22 = vsel %vm967_vm13, %v7037_v26, %v975_v58  ;;  %v4946_v35 = vld [vmem:[%s6696_s24 + $0x201] sm:$0xff] }
  0x6e   : > { %v987_v47 = vpack.c.bf16 %v7159_v56, %v7153_v3  ;;  %v988_v32 = vpack.c.bf16 %v7175_v22, %v7164_v38  ;;  %vm1091_vm5 = vcmp.ge.f32.partialorder %v4944_v27, 0.0  ;;  %vm1092_vm6 = vcmp.ge.f32.partialorder %v4945_v54, 0.0  ;;  %v4948_v24 = vld [vmem:[%s6696_s24 + $0x221] sm:$0xff] }
  0x6f   : > { %vm1093_vm7 = vcmp.ge.f32.partialorder %v4946_v35, 0.0  ;;  %v7188_v26 = vsel %vm968_vm14, %v7072_v14, %v976_v30  ;;  %v1100_v58 = vmul.f32 0.2, %v4945_v54  ;;  %v1101_v46 = vmul.f32 0.2, %v4946_v35 }
  0x70   : > { %v2000_v20 = vpack.c.bf16 %v7188_v26, %v7175_v22  ;;  %v1103_v30 = vmul.f32 0.2, %v4948_v24  ;;  %vm1095_vm9 = vcmp.ge.f32.partialorder %v4948_v24, 0.0  ;;  %v7211_v45 = vsel %vm1091_vm5, %v4944_v27, %v1099_v9  ;;  %v6516_v22 = vld [vmem:[%s8055_s2 + $0x250] sm:$0xff]  }
  0x71   : > { %v7214_v59 = vsel %vm1092_vm6, %v4945_v54, %v1100_v58  ;;  %v6515_v58 = vld [vmem:[%s8055_s2 + $0x50] sm:$0xff]  }
  0x72   : > { %v7239_v9 = vsel %vm1095_vm9, %v4948_v24, %v1103_v30  ;;  %v4988_v30 = vld [vmem:[%s8054_s1 + $0x14] sm:$0x3] }
  0x73   : > { %5782 = vmatmul.mubr.msk.bf16.gmra.mrb[4].mxu0 %vm286_vm1, %v863_v42  ;;  %v7193_v42 = vsel %vm969_vm15, %v4935_v4, %v977_v60  ;;  %v7207_v60 = vsel %vm1090_vm4, %v4943_v36, %v1098_v10  ;;  %v4975_v10 = vld [vmem:[%s8054_s1 + $0x12] sm:$0x3] }
  0x74   : > { %5787 = vmatprep.mubr.msk.bf16.mxu0 %vm286_vm1, %v986_v34  ;;  %v4947_v34 = vld [vmem:[%s6696_s24 + $0x211] sm:$0xff]  ;;  %v1113_v36 = vpack.c.bf16 %v7211_v45, %v7207_v60  ;;  %v1385_v24 = vsel %vm299_vm0, %v4975_v10, 0 }
  0x75   : > { %v1102_v14 = vmul.f32 0.2, %v4947_v34  ;;  %vm1094_vm8 = vcmp.ge.f32.partialorder %v4947_v34, 0.0 }
  0x77   : > { %v7231_v27 = vsel %vm1094_vm8, %v4947_v34, %v1102_v14  ;;  %v8078_v34 = vpack.c.bf16 %v6747_v48, %v6738_v39  ;;  %v6517_v39 = vld [vmem:[%s8055_s2 + $0x58] sm:$0xff]   ;;  %v8079_v48 = vpack.c.bf16 %v6751_v50, %v6749_v49  ;;  %v4974_v49 = vld [vmem:[%s6696_s24 + $0x110] sm:$0xff]  ;;  %v8081_v50 = vld [vmem:[#allocation3_spill] sm:$0xff] }
  0x78   : > { %vm1349_vm11 = vcmp.ge.f32.partialorder %v4974_v49, 0.0 }
  0x7b   : > { %5788 = vmatmul.mubr.msk.bf16.vlgmr.msra.gmra.mrb[0].mxu0 %vm286_vm1, %v987_v47  ;;  %v7199_v47 = vsel %vm1089_vm3, %v4942_v23, %v1097_v41  ;;  %v7222_v23 = vsel %vm1093_vm7, %v4946_v35, %v1101_v46  ;;  %v1115_v46 = vpack.c.bf16 %v7239_v9, %v7231_v27  ;;  %v4961_v35 = vld [vmem:[%s6696_s24 + $0x80] sm:$0xff] }
  0x7c   : > { %5796 = vmatpush3.bf16.msra.mxu0 %v6871_v11  ;;  %5791 = vmatprep.mubr.msk.bf16.mxu0 %vm286_vm1, %v988_v32  ;;  %v989_v11 = vpack.c.bf16 %v7193_v42, %v7188_v26  ;;  %v1112_v4 = vpack.c.bf16 %v7199_v47, %v1104_v8  ;;  %v2125_v8 = vpack.c.bf16 %v7214_v59, %v7211_v45  ;;  %v6511_v32 = vld [vmem:[%s8055_s2 + $0x40] sm:$0xff]   ;;  %vm1222_vm10 = vcmp.ge.f32.partialorder %v4961_v35, 0.0  ;;  %v6522_v45 = vld [vmem:[%s8055_s2 + $0x268] sm:$0xff]  }
  0x7d   : > { %6493 = vmatprep.subr.msk.bf16.mxu0 %vm299_vm0, %v6838_v57  ;;  %v2124_v57 = vpack.c.bf16 %v7207_v60, %v7199_v47  ;;  %v1114_v41 = vpack.c.bf16 %v7222_v23, %v7214_v59  ;;  %v2126_v54 = vpack.c.bf16 %v7231_v27, %v7222_v23  ;;  %5885 = vmatprep.subr.bf16.mxu1 %v6511_v32  ;;  %v1230_v14 = vmul.f32 0.2, %v4961_v35  ;;  %v6520_v47 = vld [vmem:[%s8055_s2 + $0x260] sm:$0xff]   ;;  %v6521_v60 = vld [vmem:[%s8055_s2 + $0x68] sm:$0xff]   ;;  %v6525_v23 = vld [vmem:[%s8055_s2 + $0x78] sm:$0xff]  }
  0x7e   : > { %5886 = vmatpush3.bf16.msra.mxu1 %v6511_v32  ;;  %v6647_v59 = vmov 0.0   ;;  %v6526_v27 = vld [vmem:[%s8055_s2 + $0x278] sm:$0xff]  }
  0x7f   : > { %2232 = vst [vmem:[#allocation2 + $0x30] sm:$0xff] %v6647_v59  ;;  %2233 = vst [vmem:[#allocation2 + $0x38] sm:$0x3] %v6647_v59 }
  0x80   : > { %2226 = vst [vmem:[#allocation2] sm:$0xff] %v6647_v59  ;;  %2227 = vst [vmem:[#allocation2 + $0x8] sm:$0x3] %v6647_v59 }
  0x81   : > { %2228 = vst [vmem:[#allocation2 + $0x10] sm:$0xff] %v6647_v59  ;;  %2229 = vst [vmem:[#allocation2 + $0x18] sm:$0x3] %v6647_v59 }
  0x82   : > { %2230 = vst [vmem:[#allocation2 + $0x20] sm:$0xff] %v6647_v59  ;;  %2231 = vst [vmem:[#allocation2 + $0x28] sm:$0x3] %v6647_v59 }
  0x83   : > { %5792 = vmatmul.mubr.msk.bf16.gmra.mrb[4].mxu0 %vm286_vm1, %v989_v11  ;;  %v8080_v11 = vpack.c.bf16 %v6769_v0, %v6753_v51  ;;  %v8082_v51 = vpack.c.bf16 %v6710_v19, %v8081_v50  ;;  %v1357_v0 = vmul.f32 0.2, %v4974_v49  ;;  %2234 = vst [vmem:[#allocation2 + $0x40] sm:$0xff] %v6647_v59  ;;  %2235 = vst [vmem:[#allocation2 + $0x48] sm:$0x3] %v6647_v59 }
  0x84   : > { %5797 = vmatprep.mubr.msk.bf16.mxu0 %vm286_vm1, %v1112_v4  ;;  %v1238_v4 = vsel %vm1222_vm10, %v4961_v35, %v1230_v14  ;;  %v8084_v35 = vld [vmem:[#allocation4_spill] sm:$0xff]  ;;  %2236 = vst [vmem:[#allocation2 + $0x50] sm:$0xff] %v6647_v59  ;;  %2237 = vst [vmem:[#allocation2 + $0x58] sm:$0x3] %v6647_v59 }
  0x85   : > { %v8085_v19 = vpack.c.bf16 %v6730_v33, %v8084_v35  ;;  %v1365_v32 = vsel %vm1349_vm11, %v4974_v49, %v1357_v0  ;;  %v5014_v33 = vld [vmem:[%s8054_s1 + $0x18] sm:$0x3]  ;;  %v8096_v49 = vld [vmem:[#allocation9_spill] sm:$0xff]  ;;  %2238 = vst [vmem:[#allocation2 + $0x60] sm:$0xff] %v6647_v59  ;;  %2239 = vst [vmem:[#allocation2 + $0x68] sm:$0x3] %v6647_v59 }
  0x86   : > { %2240 = vst [vmem:[#allocation2 + $0x70] sm:$0xff] %v6647_v59  ;;  %2241 = vst [vmem:[#allocation2 + $0x78] sm:$0x3] %v6647_v59 }
  0x87   : > { %2242 = vst [vmem:[#allocation2 + $0x80] sm:$0xff] %v6647_v59  ;;  %2243 = vst [vmem:[#allocation2 + $0x88] sm:$0x3] %v6647_v59 }
  0x88   : > { %2244 = vst [vmem:[#allocation2 + $0x90] sm:$0xff] %v6647_v59  ;;  %2245 = vst [vmem:[#allocation2 + $0x98] sm:$0x3] %v6647_v59 }
  0x8b   : > { %5798 = vmatmul.mubr.msk.bf16.vlgmr.msra.gmra.mrb[0].mxu0 %vm286_vm1, %v1113_v36  ;;  %v6519_v36 = vld [vmem:[%s8055_s2 + $0x60] sm:$0xff]  }
  0x8c   : > { %5806 = vmatpush3.bf16.msra.mxu0 %v6875_v12  ;;  %5801 = vmatprep.mubr.msk.bf16.mxu0 %vm286_vm1, %v1114_v41  ;;  %v6513_v12 = vld [vmem:[%s8055_s2 + $0x48] sm:$0xff]   ;;  %v1242_v41 = vpack.c.bf16 %v1238_v4, %v6771_v1  ;;  %v5001_v1 = vld [vmem:[%s8054_s1 + $0x16] sm:$0x3]  ;;  %v8092_v4 = vpack.c.bf16 %v6845_v62, %v6814_v44 }
  0x8d   : > { %6494 = vmatprep.subr.msk.bf16.mxu0 %vm299_vm0, %v4975_v10  ;;  %5887 = vmatprep.subr.bf16.mxu1 %v6513_v12  ;;  %v1511_v10 = vsel %vm299_vm0, %v4988_v30, 0  ;;  %v1637_v14 = vsel %vm299_vm0, %v5001_v1, 0 }
  0x8e   : > { %5888 = vmatpush3.bf16.msra.mxu1 %v6513_v12  ;;  %v8086_v12 = vld [vmem:[#allocation5_spill] sm:$0xff] }
  0x8f   : > { %5889 = vmatprep.subr.bf16.mxu1 %v6515_v58 }
  0x92   : > { %5890 = vmatpush3.bf16.msra.mxu1 %v6515_v58 }
  0x93   : > { %5802 = vmatmul.mubr.msk.bf16.gmra.mrb[4].mxu0 %vm286_vm1, %v1115_v46  ;;  %5891 = vmatprep.subr.bf16.mxu1 %v6517_v39  ;;  %v8083_v46 = vpack.c.bf16 %v6719_v28, %v6713_v21  ;;  %v4987_v21 = vld [vmem:[%s6696_s24 + $0x81] sm:$0xff] }
  0x94   : > { %5807 = vmatprep.mubr.msk.bf16.mxu0 %vm286_vm1, %v8078_v34  ;;  %v1369_v34 = vpack.c.bf16 %v1365_v32, %v8086_v12  ;;  %v1483_v28 = vmul.f32 0.2, %v4987_v21  ;;  %vm1475_vm12 = vcmp.ge.f32.partialorder %v4987_v21, 0.0  ;;  %v8103_v12 = vpack.c.bf16 %v7080_v52, %v7063_v5 }
  0x96   : > { %5892 = vmatpush3.bf16.msra.mxu1 %v6517_v39  ;;  %v1491_v39 = vsel %vm1475_vm12, %v4987_v21, %v1483_v28  ;;  %v8106_v21 = vpack.c.bf16 %v7153_v3, %v7141_v6  ;;  %v5052_v3 = vld [vmem:[%s6696_s24 + $0x231] sm:$0xff] }
  0x97   : > { %5893 = vmatprep.subr.bf16.mxu1 %v6519_v36 }
  0x9a   : > { %5894 = vmatpush3.bf16.msra.mxu1 %v6519_v36  ;;  %v1764_v36 = vsel %vm299_vm0, %v5014_v33, 0 }
  0x9b   : > { %5808 = vmatmul.mubr.msk.bf16.vlgmr.msra.gmra.mrb[0].mxu0 %vm286_vm1, %v8079_v48  ;;  %v8091_v48 = vld [vmem:[#allocation7_spill] sm:$0xff]  ;;  %5895 = vmatprep.subr.bf16.mxu1 %v6521_v60 }
  0x9c   : > { %5816 = vmatpush3.bf16.msra.mxu0 %v1385_v24  ;;  %5811 = vmatprep.mubr.msk.bf16.mxu0 %vm286_vm1, %v8080_v11  ;;  %v8087_v24 = vld [vmem:[#allocation6_spill] sm:$0xff]  ;;  %v1495_v11 = vpack.c.bf16 %v1491_v39, %v8091_v48 }
  0x9d   : > { %6495 = vmatprep.subr.msk.bf16.mxu0 %vm299_vm0, %v4988_v30  ;;  %v8088_v58 = vpack.c.bf16 %v6785_v15, %v8087_v24  ;;  %v8089_v30 = vpack.c.bf16 %v6789_v17, %v6787_v16  ;;  %v8090_v15 = vpack.c.bf16 %v6809_v40, %v6791_v18  ;;  %v5000_v16 = vld [vmem:[%s6696_s24 + $0x111] sm:$0xff]  ;;  %v5027_v18 = vld [vmem:[%s8054_s1 + $0x1a] sm:$0x3]  ;;  %v8093_v40 = vpack.c.bf16 %v6861_v7, %v6848_v63  ;;  %v5013_v63 = vld [vmem:[%s6696_s24 + $0x1a0] sm:$0xff] }
  0x9e   : > { %v1609_v17 = vmul.f32 0.2, %v5000_v16  ;;  %vm1601_vm13 = vcmp.ge.f32.partialorder %v5000_v16, 0.0  ;;  %v1736_v7 = vmul.f32 0.2, %v5013_v63  ;;  %vm1728_vm14 = vcmp.ge.f32.partialorder %v5013_v63, 0.0  ;;  %5896 = vmatpush3.bf16.msra.mxu1 %v6521_v60 }
  0xa0   : > { %v1617_v62 = vsel %vm1601_vm13, %v5000_v16, %v1609_v17 }
  0xa1   : > { %v1621_v50 = vpack.c.bf16 %v1617_v62, %v8096_v49 }
  0xa3   : > { %5812 = vmatmul.mubr.msk.bf16.gmra.mrb[4].mxu0 %vm286_vm1, %v1242_v41  ;;  %v8094_v41 = vld [vmem:[#allocation8_spill] sm:$0xff] }
  0xa4   : > { %5817 = vmatprep.mubr.msk.bf16.mxu0 %vm286_vm1, %v8082_v51  ;;  %v8095_v44 = vpack.c.bf16 %v6903_v37, %v8094_v41  ;;  %v8097_v51 = vld [vmem:[#allocation10_spill] sm:$0xff]  ;;  %v6529_v41 = vld [vmem:[%s8055_s2 + $0x8] sm:$0xff]  }
  0xa5   : > { %v8098_v0 = vpack.c.bf16 %v6978_v29, %v8097_v51  ;;  %v5040_v37 = vld [vmem:[%s8054_s1 + $0x1c] sm:$0x3]  ;;  %v8102_v29 = vpack.c.bf16 %v7044_v55, %v7018_v25  ;;  %v5053_v25 = vld [vmem:[%s8054_s1 + $0x1e] sm:$0x3]  ;;  %v8105_v55 = vpack.c.bf16 %v7123_v61, %v7104_v53  ;;  %v6512_v53 = vld [vmem:[%s8055_s2 + $0x240] sm:$0xff]  }
  0xa6   : > { %v2143_v28 = vsel %vm299_vm0, %v5053_v25, 0 }
  0xab   : > { %5818 = vmatmul.mubr.msk.bf16.vlgmr.msra.gmra.mrb[0].mxu0 %vm286_vm1, %v8083_v46  ;;  %v8100_v46 = vld [vmem:[#allocation11_spill] sm:$0xff] }
  0xac   : > { %5826 = vmatpush3.bf16.msra.mxu0 %v1511_v10  ;;  %5821 = vmatprep.mubr.msk.bf16.mxu0 %vm286_vm1, %v8085_v19  ;;  %v1891_v10 = vsel %vm299_vm0, %v5027_v18, 0  ;;  %v1744_v19 = vsel %vm1728_vm14, %v5013_v63, %v1736_v7 }
  0xad   : > { %6496 = vmatprep.subr.msk.bf16.mxu0 %vm299_vm0, %v5001_v1  ;;  %v8099_v1 = vld [vmem:[#allocation12_spill] sm:$0xff]  ;;  %v1748_v32 = vpack.c.bf16 %v1744_v19, %v7052_v13  ;;  %v8104_v13 = vpack.c.bf16 %v7093_v2, %v7088_v43 }
  0xae   : > { %v8101_v35 = vpack.c.bf16 %v8099_v1, %v8100_v46  ;;  %v5039_v43 = vld [vmem:[%s6696_s24 + $0x1a1] sm:$0xff] }
  0xaf   : > { %v1989_v2 = vmul.f32 0.2, %v5039_v43  ;;  %vm1981_vm2 = vcmp.ge.f32.partialorder %v5039_v43, 0.0 }
  0xb1   : > { %v1997_v61 = vsel %vm1981_vm2, %v5039_v43, %v1989_v2 }
  0xb2   : > { %v2001_v6 = vpack.c.bf16 %v1997_v61, %v7193_v42  ;;  %v6518_v42 = vld [vmem:[%s8055_s2 + $0x258] sm:$0xff]  }
  0xb3   : > { %5822 = vmatmul.mubr.msk.bf16.gmra.mrb[4].mxu0 %vm286_vm1, %v1369_v34  ;;  %v5026_v34 = vld [vmem:[%s6696_s24 + $0x230] sm:$0xff] }
  0xb4   : > { %5827 = vmatprep.mubr.msk.bf16.mxu0 %vm286_vm1, %v8088_v58  ;;  %v1863_v24 = vmul.f32 0.2, %v5026_v34  ;;  %v2017_v58 = vsel %vm299_vm0, %v5040_v37, 0  ;;  %vm1855_vm15 = vcmp.ge.f32.partialorder %v5026_v34, 0.0 }
  0xb6   : > { %v1871_v5 = vsel %vm1855_vm15, %v5026_v34, %v1863_v24 }
  0xb7   : > { %v1875_v52 = vpack.c.bf16 %v1871_v5, %v7130_v31  ;;  %v8107_v31 = vpack.c.bf16 %v7164_v38, %v7159_v56  ;;  %v2115_v56 = vmul.f32 0.2, %v5052_v3  ;;  %v6514_v38 = vld [vmem:[%s8055_s2 + $0x248] sm:$0xff]  }
  0xbb   : > { %5828 = vmatmul.mubr.msk.bf16.vlgmr.msra.gmra.mrb[0].mxu0 %vm286_vm1, %v8089_v30 }
  0xbc   : > { %5836 = vmatpush3.bf16.msra.mxu0 %v1637_v14  ;;  %5831 = vmatprep.mubr.msk.bf16.mxu0 %vm286_vm1, %v8090_v15  ;;  %v2283_v15 = vld [vmem:[#allocation2 + $0x1] sm:$0xff] }
  0xbd   : > { %6497 = vmatprep.subr.msk.bf16.mxu0 %vm299_vm0, %v5014_v33 }
  0xc3   : > { %5832 = vmatmul.mubr.msk.bf16.gmra.mrb[4].mxu0 %vm286_vm1, %v1495_v11 }
  0xc4   : > { %5837 = vmatprep.mubr.msk.bf16.mxu0 %vm286_vm1, %v8092_v4 }
  0xcb   : > { %5838 = vmatmul.mubr.msk.bf16.vlgmr.msra.gmra.mrb[0].mxu0 %vm286_vm1, %v8093_v40 }
  0xcc   : > { %5846 = vmatpush3.bf16.msra.mxu0 %v1764_v36  ;;  %5841 = vmatprep.mubr.msk.bf16.mxu0 %vm286_vm1, %v8095_v44  ;;  %v6530_v44 = vld [vmem:[%s8055_s2 + $0x208] sm:$0xff]  }
  0xcd   : > { %6498 = vmatprep.subr.msk.bf16.mxu0 %vm299_vm0, %v5027_v18 }
  0xd3   : > { %5842 = vmatmul.mubr.msk.bf16.gmra.mrb[4].mxu0 %vm286_vm1, %v1621_v50 }
  0xd4   : > { %5847 = vmatprep.mubr.msk.bf16.mxu0 %vm286_vm1, %v8098_v0 }
  0xdb   : > { %5848 = vmatmul.mubr.msk.bf16.vlgmr.msra.gmra.mrb[0].mxu0 %vm286_vm1, %v8101_v35 }
  0xdc   : > { %5856 = vmatpush3.bf16.msra.mxu0 %v1891_v10  ;;  %5851 = vmatprep.mubr.msk.bf16.mxu0 %vm286_vm1, %v8102_v29  ;;  %v6531_v10 = vld [vmem:[%s8055_s2 + $0x10] sm:$0xff]  }
  0xdd   : > { %6499 = vmatprep.subr.msk.bf16.mxu0 %vm299_vm0, %v5040_v37  ;;  %v6532_v37 = vld [vmem:[%s8055_s2 + $0x210] sm:$0xff]  }
  0xe3   : > { %5852 = vmatmul.mubr.msk.bf16.gmra.mrb[4].mxu0 %vm286_vm1, %v1748_v32 }
  0xe4   : > { %5857 = vmatprep.mubr.msk.bf16.mxu0 %vm286_vm1, %v8103_v12 }
  0xeb   : > { %5858 = vmatmul.mubr.msk.bf16.vlgmr.msra.gmra.mrb[0].mxu0 %vm286_vm1, %v8104_v13 }
  0xec   : > { %5866 = vmatpush3.bf16.msra.mxu0 %v2017_v58  ;;  %5861 = vmatprep.mubr.msk.bf16.mxu0 %vm286_vm1, %v8105_v55  ;;  %v6533_v58 = vld [vmem:[%s8055_s2 + $0x18] sm:$0xff]  }
  0xed   : > { %6500 = vmatprep.subr.msk.bf16.mxu0 %vm299_vm0, %v5053_v25  ;;  %vm2107_vm0 = vcmp.ge.f32.partialorder %v5052_v3, 0.0 }
  0xf3   : > { %5862 = vmatmul.mubr.msk.bf16.gmra.mrb[4].mxu0 %vm286_vm1, %v1875_v52  ;;  %v6534_v52 = vld [vmem:[%s8055_s2 + $0x218] sm:$0xff]  }
  0xf4   : > { %5867 = vmatprep.mubr.msk.bf16.mxu0 %vm286_vm1, %v8106_v21 }
  0xfb   : > { %5868 = vmatmul.mubr.msk.bf16.vlgmr.msra.gmra.mrb[0].mxu0 %vm286_vm1, %v8107_v31  ;;  %v6535_v31 = vld [vmem:[%s8055_s2 + $0x20] sm:$0xff]  }
  0xfc   : > { %5876 = vmatpush3.bf16.msra.mxu0 %v2143_v28  ;;  %5871 = vmatprep.mubr.msk.bf16.mxu0 %vm286_vm1, %v2000_v20  ;;  %v2123_v20 = vsel %vm2107_vm0, %v5052_v3, %v2115_v56  ;;  %v6536_v3 = vld [vmem:[%s8055_s2 + $0x220] sm:$0xff]  }
  0xfd   : > { %6077 = vmatprep.subr.bf16.mxu0 %v6512_v53  ;;  %v2127_v26 = vpack.c.bf16 %v2123_v20, %v7239_v9  ;;  %v6528_v9 = vld [vmem:[%s8055_s2 + $0x200] sm:$0xff]   ;;  %v7574_v20 = vld [vmem:[#allocation2 + $0x91] sm:$0xff] }
 0x103   : > { %5872 = vmatmul.mubr.msk.bf16.gmra.mrb[4].mxu0 %vm286_vm1, %v2001_v6 }
 0x104   : > { %5877 = vmatprep.mubr.msk.bf16.mxu0 %vm286_vm1, %v2124_v57  ;;  %v6523_v57 = vld [vmem:[%s8055_s2 + $0x70] sm:$0xff]  }
 0x105   : > { %5897 = vmatprep.subr.bf16.mxu1 %v6523_v57 }
 0x106   : > { %5898 = vmatpush3.bf16.msra.mxu1 %v6523_v57 }
 0x107   : > { %5899 = vmatprep.subr.bf16.mxu1 %v6525_v23 }
 0x10a   : > { %5900 = vmatpush3.bf16.msra.mxu1 %v6525_v23  ;;  %v6538_v23 = vld [vmem:[%s8055_s2 + $0x228] sm:$0xff]  }
 0x10b   : > { %5878 = vmatmul.mubr.msk.bf16.vlgmr.msra.gmra.mrb[0].mxu0 %vm286_vm1, %v2125_v8  ;;  %v6524_v8 = vld [vmem:[%s8055_s2 + $0x270] sm:$0xff]  }
 0x10c   : > { %5881 = vmatprep.mubr.msk.bf16.mxu0 %vm286_vm1, %v2126_v54  ;;  %6078 = vmatpush3.bf16.msra.mxu0 %v6512_v53  ;;  %v6527_v54 = vld [vmem:[%s8055_s2] sm:$0xff]  }
 0x10d   : > { %6079 = vmatprep.subr.bf16.mxu0 %v6514_v38  ;;  %5909 = vmatprep.subr.bf16.mxu1 %v6527_v54 }
 0x110   : > { %6080 = vmatpush3.bf16.msra.mxu0 %v6514_v38 }
 0x111   : > { %6081 = vmatprep.subr.bf16.mxu0 %v6516_v22 }
 0x113   : > { %5882 = vmatmul.mubr.msk.bf16.gmra.mrb[4].mxu0 %vm286_vm1, %v2127_v26 }
 0x114   : > { %6082 = vmatpush3.bf16.msra.mxu0 %v6516_v22 }
 0x115   : > { %6083 = vmatprep.subr.bf16.mxu0 %v6518_v42 }
 0x118   : > { %6084 = vmatpush3.bf16.msra.mxu0 %v6518_v42  ;;  %v6537_v42 = vld [vmem:[%s8055_s2 + $0x28] sm:$0xff]  }
 0x119   : > { %6085 = vmatprep.subr.bf16.mxu0 %v6520_v47 }
 0x11c   : > { %6086 = vmatpush3.bf16.msra.mxu0 %v6520_v47 }
 0x11d   : > { %6087 = vmatprep.subr.bf16.mxu0 %v6522_v45 }
 0x120   : > { %6088 = vmatpush3.bf16.msra.mxu0 %v6522_v45 }
 0x121   : > { %6089 = vmatprep.subr.bf16.mxu0 %v6524_v8 }
 0x124   : > { %6090 = vmatpush3.bf16.msra.mxu0 %v6524_v8 }
 0x125   : > { %6091 = vmatprep.subr.bf16.mxu0 %v6526_v27 }
 0x128   : > { %6092 = vmatpush3.bf16.msra.mxu0 %v6526_v27  ;;  %v6539_v27 = vld [vmem:[%s8055_s2 + $0x30] sm:$0xff]  }
 0x129   : > { %6101 = vmatprep.subr.bf16.mxu0 %v6528_v9 }
 0x1de   : > { %v5879_v14 = vpop.f32.mrb[0].mxu0 }
 0x1df   : > { %v2220_v33 = vmax.f32 %v5879_v14, 0.0  ;;  %v2179_v30 = vpop.f32.mrb[1].mxu0  ;;  %v6542_v14 = vld [vmem:[%s8055_s2 + $0x238] sm:$0xff]  }
 0x1e0   : > { %v2218_v39 = vmax.f32 %v2179_v30, 0.0  ;;  %v5880_v48 = vpop.f32.mrb[2].mxu0 }
 0x1e1   : > { %2249 = vst [vmem:[#allocation2 + $0x31] sm:$0xff] %v2220_v33  ;;  %v2221_v11 = vmax.f32 %v5880_v48, 0.0  ;;  %v2182_v4 = vpop.f32.mrb[3].mxu0 }
 0x1e2   : > { %2247 = vst [vmem:[#allocation2 + $0x11] sm:$0xff] %v2218_v39  ;;  %v7470_v16 = vmax.f32 %v2182_v4, 0.0  ;;  %v7472_v17 = vpack.c.bf16 %v2218_v39, %v2283_v15  ;;  %v6544_v15 = vld [vmem:[%s8055_s2 + $0x280] sm:$0xff]  }
 0x1e3   : > { %2250 = vst [vmem:[#allocation2 + $0x41] sm:$0xff] %v2221_v11  ;;  %v7474_v36 = vpack.c.bf16 %v2221_v11, %v2220_v33 }
 0x1e4   : > { %2248 = vst [vmem:[#allocation2 + $0x21] sm:$0xff] %v7470_v16  ;;  %5901 = vmatprep.mubr.bf16.mxu1 %v7472_v17  ;;  %v7479_v18 = vpack.c.bf16 %v2220_v33, %v7470_v16  ;;  %v7482_v40 = vpack.c.bf16 %v7470_v16, %v2218_v39  ;;  %v6543_v33 = vld [vmem:[%s8055_s2 + $0x80] sm:$0xff]  }
 0x1e6   : > { %v5883_v62 = vpop.f32.mrb[4].mxu0  ;;  %5902 = vmatmul.mubr.bf16.vlgmr.msra.gmra.mrb[0].mxu1 %v7479_v18  ;;  %6093 = vmatprep.mubr.bf16.mxu0 %v7482_v40 }
 0x1e7   : > { %v2224_v49 = vmax.f32 %v5883_v62, 0.0  ;;  %v2195_v50 = vpop.f32.mrb[5].mxu0  ;;  %5910 = vmatpush3.bf16.msra.mxu1 %v6527_v54  ;;  %6094 = vmatmul.mubr.bf16.vlgmr.msra.gmra.mrb[8].mxu0 %v7474_v36  ;;  %v6540_v54 = vld [vmem:[%s8055_s2 + $0x230] sm:$0xff]  }
 0x1e8   : > { %v7493_v51 = vmax.f32 %v2195_v50, 0.0  ;;  %v5884_v0 = vpop.f32.mrb[6].mxu0  ;;  %6102 = vmatpush3.bf16.msra.mxu0 %v6528_v9  ;;  %5911 = vmatprep.subr.bf16.mxu1 %v6529_v41  ;;  %v7536_v5 = vld [vmem:[#allocation2 + $0x32] sm:$0xff] }
 0x1e9   : > { %2253 = vst [vmem:[#allocation2 + $0x71] sm:$0xff] %v2224_v49  ;;  %v7495_v63 = vmax.f32 %v5884_v0, 0.0  ;;  %v2198_v7 = vpop.f32.mrb[7].mxu0  ;;  %6103 = vmatprep.subr.bf16.mxu0 %v6530_v44  ;;  %v2256_v35 = vld [vmem:[#allocation2 + $0x10] sm:$0xff]  ;;  %v6541_v9 = vld [vmem:[%s8055_s2 + $0x38] sm:$0xff]  }
 0x1ea   : > { %2251 = vst [vmem:[#allocation2 + $0x51] sm:$0xff] %v7493_v51  ;;  %v7504_v1 = vmax.f32 %v2198_v7, 0.0  ;;  %v7507_v46 = vpack.c.bf16 %v7493_v51, %v2221_v11  ;;  %v7515_v32 = vld [vmem:[#allocation2 + $0x42] sm:$0xff]  ;;  %v2263_v13 = vpack.c.bf16 %v2256_v35, %v6647_v59  ;;  %v7534_v55 = vld [vmem:[#allocation2 + $0x12] sm:$0xff] }
 0x1eb   : > { %2254 = vst [vmem:[#allocation2 + $0x81] sm:$0xff] %v7495_v63  ;;  %5912 = vmatpush3.bf16.msra.mxu1 %v6529_v41  ;;  %v7511_v29 = vpack.c.bf16 %v7495_v63, %v2224_v49  ;;  %v7513_v19 = vld [vmem:[#allocation2 + $0x22] sm:$0xff]  ;;  %v7543_v21 = vld [vmem:[#allocation2 + $0x31] sm:$0xff]  ;;  %v7551_v2 = vpack.c.bf16 %v7515_v32, %v7536_v5 }
 0x1ec   : > { %2252 = vst [vmem:[#allocation2 + $0x61] sm:$0xff] %v7504_v1  ;;  %6104 = vmatpush3.bf16.msra.mxu0 %v6530_v44  ;;  %5905 = vmatprep.mubr.bf16.mxu1 %v7507_v46  ;;  %v7520_v12 = vpack.c.bf16 %v2224_v49, %v7504_v1  ;;  %v7524_v34 = vpack.c.bf16 %v7504_v1, %v7493_v51  ;;  %v7526_v24 = vld [vmem:[#allocation2 + $0x20] sm:$0xff]  ;;  %v2258_v39 = vld [vmem:[#allocation2 + $0x30] sm:$0xff]  ;;  %v6545_v41 = vld [vmem:[%s8055_s2 + $0x88] sm:$0xff]  }
 0x1ed   : > { %v7531_v25 = vld [vmem:[#allocation2 + $0x21] sm:$0xff]  ;;  %5913 = vmatprep.subr.bf16.mxu1 %v6531_v10  ;;  %6105 = vmatprep.subr.bf16.mxu0 %v6532_v37  ;;  %v7547_v43 = vpack.c.bf16 %v7513_v19, %v7534_v55  ;;  %v7554_v28 = vpack.c.bf16 %v7526_v24, %v2256_v35  ;;  %v2264_v11 = vpack.c.bf16 %v2258_v39, %v7526_v24  ;;  %v6547_v0 = vld [vmem:[%s8055_s2 + $0x90] sm:$0xff]   ;;  %v6549_v24 = vld [vmem:[%s8055_s2 + $0x98] sm:$0xff]  }
 0x1ee   : > { %5906 = vmatmul.mubr.bf16.gmra.mrb[4].mxu1 %v7520_v12  ;;  %6097 = vmatprep.mubr.bf16.mxu0 %v7524_v34  ;;  %v4433_v53 = vpack.c.bf16 %v7543_v21, %v7531_v25  ;;  %v7563_v61 = vld [vmem:[#allocation2 + $0x41] sm:$0xff]  ;;  %v6548_v7 = vld [vmem:[%s8055_s2 + $0x290] sm:$0xff]  }
 0x1ef   : > { %5914 = vmatpush3.bf16.msra.mxu1 %v6531_v10  ;;  %5925 = vmatprep.mubr.bf16.mxu1 %v2263_v13  ;;  %v2259_v48 = vld [vmem:[#allocation2 + $0x40] sm:$0xff]  ;;  %v6546_v49 = vld [vmem:[%s8055_s2 + $0x288] sm:$0xff]   ;;  %v6550_v13 = vld [vmem:[%s8055_s2 + $0x298] sm:$0xff]  }
 0x1f0   : > { %6098 = vmatmul.mubr.bf16.gmra.mrb[12].mxu0 %v7511_v29  ;;  %5915 = vmatprep.subr.bf16.mxu1 %v6533_v58  ;;  %v7583_v47 = vld [vmem:[#allocation2 + $0x71] sm:$0xff]  ;;  %v3520_v62 = vpack.c.bf16 %v2259_v48, %v2258_v39 }
 0x1f1   : > { %6106 = vmatpush3.bf16.msra.mxu0 %v6532_v37  ;;  %6117 = vmatprep.mubr.bf16.mxu0 %v7554_v28  ;;  %v7565_v6 = vld [vmem:[#allocation2 + $0x51] sm:$0xff] }
 0x1f2   : > { %6107 = vmatprep.subr.bf16.mxu0 %v6534_v52  ;;  %v7570_v56 = vld [vmem:[#allocation2 + $0x81] sm:$0xff]  ;;  %v4434_v38 = vpack.c.bf16 %v7565_v6, %v7563_v61  ;;  %v7576_v22 = vld [vmem:[#allocation2 + $0x52] sm:$0xff] }
 0x1f3   : > { %5916 = vmatpush3.bf16.msra.mxu1 %v6533_v58  ;;  %v7578_v26 = vld [vmem:[#allocation2 + $0x62] sm:$0xff]  ;;  %v4436_v8 = vpack.c.bf16 %v7574_v20, %v7570_v56  ;;  %v2260_v30 = vld [vmem:[#allocation2 + $0x50] sm:$0xff] }
 0x1f4   : > { %5917 = vmatprep.subr.bf16.mxu1 %v6535_v31  ;;  %v7585_v60 = vld [vmem:[#allocation2 + $0x61] sm:$0xff]  ;;  %v7589_v45 = vpack.c.bf16 %v7578_v26, %v7576_v22  ;;  %v7620_v44 = vpack.c.bf16 %v2260_v30, %v2259_v48  ;;  %v2262_v10 = vld [vmem:[#allocation2 + $0x70] sm:$0xff]  ;;  %v6565_v48 = vld [vmem:[%s8055_s2 + $0xd8] sm:$0xff]  }
 0x1f5   : > { %6108 = vmatpush3.bf16.msra.mxu0 %v6534_v52  ;;  %v4435_v57 = vpack.c.bf16 %v7583_v47, %v7585_v60  ;;  %v3516_v4 = vld [vmem:[#allocation2 + $0x60] sm:$0xff]  ;;  %v6564_v39 = vld [vmem:[%s8055_s2 + $0x2d0] sm:$0xff]  }
 0x1f6   : > { %6109 = vmatprep.subr.bf16.mxu0 %v6536_v3  ;;  %v3521_v50 = vpack.c.bf16 %v3516_v4, %v2260_v30  ;;  %v7632_v37 = vld [vmem:[#allocation2 + $0x80] sm:$0xff]  ;;  %v2266_v35 = vpack.c.bf16 %v2262_v10, %v3516_v4  ;;  %v6562_v30 = vld [vmem:[%s8055_s2 + $0x2c8] sm:$0xff]   ;;  %v6566_v4 = vld [vmem:[%s8055_s2 + $0x2d8] sm:$0xff]  }
 0x1f7   : > { %5918 = vmatpush3.bf16.msra.mxu1 %v6535_v31  ;;  %v3522_v58 = vpack.c.bf16 %v7632_v37, %v2262_v10  ;;  %v6551_v52 = vld [vmem:[%s8055_s2 + $0xa0] sm:$0xff]   ;;  %v6577_v10 = vld [vmem:[%s8055_s2 + $0x150] sm:$0xff]  }
 0x1f8   : > { %5919 = vmatprep.subr.bf16.mxu1 %v6537_v42  ;;  %v6552_v31 = vld [vmem:[%s8055_s2 + $0x2a0] sm:$0xff]  }
 0x1f9   : > { %6110 = vmatpush3.bf16.msra.mxu0 %v6536_v3  ;;  %v6553_v3 = vld [vmem:[%s8055_s2 + $0xa8] sm:$0xff]  }
 0x1fa   : > { %6111 = vmatprep.subr.bf16.mxu0 %v6538_v23 }
 0x1fb   : > { %5920 = vmatpush3.bf16.msra.mxu1 %v6537_v42  ;;  %v6555_v42 = vld [vmem:[%s8055_s2 + $0xb0] sm:$0xff]  }
 0x1fc   : > { %5921 = vmatprep.subr.bf16.mxu1 %v6539_v27 }
 0x1fd   : > { %6112 = vmatpush3.bf16.msra.mxu0 %v6538_v23  ;;  %v6556_v23 = vld [vmem:[%s8055_s2 + $0x2b0] sm:$0xff]  }
 0x1fe   : > { %6113 = vmatprep.subr.bf16.mxu0 %v6540_v54 }
 0x1ff   : > { %5922 = vmatpush3.bf16.msra.mxu1 %v6539_v27  ;;  %v6557_v27 = vld [vmem:[%s8055_s2 + $0xb8] sm:$0xff]  }
 0x200   : > { %5923 = vmatprep.subr.bf16.mxu1 %v6541_v9 }
 0x201   : > { %6114 = vmatpush3.bf16.msra.mxu0 %v6540_v54  ;;  %v6558_v54 = vld [vmem:[%s8055_s2 + $0x2b8] sm:$0xff]  }
 0x202   : > { %6115 = vmatprep.subr.bf16.mxu0 %v6542_v14 }
 0x203   : > { %5924 = vmatpush3.bf16.msra.mxu1 %v6541_v9  ;;  %v6559_v9 = vld [vmem:[%s8055_s2 + $0xc0] sm:$0xff]  }
 0x204   : > { %5933 = vmatprep.subr.bf16.mxu1 %v6543_v33 }
 0x205   : > { %6116 = vmatpush3.bf16.msra.mxu0 %v6542_v14  ;;  %v6560_v14 = vld [vmem:[%s8055_s2 + $0x2c0] sm:$0xff]  }
 0x206   : > { %5926 = vmatmul.mubr.bf16.vlgmr.msra.gmra.mrb[0].mxu1 %v2264_v11  ;;  %6125 = vmatprep.subr.bf16.mxu0 %v6544_v15 }
 0x207   : > { %5929 = vmatprep.mubr.bf16.mxu1 %v7620_v44  ;;  %5934 = vmatpush3.bf16.msra.mxu1 %v6543_v33  ;;  %v6561_v33 = vld [vmem:[%s8055_s2 + $0xc8] sm:$0xff]  }
 0x208   : > { %6118 = vmatmul.mubr.bf16.vlgmr.msra.gmra.mrb[8].mxu0 %v3520_v62  ;;  %5935 = vmatprep.subr.bf16.mxu1 %v6545_v41 }
 0x209   : > { %6121 = vmatprep.mubr.bf16.mxu0 %v3521_v50  ;;  %6126 = vmatpush3.bf16.msra.mxu0 %v6544_v15  ;;  %v6563_v15 = vld [vmem:[%s8055_s2 + $0xd0] sm:$0xff]  }
 0x20a   : > { %6127 = vmatprep.subr.bf16.mxu0 %v6546_v49 }
 0x20b   : > { %5936 = vmatpush3.bf16.msra.mxu1 %v6545_v41  ;;  %v6567_v41 = vld [vmem:[%s8055_s2 + $0xe0] sm:$0xff]  }
 0x20c   : > { %5937 = vmatprep.subr.bf16.mxu1 %v6547_v0 }
 0x20d   : > { %6128 = vmatpush3.bf16.msra.mxu0 %v6546_v49  ;;  %v6573_v49 = vld [vmem:[%s8055_s2 + $0xf8] sm:$0xff]  }
 0x20e   : > { %5930 = vmatmul.mubr.bf16.gmra.mrb[4].mxu1 %v2266_v35  ;;  %6129 = vmatprep.subr.bf16.mxu0 %v6548_v7 }
 0x20f   : > { %5938 = vmatpush3.bf16.msra.mxu1 %v6547_v0  ;;  %5949 = vmatprep.mubr.bf16.mxu1 %v7554_v28  ;;  %v6554_v28 = vld [vmem:[%s8055_s2 + $0x2a8] sm:$0xff]   ;;  %v6575_v0 = vld [vmem:[%s8055_s2 + $0x140] sm:$0xff]  }
 0x210   : > { %6122 = vmatmul.mubr.bf16.gmra.mrb[12].mxu0 %v3522_v58  ;;  %5939 = vmatprep.subr.bf16.mxu1 %v6549_v24 }
 0x211   : > { %6130 = vmatpush3.bf16.msra.mxu0 %v6548_v7  ;;  %6141 = vmatprep.mubr.bf16.mxu0 %v2264_v11  ;;  %v3807_v11 = vpack.c.bf16 %v6647_v59, %v7632_v37  ;;  %v6568_v59 = vld [vmem:[%s8055_s2 + $0x2e0] sm:$0xff]   ;;  %v6576_v7 = vld [vmem:[%s8055_s2 + $0x148] sm:$0xff]  }
 0x212   : > { %6131 = vmatprep.subr.bf16.mxu0 %v6550_v13  ;;  %v2911_v37 = vld [vmem:[#allocation2 + $0x2] sm:$0xff] }
 0x213   : > { %5940 = vmatpush3.bf16.msra.mxu1 %v6549_v24  ;;  %v7756_v24 = vpack.c.bf16 %v7536_v5, %v7513_v19  ;;  %v6585_v19 = vld [vmem:[%s8055_s2 + $0x110] sm:$0xff]  }
 0x214   : > { %5941 = vmatprep.subr.bf16.mxu1 %v6551_v52  ;;  %v7770_v5 = vld [vmem:[#allocation2 + $0x72] sm:$0xff] }
 0x215   : > { %6132 = vmatpush3.bf16.msra.mxu0 %v6550_v13  ;;  %v7763_v13 = vpack.c.bf16 %v7576_v22, %v7515_v32  ;;  %v6586_v32 = vld [vmem:[%s8055_s2 + $0x118] sm:$0xff]   ;;  %v6587_v22 = vld [vmem:[%s8055_s2 + $0x120] sm:$0xff]  }
 0x216   : > { %6133 = vmatprep.subr.bf16.mxu0 %v6552_v31 }
 0x217   : > { %5942 = vmatpush3.bf16.msra.mxu1 %v6551_v52  ;;  %v7774_v52 = vpack.c.bf16 %v7770_v5, %v7578_v26  ;;  %v6588_v26 = vld [vmem:[%s8055_s2 + $0x128] sm:$0xff]  }
 0x218   : > { %5943 = vmatprep.subr.bf16.mxu1 %v6553_v3 }
 0x219   : > { %6134 = vmatpush3.bf16.msra.mxu0 %v6552_v31  ;;  %v6589_v31 = vld [vmem:[%s8055_s2 + $0x130] sm:$0xff]  }
 0x21a   : > { %6135 = vmatprep.subr.bf16.mxu0 %v6554_v28 }
 0x21b   : > { %5944 = vmatpush3.bf16.msra.mxu1 %v6553_v3  ;;  %v6591_v3 = vld [vmem:[%s8055_s2 + $0x180] sm:$0xff]  }
 0x21c   : > { %5945 = vmatprep.subr.bf16.mxu1 %v6555_v42 }
 0x21d   : > { %6136 = vmatpush3.bf16.msra.mxu0 %v6554_v28  ;;  %v2891_v28 = vpack.c.bf16 %v7543_v21, %v7470_v16  ;;  %v2893_v16 = vpack.c.bf16 %v7583_v47, %v7504_v1  ;;  %v6596_v1 = vld [vmem:[%s8055_s2 + $0x1a8] sm:$0xff]  }
 0x21e   : > { %6137 = vmatprep.subr.bf16.mxu0 %v6556_v23 }
 0x21f   : > { %5946 = vmatpush3.bf16.msra.mxu1 %v6555_v42  ;;  %v6592_v42 = vld [vmem:[%s8055_s2 + $0x188] sm:$0xff]  }
 0x220   : > { %5947 = vmatprep.subr.bf16.mxu1 %v6557_v27 }
 0x221   : > { %6138 = vmatpush3.bf16.msra.mxu0 %v6556_v23  ;;  %v2892_v23 = vpack.c.bf16 %v7493_v51, %v7563_v61 }
 0x222   : > { %6139 = vmatprep.subr.bf16.mxu0 %v6558_v54 }
 0x223   : > { %5948 = vmatpush3.bf16.msra.mxu1 %v6557_v27  ;;  %v6593_v27 = vld [vmem:[%s8055_s2 + $0x190] sm:$0xff]  }
 0x224   : > { %5957 = vmatprep.subr.bf16.mxu1 %v6559_v9 }
 0x225   : > { %6140 = vmatpush3.bf16.msra.mxu0 %v6558_v54  ;;  %v3166_v54 = vld [vmem:[#allocation2 + $0x11] sm:$0xff] }
 0x226   : > { %5950 = vmatmul.mubr.bf16.vlgmr.msra.gmra.mrb[0].mxu1 %v3520_v62  ;;  %6149 = vmatprep.subr.bf16.mxu0 %v6560_v14  ;;  %v6572_v62 = vld [vmem:[%s8055_s2 + $0x2f0] sm:$0xff]   ;;  %v7812_v51 = vpack.c.bf16 %v7531_v25, %v3166_v54 }
 0x227   : > { %5953 = vmatprep.mubr.bf16.mxu1 %v3521_v50  ;;  %5958 = vmatpush3.bf16.msra.mxu1 %v6559_v9  ;;  %v6574_v50 = vld [vmem:[%s8055_s2 + $0x2f8] sm:$0xff]   ;;  %v6629_v25 = vld [vmem:[%s8055_s2 + $0x3b0] sm:$0xff]  }
 0x228   : > { %6142 = vmatmul.mubr.bf16.vlgmr.msra.gmra.mrb[8].mxu0 %v7620_v44  ;;  %5959 = vmatprep.subr.bf16.mxu1 %v6561_v33  ;;  %v6570_v44 = vld [vmem:[%s8055_s2 + $0x2e8] sm:$0xff]   ;;  %v6594_v9 = vld [vmem:[%s8055_s2 + $0x198] sm:$0xff]  }
 0x229   : > { %6145 = vmatprep.mubr.bf16.mxu0 %v2266_v35  ;;  %6150 = vmatpush3.bf16.msra.mxu0 %v6560_v14  ;;  %v6578_v35 = vld [vmem:[%s8055_s2 + $0x158] sm:$0xff]   ;;  %v6595_v14 = vld [vmem:[%s8055_s2 + $0x1a0] sm:$0xff]  }
 0x22a   : > { %6151 = vmatprep.subr.bf16.mxu0 %v6562_v30 }
 0x22b   : > { %5960 = vmatpush3.bf16.msra.mxu1 %v6561_v33  ;;  %v6597_v33 = vld [vmem:[%s8055_s2 + $0x1b0] sm:$0xff]  }
 0x22c   : > { %5961 = vmatprep.subr.bf16.mxu1 %v6563_v15 }
 0x22d   : > { %6152 = vmatpush3.bf16.msra.mxu0 %v6562_v30  ;;  %v6598_v30 = vld [vmem:[%s8055_s2 + $0x1b8] sm:$0xff]  }
 0x22e   : > { %5954 = vmatmul.mubr.bf16.gmra.mrb[4].mxu1 %v3522_v58  ;;  %6153 = vmatprep.subr.bf16.mxu0 %v6564_v39  ;;  %v6584_v58 = vld [vmem:[%s8055_s2 + $0x108] sm:$0xff]  }
 0x22f   : > { %5962 = vmatpush3.bf16.msra.mxu1 %v6563_v15  ;;  %5973 = vmatprep.mubr.bf16.mxu1 %v7482_v40  ;;  %v6569_v40 = vld [vmem:[%s8055_s2 + $0xe8] sm:$0xff]   ;;  %v6599_v15 = vld [vmem:[%s8055_s2 + $0x1c0] sm:$0xff]  }
 0x230   : > { %6146 = vmatmul.mubr.bf16.gmra.mrb[12].mxu0 %v3807_v11  ;;  %5963 = vmatprep.subr.bf16.mxu1 %v6565_v48  ;;  %v7839_v11 = vpack.c.bf16 %v7585_v60, %v7565_v6 }
 0x231   : > { %6154 = vmatpush3.bf16.msra.mxu0 %v6564_v39  ;;  %6165 = vmatprep.mubr.bf16.mxu0 %v7479_v18  ;;  %v6571_v18 = vld [vmem:[%s8055_s2 + $0xf0] sm:$0xff]   ;;  %v7832_v39 = vpack.c.bf16 %v7563_v61, %v7543_v21 }
 0x232   : > { %6155 = vmatprep.subr.bf16.mxu0 %v6566_v4 }
 0x233   : > { %5964 = vmatpush3.bf16.msra.mxu1 %v6565_v48  ;;  %v6600_v48 = vld [vmem:[%s8055_s2 + $0x1c8] sm:$0xff]  }
 0x234   : > { %5965 = vmatprep.subr.bf16.mxu1 %v6567_v41 }
 0x235   : > { %6156 = vmatpush3.bf16.msra.mxu0 %v6566_v4  ;;  %v6601_v4 = vld [vmem:[%s8055_s2 + $0x1d0] sm:$0xff]  }
 0x236   : > { %6157 = vmatprep.subr.bf16.mxu0 %v6568_v59 }
 0x237   : > { %5966 = vmatpush3.bf16.msra.mxu1 %v6567_v41  ;;  %v7848_v41 = vpack.c.bf16 %v7570_v56, %v7583_v47  ;;  %v6637_v56 = vld [vmem:[%s8055_s2 + $0x3f0] sm:$0xff]  }
 0x238   : > { %5967 = vmatprep.subr.bf16.mxu1 %v6569_v40 }
 0x239   : > { %6158 = vmatpush3.bf16.msra.mxu0 %v6568_v59  ;;  %v6602_v59 = vld [vmem:[%s8055_s2 + $0x1d8] sm:$0xff]  }
 0x23a   : > { %6159 = vmatprep.subr.bf16.mxu0 %v6570_v44 }
 0x23b   : > { %5968 = vmatpush3.bf16.msra.mxu1 %v6569_v40  ;;  %v6603_v40 = vld [vmem:[%s8055_s2 + $0x1e0] sm:$0xff]  }
 0x23c   : > { %5969 = vmatprep.subr.bf16.mxu1 %v6571_v18 }
 0x23d   : > { %6160 = vmatpush3.bf16.msra.mxu0 %v6570_v44  ;;  %v6604_v44 = vld [vmem:[%s8055_s2 + $0x1e8] sm:$0xff]  }
 0x23e   : > { %6161 = vmatprep.subr.bf16.mxu0 %v6572_v62 }
 0x23f   : > { %5970 = vmatpush3.bf16.msra.mxu1 %v6571_v18  ;;  %v6605_v18 = vld [vmem:[%s8055_s2 + $0x1f0] sm:$0xff]  }
 0x240   : > { %5971 = vmatprep.subr.bf16.mxu1 %v6573_v49 }
 0x241   : > { %6162 = vmatpush3.bf16.msra.mxu0 %v6572_v62  ;;  %v6606_v62 = vld [vmem:[%s8055_s2 + $0x1f8] sm:$0xff]  }
 0x242   : > { %6163 = vmatprep.subr.bf16.mxu0 %v6574_v50 }
 0x243   : > { %5972 = vmatpush3.bf16.msra.mxu1 %v6573_v49  ;;  %v6607_v49 = vld [vmem:[%s8055_s2 + $0x340] sm:$0xff]  }
 0x244   : > { %5981 = vmatprep.subr.bf16.mxu1 %v6575_v0 }
 0x245   : > { %6164 = vmatpush3.bf16.msra.mxu0 %v6574_v50  ;;  %v6608_v50 = vld [vmem:[%s8055_s2 + $0x348] sm:$0xff]  }
 0x246   : > { %5974 = vmatmul.mubr.bf16.vlgmr.msra.gmra.mrb[0].mxu1 %v7474_v36  ;;  %v2919_v36 = vpack.c.bf16 %v7534_v55, %v2911_v37  ;;  %v6583_v55 = vld [vmem:[%s8055_s2 + $0x100] sm:$0xff]   ;;  %v6610_v37 = vld [vmem:[%s8055_s2 + $0x358] sm:$0xff]  }
 0x247   : > { %5977 = vmatprep.mubr.bf16.mxu1 %v7524_v34  ;;  %5982 = vmatpush3.bf16.msra.mxu1 %v6575_v0  ;;  %v6580_v34 = vld [vmem:[%s8055_s2 + $0x168] sm:$0xff]   ;;  %v6609_v0 = vld [vmem:[%s8055_s2 + $0x350] sm:$0xff]  }
 0x248   : > { %6166 = vmatmul.mubr.bf16.vlgmr.msra.gmra.mrb[8].mxu0 %v7507_v46  ;;  %5983 = vmatprep.subr.bf16.mxu1 %v6576_v7  ;;  %v3957_v46 = vpack.c.bf16 %v7574_v20, %v7495_v63  ;;  %v6581_v63 = vld [vmem:[%s8055_s2 + $0x170] sm:$0xff]   ;;  %v6638_v20 = vld [vmem:[%s8055_s2 + $0x3f8] sm:$0xff]  }
 0x249   : > { %6169 = vmatprep.mubr.bf16.mxu0 %v7520_v12  ;;  %v6579_v12 = vld [vmem:[%s8055_s2 + $0x160] sm:$0xff]  }
 0x24b   : > { %5984 = vmatpush3.bf16.msra.mxu1 %v6576_v7  ;;  %v7878_v7 = vld [vmem:[#allocation2 + $0x82] sm:$0xff] }
 0x24c   : > { %5985 = vmatprep.subr.bf16.mxu1 %v6577_v10 }
 0x24e   : > { %5978 = vmatmul.mubr.bf16.gmra.mrb[4].mxu1 %v7511_v29  ;;  %v6582_v29 = vld [vmem:[%s8055_s2 + $0x178] sm:$0xff]  }
 0x24f   : > { %5986 = vmatpush3.bf16.msra.mxu1 %v6577_v10  ;;  %5997 = vmatprep.mubr.bf16.mxu1 %v2919_v36  ;;  %v3327_v10 = vpack.c.bf16 %v7878_v7, %v7770_v5  ;;  %v6612_v36 = vld [vmem:[%s8055_s2 + $0x368] sm:$0xff]  }
 0x250   : > { %6170 = vmatmul.mubr.bf16.gmra.mrb[12].mxu0 %v3957_v46  ;;  %5987 = vmatprep.subr.bf16.mxu1 %v6578_v35  ;;  %v6613_v46 = vld [vmem:[%s8055_s2 + $0x370] sm:$0xff]   ;;  %v6624_v5 = vld [vmem:[%s8055_s2 + $0x388] sm:$0xff]  }
 0x253   : > { %5988 = vmatpush3.bf16.msra.mxu1 %v6578_v35  ;;  %v6611_v35 = vld [vmem:[%s8055_s2 + $0x360] sm:$0xff]  }
 0x254   : > { %5989 = vmatprep.subr.bf16.mxu1 %v6579_v12 }
 0x257   : > { %5990 = vmatpush3.bf16.msra.mxu1 %v6579_v12  ;;  %v6615_v12 = vld [vmem:[%s8055_s2 + $0x300] sm:$0xff]  }
 0x258   : > { %5991 = vmatprep.subr.bf16.mxu1 %v6580_v34 }
 0x25b   : > { %5992 = vmatpush3.bf16.msra.mxu1 %v6580_v34  ;;  %v6616_v34 = vld [vmem:[%s8055_s2 + $0x308] sm:$0xff]  }
 0x25c   : > { %5993 = vmatprep.subr.bf16.mxu1 %v6581_v63 }
 0x25f   : > { %5994 = vmatpush3.bf16.msra.mxu1 %v6581_v63  ;;  %v6617_v63 = vld [vmem:[%s8055_s2 + $0x310] sm:$0xff]  }
 0x260   : > { %5995 = vmatprep.subr.bf16.mxu1 %v6582_v29 }
 0x263   : > { %5996 = vmatpush3.bf16.msra.mxu1 %v6582_v29  ;;  %v6618_v29 = vld [vmem:[%s8055_s2 + $0x318] sm:$0xff]  }
 0x264   : > { %6005 = vmatprep.subr.bf16.mxu1 %v6583_v55 }
 0x266   : > { %5998 = vmatmul.mubr.bf16.vlgmr.msra.gmra.mrb[8].mxu1 %v7756_v24 }
 0x267   : > { %6001 = vmatprep.mubr.bf16.mxu1 %v7763_v13  ;;  %6006 = vmatpush3.bf16.msra.mxu1 %v6583_v55  ;;  %v6621_v55 = vld [vmem:[%s8055_s2 + $0x330] sm:$0xff]  }
 0x268   : > { %6007 = vmatprep.subr.bf16.mxu1 %v6584_v58 }
 0x26b   : > { %6008 = vmatpush3.bf16.msra.mxu1 %v6584_v58  ;;  %v6622_v58 = vld [vmem:[%s8055_s2 + $0x338] sm:$0xff]  }
 0x26c   : > { %6009 = vmatprep.subr.bf16.mxu1 %v6585_v19 }
 0x26e   : > { %6002 = vmatmul.mubr.bf16.gmra.mrb[12].mxu1 %v7774_v52 }
 0x26f   : > { %6010 = vmatpush3.bf16.msra.mxu1 %v6585_v19  ;;  %6021 = vmatprep.mubr.bf16.mxu1 %v7472_v17  ;;  %v6590_v17 = vld [vmem:[%s8055_s2 + $0x138] sm:$0xff]   ;;  %v6623_v19 = vld [vmem:[%s8055_s2 + $0x380] sm:$0xff]  }
 0x270   : > { %6011 = vmatprep.subr.bf16.mxu1 %v6586_v32 }
 0x273   : > { %6012 = vmatpush3.bf16.msra.mxu1 %v6586_v32  ;;  %v6625_v32 = vld [vmem:[%s8055_s2 + $0x390] sm:$0xff]  }
 0x274   : > { %6013 = vmatprep.subr.bf16.mxu1 %v6587_v22 }
 0x277   : > { %6014 = vmatpush3.bf16.msra.mxu1 %v6587_v22  ;;  %v6626_v22 = vld [vmem:[%s8055_s2 + $0x398] sm:$0xff]  }
 0x278   : > { %6015 = vmatprep.subr.bf16.mxu1 %v6588_v26 }
 0x27b   : > { %6016 = vmatpush3.bf16.msra.mxu1 %v6588_v26  ;;  %v6627_v26 = vld [vmem:[%s8055_s2 + $0x3a0] sm:$0xff]  }
 0x27c   : > { %6017 = vmatprep.subr.bf16.mxu1 %v6589_v31 }
 0x27f   : > { %6018 = vmatpush3.bf16.msra.mxu1 %v6589_v31  ;;  %v6628_v31 = vld [vmem:[%s8055_s2 + $0x3a8] sm:$0xff]  }
 0x280   : > { %6019 = vmatprep.subr.bf16.mxu1 %v6590_v17 }
 0x283   : > { %6020 = vmatpush3.bf16.msra.mxu1 %v6590_v17 }
 0x284   : > { %6029 = vmatprep.subr.bf16.mxu1 %v6591_v3 }
 0x286   : > { %6022 = vmatmul.mubr.bf16.vlgmr.msra.gmra.mrb[8].mxu1 %v2891_v28 }
 0x287   : > { %6025 = vmatprep.mubr.bf16.mxu1 %v2892_v23  ;;  %6030 = vmatpush3.bf16.msra.mxu1 %v6591_v3  ;;  %v6630_v23 = vld [vmem:[%s8055_s2 + $0x3b8] sm:$0xff]  }
 0x288   : > { %6031 = vmatprep.subr.bf16.mxu1 %v6592_v42 }
 0x28b   : > { %6032 = vmatpush3.bf16.msra.mxu1 %v6592_v42 }
 0x28c   : > { %6033 = vmatprep.subr.bf16.mxu1 %v6593_v27 }
 0x28e   : > { %6026 = vmatmul.mubr.bf16.gmra.mrb[12].mxu1 %v2893_v16 }
 0x28f   : > { %6034 = vmatpush3.bf16.msra.mxu1 %v6593_v27  ;;  %6045 = vmatprep.mubr.bf16.mxu1 %v7812_v51 }
 0x290   : > { %6035 = vmatprep.subr.bf16.mxu1 %v6594_v9 }
 0x293   : > { %6036 = vmatpush3.bf16.msra.mxu1 %v6594_v9 }
 0x294   : > { %6037 = vmatprep.subr.bf16.mxu1 %v6595_v14 }
 0x297   : > { %6038 = vmatpush3.bf16.msra.mxu1 %v6595_v14 }
 0x298   : > { %6039 = vmatprep.subr.bf16.mxu1 %v6596_v1 }
 0x29b   : > { %6040 = vmatpush3.bf16.msra.mxu1 %v6596_v1 }
 0x29c   : > { %6041 = vmatprep.subr.bf16.mxu1 %v6597_v33 }
 0x29f   : > { %6042 = vmatpush3.bf16.msra.mxu1 %v6597_v33 }
 0x2a0   : > { %6043 = vmatprep.subr.bf16.mxu1 %v6598_v30 }
 0x2a3   : > { %6044 = vmatpush3.bf16.msra.mxu1 %v6598_v30 }
 0x2a4   : > { %6053 = vmatprep.subr.bf16.mxu1 %v6599_v15 }
 0x2a6   : > { %6046 = vmatmul.mubr.bf16.vlgmr.msra.gmra.mrb[8].mxu1 %v7832_v39 }
 0x2a7   : > { %6049 = vmatprep.mubr.bf16.mxu1 %v7839_v11  ;;  %6054 = vmatpush3.bf16.msra.mxu1 %v6599_v15 }
 0x2a8   : > { %6055 = vmatprep.subr.bf16.mxu1 %v6600_v48 }
 0x2ab   : > { %6056 = vmatpush3.bf16.msra.mxu1 %v6600_v48 }
 0x2ac   : > { %6057 = vmatprep.subr.bf16.mxu1 %v6601_v4 }
 0x2ae   : > { %6050 = vmatmul.mubr.bf16.gmra.mrb[12].mxu1 %v7848_v41 }
 0x2af   : > { %6058 = vmatpush3.bf16.msra.mxu1 %v6601_v4  ;;  %6069 = vmatprep.mubr.bf16.mxu1 %v7547_v43  ;;  %v6631_v4 = vld [vmem:[%s8055_s2 + $0x3c0] sm:$0xff]  }
 0x2b0   : > { %6059 = vmatprep.subr.bf16.mxu1 %v6602_v59 }
 0x2b3   : > { %6060 = vmatpush3.bf16.msra.mxu1 %v6602_v59 }
 0x2b4   : > { %6061 = vmatprep.subr.bf16.mxu1 %v6603_v40 }
 0x2b7   : > { %6062 = vmatpush3.bf16.msra.mxu1 %v6603_v40 }
 0x2b8   : > { %6063 = vmatprep.subr.bf16.mxu1 %v6604_v44 }
 0x2bb   : > { %6064 = vmatpush3.bf16.msra.mxu1 %v6604_v44 }
 0x2bc   : > { %6065 = vmatprep.subr.bf16.mxu1 %v6605_v18 }
 0x2bf   : > { %6066 = vmatpush3.bf16.msra.mxu1 %v6605_v18 }
 0x2c0   : > { %6067 = vmatprep.subr.bf16.mxu1 %v6606_v62 }
 0x2c3   : > { %6068 = vmatpush3.bf16.msra.mxu1 %v6606_v62 }
 0x2c4   : > { %6173 = vmatprep.subr.bf16.mxu1 %v6607_v49 }
 0x2c6   : > { %6070 = vmatmul.mubr.bf16.vlgmr.msra.gmra.mrb[8].mxu1 %v7551_v2 }
 0x2c7   : > { %6073 = vmatprep.mubr.bf16.mxu1 %v7589_v45  ;;  %6174 = vmatpush3.bf16.msra.mxu1 %v6607_v49 }
 0x2c8   : > { %6175 = vmatprep.subr.bf16.mxu1 %v6608_v50 }
 0x2cb   : > { %6176 = vmatpush3.bf16.msra.mxu1 %v6608_v50 }
 0x2cc   : > { %6177 = vmatprep.subr.bf16.mxu1 %v6609_v0 }
 0x2ce   : > { %6074 = vmatmul.mubr.bf16.gmra.mrb[12].mxu1 %v3327_v10 }
 0x2cf   : > { %6178 = vmatpush3.bf16.msra.mxu1 %v6609_v0  ;;  %6189 = vmatprep.mubr.bf16.mxu1 %v7547_v43  ;;  %v6614_v43 = vld [vmem:[%s8055_s2 + $0x378] sm:$0xff]  }
 0x2d0   : > { %6179 = vmatprep.subr.bf16.mxu1 %v6610_v37 }
 0x2d3   : > { %6180 = vmatpush3.bf16.msra.mxu1 %v6610_v37 }
 0x2d4   : > { %6181 = vmatprep.subr.bf16.mxu1 %v6611_v35 }
 0x2d7   : > { %6182 = vmatpush3.bf16.msra.mxu1 %v6611_v35 }
 0x2d8   : > { %6183 = vmatprep.subr.bf16.mxu1 %v6612_v36 }
 0x2db   : > { %6184 = vmatpush3.bf16.msra.mxu1 %v6612_v36 }
 0x2dc   : > { %6185 = vmatprep.subr.bf16.mxu1 %v6613_v46 }
 0x2df   : > { %6186 = vmatpush3.bf16.msra.mxu1 %v6613_v46 }
 0x2e0   : > { %6187 = vmatprep.subr.bf16.mxu1 %v6614_v43 }
 0x2e3   : > { %6188 = vmatpush3.bf16.msra.mxu1 %v6614_v43 }
 0x2e4   : > { %6197 = vmatprep.subr.bf16.mxu1 %v6615_v12 }
 0x2e6   : > { %6190 = vmatmul.mubr.bf16.vlgmr.msra.gmra.mrb[16].mxu1 %v7551_v2  ;;  %v6619_v2 = vld [vmem:[%s8055_s2 + $0x320] sm:$0xff]  }
 0x2e7   : > { %6193 = vmatprep.mubr.bf16.mxu1 %v7589_v45  ;;  %6198 = vmatpush3.bf16.msra.mxu1 %v6615_v12  ;;  %v6620_v45 = vld [vmem:[%s8055_s2 + $0x328] sm:$0xff]  }
 0x2e8   : > { %6199 = vmatprep.subr.bf16.mxu1 %v6616_v34 }
 0x2eb   : > { %6200 = vmatpush3.bf16.msra.mxu1 %v6616_v34  ;;  %v6632_v34 = vld [vmem:[%s8055_s2 + $0x3c8] sm:$0xff]  }
 0x2ec   : > { %6201 = vmatprep.subr.bf16.mxu1 %v6617_v63 }
 0x2ee   : > { %6194 = vmatmul.mubr.bf16.gmra.mrb[20].mxu1 %v3327_v10 }
 0x2ef   : > { %6202 = vmatpush3.bf16.msra.mxu1 %v6617_v63  ;;  %6213 = vmatprep.mubr.bf16.mxu1 %v7812_v51 }
 0x2f0   : > { %6203 = vmatprep.subr.bf16.mxu1 %v6618_v29 }
 0x2f3   : > { %6204 = vmatpush3.bf16.msra.mxu1 %v6618_v29 }
 0x2f4   : > { %6205 = vmatprep.subr.bf16.mxu1 %v6619_v2 }
 0x2f7   : > { %6206 = vmatpush3.bf16.msra.mxu1 %v6619_v2 }
 0x2f8   : > { %6207 = vmatprep.subr.bf16.mxu1 %v6620_v45 }
 0x2fb   : > { %6208 = vmatpush3.bf16.msra.mxu1 %v6620_v45 }
 0x2fc   : > { %6209 = vmatprep.subr.bf16.mxu1 %v6621_v55 }
 0x2ff   : > { %6210 = vmatpush3.bf16.msra.mxu1 %v6621_v55 }
 0x300   : > { %6211 = vmatprep.subr.bf16.mxu1 %v6622_v58 }
 0x303   : > { %6212 = vmatpush3.bf16.msra.mxu1 %v6622_v58 }
 0x304   : > { %6221 = vmatprep.subr.bf16.mxu1 %v6623_v19 }
 0x306   : > { %6214 = vmatmul.mubr.bf16.vlgmr.msra.gmra.mrb[16].mxu1 %v7832_v39 }
 0x307   : > { %6217 = vmatprep.mubr.bf16.mxu1 %v7839_v11  ;;  %6222 = vmatpush3.bf16.msra.mxu1 %v6623_v19 }
 0x308   : > { %6223 = vmatprep.subr.bf16.mxu1 %v6624_v5 }
 0x30b   : > { %6224 = vmatpush3.bf16.msra.mxu1 %v6624_v5 }
 0x30c   : > { %6225 = vmatprep.subr.bf16.mxu1 %v6625_v32 }
 0x30e   : > { %6218 = vmatmul.mubr.bf16.gmra.mrb[20].mxu1 %v7848_v41 }
 0x30f   : > { %6226 = vmatpush3.bf16.msra.mxu1 %v6625_v32  ;;  %6237 = vmatprep.mubr.bf16.mxu1 %v4433_v53 }
 0x310   : > { %6227 = vmatprep.subr.bf16.mxu1 %v6626_v22 }
 0x313   : > { %6228 = vmatpush3.bf16.msra.mxu1 %v6626_v22 }
 0x314   : > { %6229 = vmatprep.subr.bf16.mxu1 %v6627_v26 }
 0x317   : > { %6230 = vmatpush3.bf16.msra.mxu1 %v6627_v26 }
 0x318   : > { %6231 = vmatprep.subr.bf16.mxu1 %v6628_v31 }
 0x319   : > { %v5975_v21 = vpop.f32.mrb[0].mxu1 }
 0x31a   : > { %2840 = vst [vmem:[%s7953_s29 + $0x10] sm:$0xff] %v5975_v21  ;;  %v2799_v53 = vpop.f32.mrb[1].mxu1  ;;  %v2862_v51 = vmul.f32 %v5975_v21, %v5975_v21 }
 0x31b   : > { %2838 = vst [vmem:[%s7953_s29] sm:$0xff] %v2799_v53  ;;  %v6167_v17 = vpop.f32.mrb[8].mxu0  ;;  %v5976_v3 = vpop.f32.mrb[2].mxu1  ;;  %6232 = vmatpush3.bf16.msra.mxu1 %v6628_v31  ;;  %v2860_v27 = vmul.f32 %v2799_v53, %v2799_v53 }
 0x31c   : > { %5340 = vst [vmem:[%s7953_s29 + $0x90] sm:$0xff] %v6167_v17  ;;  %2841 = vst [vmem:[%s7953_s29 + $0x18] sm:$0xff] %v5976_v3  ;;  %v4057_v28 = vpop.f32.mrb[9].mxu0  ;;  %v2802_v42 = vpop.f32.mrb[3].mxu1  ;;  %6233 = vmatprep.subr.bf16.mxu1 %v6629_v25  ;;  %v4121_v48 = vmul.f32 %v6167_v17, %v6167_v17  ;;  %v2863_v11 = vmul.f32 %v5976_v3, %v5976_v3 }
 0x31d   : > { %5338 = vst [vmem:[%s7953_s29 + $0x80] sm:$0xff] %v4057_v28  ;;  %2839 = vst [vmem:[%s7953_s29 + $0x8] sm:$0xff] %v2802_v42  ;;  %v2846_v16 = vadd.f32 %v2802_v42, %v2799_v53  ;;  %v2861_v54 = vmul.f32 %v2802_v42, %v2802_v42  ;;  %v6168_v9 = vpop.f32.mrb[10].mxu0  ;;  %v4119_v14 = vmul.f32 %v4057_v28, %v4057_v28  ;;  %v6633_v53 = vld [vmem:[%s8055_s2 + $0x3d0] sm:$0xff]  }
 0x31e   : > { %5341 = vst [vmem:[%s7953_s29 + $0x98] sm:$0xff] %v6168_v9  ;;  %v4060_v1 = vpop.f32.mrb[11].mxu0  ;;  %v4122_v62 = vmul.f32 %v6168_v9, %v6168_v9 }
 0x31f   : > { %v2847_v33 = vadd.f32 %v5975_v21, %v2846_v16  ;;  %v2868_v30 = vadd.f32 %v2861_v54, %v2860_v27  ;;  %5339 = vst [vmem:[%s7953_s29 + $0x88] sm:$0xff] %v4060_v1  ;;  %v4105_v15 = vadd.f32 %v4060_v1, %v4057_v28  ;;  %v4120_v39 = vmul.f32 %v4060_v1, %v4060_v1  ;;  %v6635_v16 = vld [vmem:[%s8055_s2 + $0x3e0] sm:$0xff]   ;;  %v6636_v54 = vld [vmem:[%s8055_s2 + $0x3e8] sm:$0xff]  }
 0x320   : > { %6234 = vmatpush3.bf16.msra.mxu1 %v6629_v25 }
 0x321   : > { %6235 = vmatprep.subr.bf16.mxu1 %v6630_v23  ;;  %v2869_v41 = vadd.f32 %v2868_v30, %v2862_v51  ;;  %v4106_v59 = vadd.f32 %v6167_v17, %v4105_v15  ;;  %v4127_v40 = vadd.f32 %v4120_v39, %v4119_v14  ;;  %v5979_v44 = vpop.f32.mrb[4].mxu1  ;;  %v2848_v18 = vadd.f32 %v5976_v3, %v2847_v33 }
 0x322   : > { %2844 = vst [vmem:[%s7953_s29 + $0x30] sm:$0xff] %v5979_v44  ;;  %v2815_v49 = vpop.f32.mrb[5].mxu1  ;;  %v2866_v31 = vmul.f32 %v5979_v44, %v5979_v44 }
 0x323   : > { %v4128_v50 = vadd.f32 %v4127_v40, %v4121_v48  ;;  %2842 = vst [vmem:[%s7953_s29 + $0x20] sm:$0xff] %v2815_v49  ;;  %v2849_v0 = vadd.f32 %v2848_v18, %v2815_v49  ;;  %v2864_v10 = vmul.f32 %v2815_v49, %v2815_v49  ;;  %v2870_v37 = vadd.f32 %v2869_v41, %v2863_v11  ;;  %v6171_v35 = vpop.f32.mrb[12].mxu0  ;;  %v5980_v36 = vpop.f32.mrb[6].mxu1 }
 0x324   : > { %6236 = vmatpush3.bf16.msra.mxu1 %v6630_v23  ;;  %5344 = vst [vmem:[%s7953_s29 + $0xb0] sm:$0xff] %v6171_v35  ;;  %2845 = vst [vmem:[%s7953_s29 + $0x38] sm:$0xff] %v5980_v36  ;;  %v4073_v46 = vpop.f32.mrb[13].mxu0  ;;  %v4107_v43 = vadd.f32 %v6168_v9, %v4106_v59  ;;  %v2818_v12 = vpop.f32.mrb[7].mxu1  ;;  %v4125_v17 = vmul.f32 %v6171_v35, %v6171_v35 }
 0x325   : > { %6245 = vmatprep.subr.bf16.mxu1 %v6631_v4  ;;  %v2871_v63 = vadd.f32 %v2870_v37, %v2864_v10  ;;  %5342 = vst [vmem:[%s7953_s29 + $0xa0] sm:$0xff] %v4073_v46  ;;  %v4123_v29 = vmul.f32 %v4073_v46, %v4073_v46  ;;  %v4129_v2 = vadd.f32 %v4128_v50, %v4122_v62  ;;  %2843 = vst [vmem:[%s7953_s29 + $0x28] sm:$0xff] %v2818_v12  ;;  %v6172_v55 = vpop.f32.mrb[14].mxu0 }
 0x326   : > { %v2850_v45 = vadd.f32 %v2849_v0, %v2818_v12  ;;  %v4108_v58 = vadd.f32 %v4107_v43, %v4073_v46  ;;  %v2865_v19 = vmul.f32 %v2818_v12, %v2818_v12  ;;  %5345 = vst [vmem:[%s7953_s29 + $0xb8] sm:$0xff] %v6172_v55  ;;  %v4076_v5 = vpop.f32.mrb[15].mxu0  ;;  %v4126_v42 = vmul.f32 %v6172_v55, %v6172_v55 }
 0x327   : > { %6238 = vmatmul.mubr.bf16.vlgmr.msra.gmra.mrb[16].mxu1 %v4434_v38  ;;  %v4130_v32 = vadd.f32 %v4129_v2, %v4123_v29  ;;  %5343 = vst [vmem:[%s7953_s29 + $0xa8] sm:$0xff] %v4076_v5  ;;  %v4124_v26 = vmul.f32 %v4076_v5, %v4076_v5  ;;  %v2867_v38 = vmul.f32 %v5980_v36, %v5980_v36 }
 0x328   : > { %v2851_v22 = vadd.f32 %v5979_v44, %v2850_v45  ;;  %6241 = vmatprep.mubr.bf16.mxu1 %v4435_v57  ;;  %6246 = vmatpush3.bf16.msra.mxu1 %v6631_v4  ;;  %v2872_v25 = vadd.f32 %v2871_v63, %v2865_v19  ;;  %v4109_v21 = vadd.f32 %v4108_v58, %v4076_v5  ;;  %v6634_v57 = vld [vmem:[%s8055_s2 + $0x3d8] sm:$0xff]  }
 0x329   : > { %6247 = vmatprep.subr.bf16.mxu1 %v6632_v34  ;;  %v4131_v6 = vadd.f32 %v4130_v32, %v4124_v26 }
 0x32a   : > { %v7992_v61 = vadd.f32 %v5980_v36, %v2851_v22  ;;  %v2873_v3 = vadd.f32 %v2872_v25, %v2866_v31  ;;  %v4110_v28 = vadd.f32 %v6171_v35, %v4109_v21 }
 0x32b   : > { %v4132_v23 = vadd.f32 %v4131_v6, %v4125_v17 }
 0x32c   : > { %6248 = vmatpush3.bf16.msra.mxu1 %v6632_v34  ;;  %v7994_v47 = vadd.f32 %v2873_v3, %v2867_v38  ;;  %v7996_v60 = vadd.f32 %v6172_v55, %v4110_v28 }
 0x32d   : > { %6249 = vmatprep.subr.bf16.mxu1 %v6633_v53  ;;  %v8001_v27 = vadd.f32 %v4132_v23, %v4126_v42 }
 0x32e   : > { %v2875_v59 = vrot.slane %v7994_v47, 4  ;;  %v4112_v44 = vrot.slane %v7996_v60, 4 }
 0x32f   : > { %6242 = vmatmul.mubr.bf16.gmra.mrb[20].mxu1 %v4436_v8  ;;  %v4582_v8 = vld [vmem:[#allocation2 + $0x92] sm:$0xff]  ;;  %v4134_v37 = vrot.slane %v8001_v27, 4 }
 0x330   : > { %6250 = vmatpush3.bf16.msra.mxu1 %v6633_v53  ;;  %6261 = vmatprep.mubr.bf16.mxu1 %v7756_v24  ;;  %v4586_v24 = vpack.c.bf16 %v4582_v8, %v7878_v7  ;;  %v2853_v7 = vrot.slane %v7992_v61, 4  ;;  %v2876_v43 = vadd.f32 %v2875_v59, %v7994_v47  ;;  %v4113_v12 = vadd.f32 %v4112_v44, %v7996_v60 }
 0x331   : > { %6251 = vmatprep.subr.bf16.mxu1 %v6634_v57  ;;  %v4135_v45 = vadd.f32 %v4134_v37, %v8001_v27 }
 0x332   : > { %v2854_v0 = vadd.f32 %v2853_v7, %v7992_v61  ;;  %v2877_v5 = vrot.slane %v2876_v43, 2  ;;  %v4114_v32 = vrot.slane %v4113_v12, 2 }
 0x333   : > { %v4136_v25 = vrot.slane %v4135_v45, 2 }
 0x334   : > { %6252 = vmatpush3.bf16.msra.mxu1 %v6634_v57  ;;  %v2855_v2 = vrot.slane %v2854_v0, 2  ;;  %v2878_v17 = vadd.f32 %v2877_v5, %v2876_v43  ;;  %v4115_v61 = vadd.f32 %v4114_v32, %v4113_v12 }
 0x335   : > { %6253 = vmatprep.subr.bf16.mxu1 %v6635_v16  ;;  %v4137_v28 = vadd.f32 %v4136_v25, %v4135_v45 }
 0x336   : > { %v2856_v31 = vadd.f32 %v2855_v2, %v2854_v0  ;;  %v2879_v47 = vrot.slane %v2878_v17, 1  ;;  %v4116_v60 = vrot.slane %v4115_v61, 1 }
 0x338   : > { %6254 = vmatpush3.bf16.msra.mxu1 %v6635_v16  ;;  %v2857_v3 = vrot.slane %v2856_v31, 1  ;;  %v2880_v8 = vadd.f32 %v2879_v47, %v2878_v17 }
 0x339   : > { %6255 = vmatprep.subr.bf16.mxu1 %v6636_v54 }
 0x33a   : > { %v2858_v16 = vadd.f32 %v2857_v3, %v2856_v31 }
 0x33c   : > { %6256 = vmatpush3.bf16.msra.mxu1 %v6636_v54  ;;  %v4138_v54 = vrot.slane %v4137_v28, 1 }
 0x33d   : > { %6257 = vmatprep.subr.bf16.mxu1 %v6637_v56 }
 0x340   : > { %6258 = vmatpush3.bf16.msra.mxu1 %v6637_v56 }
 0x341   : > { %6259 = vmatprep.subr.bf16.mxu1 %v6638_v20 }
 0x344   : > { %6260 = vmatpush3.bf16.msra.mxu1 %v6638_v20 }
 0x347   : > { %6262 = vmatmul.mubr.bf16.vlgmr.msra.gmra.mrb[16].mxu1 %v7763_v13 }
 0x348   : > { %6265 = vmatprep.mubr.bf16.mxu1 %v7774_v52 }
 0x34f   : > { %6266 = vmatmul.mubr.bf16.gmra.mrb[20].mxu1 %v4586_v24  ;;  %v4117_v24 = vadd.f32 %v4116_v60, %v4115_v61 }
 0x399   : > { %v6071_v9 = vpop.f32.mrb[8].mxu1 }
 0x39a   : > { %5236 = vst [vmem:[%s7953_s29 + $0x50] sm:$0xff] %v6071_v9  ;;  %v3427_v51 = vpop.f32.mrb[9].mxu1  ;;  %v3491_v13 = vmul.f32 %v6071_v9, %v6071_v9 }
 0x39b   : > { %5234 = vst [vmem:[%s7953_s29 + $0x40] sm:$0xff] %v3427_v51  ;;  %v6072_v14 = vpop.f32.mrb[10].mxu1  ;;  %v3489_v33 = vmul.f32 %v3427_v51, %v3427_v51 }
 0x39c   : > { %5237 = vst [vmem:[%s7953_s29 + $0x58] sm:$0xff] %v6072_v14  ;;  %v3430_v1 = vpop.f32.mrb[11].mxu1  ;;  %v3492_v48 = vmul.f32 %v6072_v14, %v6072_v14 }
 0x39d   : > { %5235 = vst [vmem:[%s7953_s29 + $0x48] sm:$0xff] %v3430_v1  ;;  %v3475_v30 = vadd.f32 %v3430_v1, %v3427_v51  ;;  %v3490_v15 = vmul.f32 %v3430_v1, %v3430_v1 }
 0x39f   : > { %v3476_v39 = vadd.f32 %v6071_v9, %v3475_v30  ;;  %v3497_v52 = vadd.f32 %v3490_v15, %v3489_v33 }
 0x3a1   : > { %v3498_v11 = vadd.f32 %v3497_v52, %v3491_v13  ;;  %v6075_v4 = vpop.f32.mrb[12].mxu1  ;;  %v3477_v41 = vadd.f32 %v6072_v14, %v3476_v39  ;;  %v4139_v14 = vadd.f32 %v4138_v54, %v4137_v28 }
 0x3a2   : > { %5240 = vst [vmem:[%s7953_s29 + $0x70] sm:$0xff] %v6075_v4  ;;  %v3443_v40 = vpop.f32.mrb[13].mxu1  ;;  %v3495_v34 = vmul.f32 %v6075_v4, %v6075_v4 }
 0x3a3   : > { %5238 = vst [vmem:[%s7953_s29 + $0x60] sm:$0xff] %v3443_v40  ;;  %v3478_v18 = vadd.f32 %v3477_v41, %v3443_v40  ;;  %v3493_v62 = vmul.f32 %v3443_v40, %v3443_v40  ;;  %v3499_v49 = vadd.f32 %v3498_v11, %v3492_v48  ;;  %v6076_v50 = vpop.f32.mrb[14].mxu1 }
 0x3a4   : > { %5241 = vst [vmem:[%s7953_s29 + $0x78] sm:$0xff] %v6076_v50  ;;  %v3446_v10 = vpop.f32.mrb[15].mxu1  ;;  %v3496_v55 = vmul.f32 %v6076_v50, %v6076_v50 }
 0x3a5   : > { %v3500_v35 = vadd.f32 %v3499_v49, %v3493_v62  ;;  %5239 = vst [vmem:[%s7953_s29 + $0x68] sm:$0xff] %v3446_v10  ;;  %v3479_v36 = vadd.f32 %v3478_v18, %v3446_v10  ;;  %v3494_v46 = vmul.f32 %v3446_v10, %v3446_v10 }
 0x3a7   : > { %v3480_v63 = vadd.f32 %v6075_v4, %v3479_v36  ;;  %v3501_v29 = vadd.f32 %v3500_v35, %v3494_v46 }
 0x3a9   : > { %v3481_v58 = vadd.f32 %v6076_v50, %v3480_v63  ;;  %v3502_v19 = vadd.f32 %v3501_v29, %v3495_v34 }
 0x3ab   : > { %v3482_v22 = vrot.slane %v3481_v58, 4  ;;  %v3503_v26 = vadd.f32 %v3502_v19, %v3496_v55 }
 0x3ad   : > { %v3483_v21 = vadd.f32 %v3482_v22, %v3481_v58  ;;  %v3504_v53 = vrot.slane %v3503_v26, 4 }
 0x3af   : > { %v3484_v6 = vrot.slane %v3483_v21, 2  ;;  %v3505_v38 = vadd.f32 %v3504_v53, %v3503_v26 }
 0x3b1   : > { %v3485_v42 = vadd.f32 %v3484_v6, %v3483_v21  ;;  %v3506_v23 = vrot.slane %v3505_v38, 2 }
 0x3b3   : > { %v3486_v57 = vrot.slane %v3485_v42, 1  ;;  %v3507_v27 = vadd.f32 %v3506_v23, %v3505_v38 }
 0x3b5   : > { %v3487_v56 = vadd.f32 %v3486_v57, %v3485_v42  ;;  %v3508_v20 = vrot.slane %v3507_v27, 1 }
 0x3b7   : > { %v3488_v9 = vadd.f32 %v3487_v56, %v2858_v16  ;;  %v3509_v51 = vadd.f32 %v3508_v20, %v3507_v27 }
 0x3b9   : > { %v3510_v1 = vadd.f32 %v3509_v51, %v2880_v8  ;;  %v4118_v33 = vadd.f32 %v4117_v24, %v3488_v9 }
 0x3bb   : > { %v4140_v30 = vadd.f32 %v4139_v14, %v3510_v1 }
 0x41a   : > { %v6263_v15 = vpop.f32.mrb[16].mxu1 }
 0x41b   : > { %5444 = vst [vmem:[%s7953_s29 + $0xd0] sm:$0xff] %v6263_v15  ;;  %v4686_v13 = vpop.f32.mrb[17].mxu1  ;;  %v4750_v4 = vmul.f32 %v6263_v15, %v6263_v15 }
 0x41c   : > { %5442 = vst [vmem:[%s7953_s29 + $0xc0] sm:$0xff] %v4686_v13  ;;  %v6264_v39 = vpop.f32.mrb[18].mxu1  ;;  %v4748_v7 = vmul.f32 %v4686_v13, %v4686_v13 }
 0x41d   : > { %5445 = vst [vmem:[%s7953_s29 + $0xd8] sm:$0xff] %v6264_v39  ;;  %v4689_v52 = vpop.f32.mrb[19].mxu1  ;;  %v4751_v40 = vmul.f32 %v6264_v39, %v6264_v39 }
 0x41e   : > { %5443 = vst [vmem:[%s7953_s29 + $0xc8] sm:$0xff] %v4689_v52  ;;  %v4734_v48 = vadd.f32 %v4689_v52, %v4686_v13  ;;  %v4749_v11 = vmul.f32 %v4689_v52, %v4689_v52 }
 0x420   : > { %v4735_v41 = vadd.f32 %v6263_v15, %v4734_v48  ;;  %v4756_v59 = vadd.f32 %v4749_v11, %v4748_v7 }
 0x422   : > { %v4757_v44 = vadd.f32 %v4756_v59, %v4750_v4  ;;  %v6267_v18 = vpop.f32.mrb[20].mxu1  ;;  %v4736_v62 = vadd.f32 %v6264_v39, %v4735_v41 }
 0x423   : > { %5448 = vst [vmem:[%s7953_s29 + $0xf0] sm:$0xff] %v6267_v18  ;;  %v4702_v49 = vpop.f32.mrb[21].mxu1  ;;  %v4754_v12 = vmul.f32 %v6267_v18, %v6267_v18 }
 0x424   : > { %5446 = vst [vmem:[%s7953_s29 + $0xe0] sm:$0xff] %v4702_v49  ;;  %v4737_v50 = vadd.f32 %v4736_v62, %v4702_v49  ;;  %v4752_v0 = vmul.f32 %v4702_v49, %v4702_v49  ;;  %v4758_v10 = vadd.f32 %v4757_v44, %v4751_v40  ;;  %v6268_v37 = vpop.f32.mrb[22].mxu1 }
 0x425   : > { %5449 = vst [vmem:[%s7953_s29 + $0xf8] sm:$0xff] %v6268_v37  ;;  %v4705_v35 = vpop.f32.mrb[23].mxu1  ;;  %v4755_v29 = vmul.f32 %v6268_v37, %v6268_v37 }
 0x426   : > { %v4759_v36 = vadd.f32 %v4758_v10, %v4752_v0  ;;  %5447 = vst [vmem:[%s7953_s29 + $0xe8] sm:$0xff] %v4705_v35  ;;  %v4738_v46 = vadd.f32 %v4737_v50, %v4705_v35  ;;  %v4753_v43 = vmul.f32 %v4705_v35, %v4705_v35  ;;  %s208_s29 = scalar_lea.vmem %s8057_s4, %s4866_s26 }
 0x428   : > { %v4739_v34 = vadd.f32 %v6267_v18, %v4738_v46  ;;  %v4760_v63 = vadd.f32 %v4759_v36, %v4753_v43 }
 0x42a   : > { %v4740_v2 = vadd.f32 %v6268_v37, %v4739_v34  ;;  %v4761_v45 = vadd.f32 %v4760_v63, %v4754_v12 }
 0x42c   : > { %v4741_v55 = vrot.slane %v4740_v2, 4  ;;  %v4762_v58 = vadd.f32 %v4761_v45, %v4755_v29 }
 0x42e   : > { %v4742_v19 = vadd.f32 %v4741_v55, %v4740_v2  ;;  %v4763_v5 = vrot.slane %v4762_v58, 4 }
 0x430   : > { %v4743_v32 = vrot.slane %v4742_v19, 2  ;;  %v4764_v22 = vadd.f32 %v4763_v5, %v4762_v58 }
 0x432   : > { %v4744_v26 = vadd.f32 %v4743_v32, %v4742_v19  ;;  %v4765_v31 = vrot.slane %v4764_v22, 2 }
 0x434   : > { %v4745_v25 = vrot.slane %v4744_v26, 1  ;;  %v4766_v21 = vadd.f32 %v4765_v31, %v4764_v22 }
 0x436   : > { %v4746_v53 = vadd.f32 %v4745_v25, %v4744_v26  ;;  %v4767_v17 = vrot.slane %v4766_v21, 1 }
 0x438   : > { %v4747_v61 = vadd.f32 %v4746_v53, %v4118_v33  ;;  %v4768_v6 = vadd.f32 %v4767_v17, %v4766_v21 }
 0x43a   : > { %v4769_v38 = vadd.f32 %v4768_v6, %v4140_v30  ;;  %4770 = vst [vmem:[%s208_s29] sm:$0x1] %v4747_v61 }
 0x43c   : > { %4771 = vst [vmem:[%s208_s29 + $0x1] sm:$0x1] %v4769_v38 }
 0x43d PF: > { %s15_s15 = sadd.s32 1, %s6645_s15  }
 0x43e   : > { %p12_p4 = scmp.ge.s32.totalorder %s15_s15, 4  }
 0x440   :  { %14 = sbr.rel (!%p12_p4) target bundleno = 1 (0x1), region = 116 }

</bundles_post_ra>
